<compile_context>
chip_gen: v5e
topology: v5e:2x2
jax: 0.10.0
libtpu: 0.0.40
codegen_flags: <defaults>
</compile_context>

<pallas_src>
from functools import partial

import jax
import jax.numpy as jnp
from jax.experimental import pallas as pl
from jax.experimental.pallas import tpu as pltpu


# ----------------------------------------------------------------------------
# Small utilities
# ----------------------------------------------------------------------------
def _round_up(x, m):
    return ((x + m - 1) // m) * m


def _largest_divisor(n, pred):
    best = None
    for d in range(1, n + 1):
        if n % d == 0 and pred(d):
            best = d
    return best


def _vmem_limit_bytes():
    """Per-generation scoped-VMEM limit (v5e/v6e: 128 MiB, v7x: 64 MiB)."""
    cap = 64 * 1024 * 1024          # conservative fallback (v7x-sized)
    try:
        info = pltpu.get_tpu_info()
        cap = int(getattr(info, "vmem_capacity_bytes", cap) or cap)
    except Exception:
        pass
    return min(int(cap * 0.80), 100 * 1024 * 1024)


# ----------------------------------------------------------------------------
# Shared in-kernel building blocks
# ----------------------------------------------------------------------------
def _fill_halo(upad_ref, u, H, W):
    """Write conv1 output into the zero-padded scratch.

    Only the 1-wide halo border is zeroed (the interior is fully overwritten
    every grid step, so this stays correct under 'parallel' megacore
    sharding).  Columns beyond W+1 of the sublane-padded W axis are never
    read, so they stay uninitialized.
    """
    F, _, Wp, P = upad_ref.shape
    zr = jnp.zeros((F, 1, Wp, P), jnp.float32)
    upad_ref[:, 0:1, :, :] = zr
    upad_ref[:, H + 1:H + 2, :, :] = zr
    zc = jnp.zeros((F, H + 2, 1, P), jnp.float32)
    upad_ref[:, :, 0:1, :] = zc
    upad_ref[:, :, W + 1:W + 2, :] = zc
    upad_ref[:, 1:H + 1, 1:W + 1, :] = u.reshape(F, H, W, P)


def _conv2_spatial_taps(upad_ref, w2_ref, H, W):
    """(1,3,3) conv (padding 1) read from the padded VMEM scratch.

    Single K=9P MXU matmul when the lane concat is tile-aligned
    (P % 128 == 0); otherwise 9 accumulating K=P matmuls.
    """
    bf16 = jnp.bfloat16
    P = w2_ref.shape[1]
    F = upad_ref.shape[0]
    rows = F * H * W
    slabs = [upad_ref[:, dy:dy + H, dx:dx + W, :].reshape(rows, P).astype(bf16)
             for dy in range(3) for dx in range(3)]
    w2 = w2_ref[...]                                           # (9P, P) bf16
    if P % 128 == 0:
        stk = jnp.concatenate(slabs, axis=-1)                  # (rows, 9P)
        return jnp.dot(stk, w2, preferred_element_type=jnp.float32)
    acc = jnp.dot(slabs[0], w2[0:P], preferred_element_type=jnp.float32)
    for t in range(1, 9):
        acc = acc + jnp.dot(slabs[t], w2[t * P:(t + 1) * P],
                            preferred_element_type=jnp.float32)
    return acc


def _conv2t_temporal_taps(vt, w2t_ref):
    """(3,1,1) conv (padding 1) over a (T, HW, P) bf16 slab -> (T*HW, P) f32."""
    bf16 = jnp.bfloat16
    T, HW, P = vt.shape
    rows = T * HW
    if T > 1:
        zrow = jnp.zeros((1, HW, P), bf16)
        v_prev = jnp.concatenate([zrow, vt[:T - 1]], axis=0)   # in[t-1]
        v_next = jnp.concatenate([vt[1:], zrow], axis=0)       # in[t+1]
    else:
        v_prev = jnp.zeros_like(vt)
        v_next = jnp.zeros_like(vt)
    w2t = w2t_ref[...]                                         # (3P, P) bf16
    if P % 128 == 0:
        stk = jnp.concatenate([v_prev, vt, v_next],
                              axis=-1).reshape(rows, 3 * P)
        return jnp.dot(stk, w2t, preferred_element_type=jnp.float32)
    y = jnp.dot(v_prev.reshape(rows, P), w2t[0:P],
                preferred_element_type=jnp.float32)
    y = y + jnp.dot(vt.reshape(rows, P), w2t[P:2 * P],
                    preferred_element_type=jnp.float32)
    y = y + jnp.dot(v_next.reshape(rows, P), w2t[2 * P:3 * P],
                    preferred_element_type=jnp.float32)
    return y


# ----------------------------------------------------------------------------
# Fully-fused kernel: whole bottleneck for one clip per grid step
# ----------------------------------------------------------------------------
def _bottleneck_fused_kernel(x_ref, w1_ref, s1_ref, b1_ref, w2_ref, s2_ref,
                             b2_ref, w2t_ref, s2t_ref, b2t_ref, w3_ref,
                             s3_ref, b3_ref, o_ref, upad_ref, *, H, W):
    T, HW, Cin = x_ref.shape
    P = w1_ref.shape[1]
    Cout = w3_ref.shape[1]
    bf16 = jnp.bfloat16
    rows = T * HW

    x = x_ref[...]                                    # (T, HW, Cin) f32

    # conv1 (1x1x1) + bn1 + relu -- one MXU matmul, bf16 in / f32 accum.
    u = jnp.dot(x.reshape(rows, Cin).astype(bf16), w1_ref[...],
                preferred_element_type=jnp.float32)
    u = jnp.maximum(u * s1_ref[...] + b1_ref[...], 0.0)

    # conv2 (1,3,3) + bn2 + relu (halo handled in VMEM scratch).
    _fill_halo(upad_ref, u, H, W)
    v = _conv2_spatial_taps(upad_ref, w2_ref, H, W)
    v = jnp.maximum(v * s2_ref[...] + b2_ref[...], 0.0)

    # conv2_t (3,1,1) (+bias folded) + bn2_t (no relu here, as in reference).
    vt = v.astype(bf16).reshape(T, HW, P)
    y = _conv2t_temporal_taps(vt, w2t_ref)
    y = y * s2t_ref[...] + b2t_ref[...]

    # conv3 (1x1x1) + bn3 + residual + relu (residual = the loaded x block).
    y3 = jnp.dot(y.astype(bf16), w3_ref[...],
                 preferred_element_type=jnp.float32)
    y3 = y3 * s3_ref[...] + b3_ref[...] + x.reshape(rows, Cout)
    o_ref[...] = jnp.maximum(y3, 0.0).astype(o_ref.dtype).reshape(T, HW, Cout)


def bottleneck_fused(x_cl, p, *, N, T, H, W, vmem_limit):
    NT, HW, Cin = x_cl.shape
    P = p["w1"].shape[1]
    Cout = p["w3"].shape[1]
    Wp = _round_up(W + 2, 8)
    bf16 = jnp.bfloat16
    kernel = partial(_bottleneck_fused_kernel, H=H, W=W)
    full = lambda n: (0, 0)
    return pl.pallas_call(
        kernel,
        out_shape=jax.ShapeDtypeStruct((NT, HW, Cout), x_cl.dtype),
        grid=(N,),
        in_specs=[
            pl.BlockSpec((T, HW, Cin), lambda n: (n, 0, 0)),
            pl.BlockSpec((Cin, P), full),
            pl.BlockSpec((1, P), full),
            pl.BlockSpec((1, P), full),
            pl.BlockSpec((9 * P, P), full),
            pl.BlockSpec((1, P), full),
            pl.BlockSpec((1, P), full),
            pl.BlockSpec((3 * P, P), full),
            pl.BlockSpec((1, P), full),
            pl.BlockSpec((1, P), full),
            pl.BlockSpec((P, Cout), full),
            pl.BlockSpec((1, Cout), full),
            pl.BlockSpec((1, Cout), full),
        ],
        out_specs=pl.BlockSpec((T, HW, Cout), lambda n: (n, 0, 0)),
        scratch_shapes=[pltpu.VMEM((T, H + 2, Wp, P), jnp.float32)],
        compiler_params=pltpu.CompilerParams(
            dimension_semantics=("parallel",),
            vmem_limit_bytes=vmem_limit),
    )(x_cl,
      p["w1"].astype(bf16), p["s1"].reshape(1, P), p["b1"].reshape(1, P),
      p["w2"].reshape(9 * P, P).astype(bf16),
      p["s2"].reshape(1, P), p["b2"].reshape(1, P),
      p["w2t"].reshape(3 * P, P).astype(bf16),
      p["s2t"].reshape(1, P), p["b2t_eff"].reshape(1, P),
      p["w3"].astype(bf16), p["s3"].reshape(1, Cout), p["b3"].reshape(1, Cout))


# ----------------------------------------------------------------------------
# Split path, kernel 1: conv1 (1x1x1)+bn1+relu -> conv2 (1,3,3)+bn2+relu
# ----------------------------------------------------------------------------
def _spatial_kernel(x_ref, w1_ref, s1_ref, b1_ref, w2_ref, s2_ref, b2_ref,
                    o_ref, upad_ref, *, H, W):
    F, HW, Cin = x_ref.shape
    P = w1_ref.shape[1]
    bf16 = jnp.bfloat16
    rows = F * HW

    u = jnp.dot(x_ref[...].reshape(rows, Cin).astype(bf16), w1_ref[...],
                preferred_element_type=jnp.float32)
    u = jnp.maximum(u * s1_ref[...] + b1_ref[...], 0.0)

    _fill_halo(upad_ref, u, H, W)
    v = _conv2_spatial_taps(upad_ref, w2_ref, H, W)
    v = jnp.maximum(v * s2_ref[...] + b2_ref[...], 0.0)
    o_ref[...] = v.astype(o_ref.dtype).reshape(F, HW, P)


def spatial_conv(x, p, *, H, W, F, vmem_limit):
    NT, HW, Cin = x.shape
    P = p["w1"].shape[1]
    Wp = _round_up(W + 2, 8)
    bf16 = jnp.bfloat16
    kernel = partial(_spatial_kernel, H=H, W=W)
    full = lambda i: (0, 0)
    return pl.pallas_call(
        kernel,
        out_shape=jax.ShapeDtypeStruct((NT, HW, P), bf16),
        grid=(NT // F,),
        in_specs=[
            pl.BlockSpec((F, HW, Cin), lambda i: (i, 0, 0)),
            pl.BlockSpec((Cin, P), full),
            pl.BlockSpec((1, P), full),
            pl.BlockSpec((1, P), full),
            pl.BlockSpec((9 * P, P), full),
            pl.BlockSpec((1, P), full),
            pl.BlockSpec((1, P), full),
        ],
        out_specs=pl.BlockSpec((F, HW, P), lambda i: (i, 0, 0)),
        scratch_shapes=[pltpu.VMEM((F, H + 2, Wp, P), jnp.float32)],
        compiler_params=pltpu.CompilerParams(
            dimension_semantics=("parallel",),
            vmem_limit_bytes=vmem_limit),
    )(x, p["w1"].astype(bf16), p["s1"].reshape(1, P), p["b1"].reshape(1, P),
      p["w2"].reshape(9 * P, P).astype(bf16),
      p["s2"].reshape(1, P), p["b2"].reshape(1, P))


# ----------------------------------------------------------------------------
# Split path, kernel 2: conv2_t (3,1,1)+bn2_t -> conv3+bn3 + residual + relu
# ----------------------------------------------------------------------------
def _temporal_kernel(v_ref, id_ref, w2t_ref, s2t_ref, b2t_ref,
                     w3_ref, s3_ref, b3_ref, o_ref):
    T, HWc, P = v_ref.shape
    Cout = w3_ref.shape[1]
    bf16 = jnp.bfloat16
    rows = T * HWc

    y = _conv2t_temporal_taps(v_ref[...], w2t_ref)
    y = y * s2t_ref[...] + b2t_ref[...]

    y3 = jnp.dot(y.astype(bf16), w3_ref[...],
                 preferred_element_type=jnp.float32)
    y3 = y3 * s3_ref[...] + b3_ref[...] + id_ref[...].reshape(rows, Cout)
    o_ref[...] = jnp.maximum(y3, 0.0).astype(o_ref.dtype).reshape(T, HWc, Cout)


def temporal_conv3(v, ident, p, *, T, HWc, vmem_limit):
    NT, HW, P = v.shape
    Cout = p["w3"].shape[1]
    N = NT // T
    bf16 = jnp.bfloat16
    full = lambda n, c: (0, 0)
    return pl.pallas_call(
        _temporal_kernel,
        out_shape=jax.ShapeDtypeStruct((NT, HW, Cout), ident.dtype),
        grid=(N, HW // HWc),
        in_specs=[
            pl.BlockSpec((T, HWc, P), lambda n, c: (n, c, 0)),
            pl.BlockSpec((T, HWc, Cout), lambda n, c: (n, c, 0)),
            pl.BlockSpec((3 * P, P), full),
            pl.BlockSpec((1, P), full),
            pl.BlockSpec((1, P), full),
            pl.BlockSpec((P, Cout), full),
            pl.BlockSpec((1, Cout), full),
            pl.BlockSpec((1, Cout), full),
        ],
        out_specs=pl.BlockSpec((T, HWc, Cout), lambda n, c: (n, c, 0)),
        compiler_params=pltpu.CompilerParams(
            dimension_semantics=("parallel", "parallel"),
            vmem_limit_bytes=vmem_limit),
    )(v, ident, p["w2t"].reshape(3 * P, P).astype(bf16),
      p["s2t"].reshape(1, P), p["b2t_eff"].reshape(1, P),
      p["w3"].astype(bf16), p["s3"].reshape(1, Cout), p["b3"].reshape(1, Cout))


# ----------------------------------------------------------------------------
# Per-generation block sizing
# ----------------------------------------------------------------------------
def _fused_clip_bytes(T, H, W, Cin, P, Cout):
    HW = H * W
    Wp = _round_up(W + 2, 8)
    rows = T * HW
    b = 2 * rows * Cin * 4                        # x block (double-buffered)
    b += 2 * rows * Cout * 4                      # out block (double-buffered)
    b += T * (H + 2) * Wp * P * 4                 # halo scratch (f32)
    b += rows * (P * 4 + 9 * P * 2 + 4 * P * 2 + P * 4 + Cout * 4)  # temps
    b += 4 * (Cin * P + 12 * P * P + P * Cout) * 2                  # weights
    return b


def _pick_spatial_frames(NT, H, W, Cin, P, budget):
    HW = H * W
    Wp = _round_up(W + 2, 8)

    def est(F):
        rows = F * HW
        return (2 * rows * Cin * 4 + 2 * rows * P * 2
                + F * (H + 2) * Wp * P * 4
                + rows * (P * 4 + 9 * P * 2 + P * 4))

    min_steps = min(4, NT)            # keep both v7x TensorCores busy
    f = _largest_divisor(NT, lambda d: est(d) <= budget
                         and NT // d >= min_steps)
    if f is None:
        f = _largest_divisor(NT, lambda d: est(d) <= budget)
    return f or 1


def _pick_temporal_chunk(N, T, HW, P, Cout, budget):
    def est(c):
        rows = T * c
        return (2 * rows * P * 2 + 4 * rows * Cout * 4
                + rows * (6 * P * 2 + P * 4 + Cout * 4))

    def ok(c):
        return (c % 8 == 0 or c == HW) and est(c) <= budget

    min_steps = min(4, N * HW)
    c = _largest_divisor(HW, lambda d: ok(d) and N * (HW // d) >= min_steps)
    if c is None:
        c = _largest_divisor(HW, ok)
    return c or HW


# ----------------------------------------------------------------------------
# Bottleneck forward (glue in plain JAX, hot paths in Pallas)
# ----------------------------------------------------------------------------
def _bottleneck_impl(x_ncdhw, p, force_split):
    N, Cin, T, H, W = x_ncdhw.shape
    P = p["w1"].shape[1]
    Cout = p["w3"].shape[1]
    assert Cout == Cin        # downsample is None -> residual add needs this
    HW, NT = H * W, N * T

    limit = _vmem_limit_bytes()
    budget = int(limit * 0.85)

    # NCDHW -> channels-last (N*T, H*W, C) so channels sit on TPU lanes.
    # TODO(synk): accept NTHWC I/O to avoid the two full-tensor transposes.
    x_cl = jnp.transpose(x_ncdhw, (0, 2, 3, 4, 1)).reshape(NT, HW, Cin)

    if (not force_split) and _fused_clip_bytes(T, H, W, Cin, P, Cout) <= budget:
        out = bottleneck_fused(x_cl, p, N=N, T=T, H=H, W=W, vmem_limit=limit)
    else:
        F = _pick_spatial_frames(NT, H, W, Cin, P, budget)
        mid = spatial_conv(x_cl, p, H=H, W=W, F=F, vmem_limit=limit)
        HWc = _pick_temporal_chunk(N, T, HW, P, Cout, budget)
        out = temporal_conv3(mid, x_cl, p, T=T, HWc=HWc, vmem_limit=limit)

    out = out.reshape(N, T, H, W, Cout)
    return jnp.transpose(out, (0, 4, 1, 2, 3))          # back to NCDHW


_bottleneck_main = jax.jit(partial(_bottleneck_impl, force_split=False))
_bottleneck_split = jax.jit(partial(_bottleneck_impl, force_split=True))


def bottleneck_forward(xx, params, force_split=False):
    """Mirrors Bottleneck.forward: xx = (x, traj_src) -> (out, traj_src[1:])."""
    x, traj_src = xx
    fn = _bottleneck_split if force_split else _bottleneck_main
    out = fn(x, params)
    return out, traj_src[1:]


# ----------------------------------------------------------------------------
# Deterministic parameter construction (synthetic, no checkpoint)
# ----------------------------------------------------------------------------
def make_params(key, inplanes, planes, eps=1e-5):
    ks = jax.random.split(key, 10)

    def bn(k, c):
        k1, k2, k3, k4 = jax.random.split(k, 4)
        gamma = 1.0 + 0.1 * jax.random.normal(k1, (c,), jnp.float32)
        beta = 0.1 * jax.random.normal(k2, (c,), jnp.float32)
        mean = 0.1 * jax.random.normal(k3, (c,), jnp.float32)
        var = jax.random.uniform(k4, (c,), jnp.float32, 0.5, 1.5)
        scale = gamma / jnp.sqrt(var + eps)
        bias = beta - mean * scale
        return scale, bias

    expansion = 4
    w1 = 0.1 * jax.random.normal(ks[0], (inplanes, planes), jnp.float32)
    w2 = 0.1 * jax.random.normal(ks[1], (3, 3, planes, planes), jnp.float32)
    w2t = 0.1 * jax.random.normal(ks[2], (3, planes, planes), jnp.float32)
    b2t_conv = 0.1 * jax.random.normal(ks[3], (planes,), jnp.float32)
    w3 = 0.1 * jax.random.normal(ks[4], (planes, planes * expansion),
                                 jnp.float32)

    s1, b1 = bn(ks[5], planes)
    s2, b2 = bn(ks[6], planes)
    s2t, b2t_bn = bn(ks[7], planes)
    s3, b3 = bn(ks[8], planes * expansion)

    # fold the conv2_t bias through bn2_t:  (y + b_conv)*s + b_bn
    b2t_eff = b2t_bn + b2t_conv * s2t

    return dict(w1=w1, s1=s1, b1=b1,
                w2=w2, s2=s2, b2=b2,
                w2t=w2t, s2t=s2t, b2t_eff=b2t_eff,
                w3=w3, s3=s3, b3=b3)


# ----------------------------------------------------------------------------
# Pure-JAX reference (same bf16-matmul / f32-epilogue precision as the kernels)
# ----------------------------------------------------------------------------
def reference_forward(x_ncdhw, p):
    N, Cin, T, H, W = x_ncdhw.shape
    P = p["w1"].shape[1]
    f32, bf16 = jnp.float32, jnp.bfloat16
    x = jnp.transpose(x_ncdhw, (0, 2, 3, 4, 1))          # (N, T, H, W, Cin)

    # conv1 + bn1 + relu
    u = jnp.einsum("nthwc,cp->nthwp", x.astype(bf16), p["w1"].astype(bf16),
                   preferred_element_type=f32)
    u = jnp.maximum(u * p["s1"] + p["b1"], 0.0)

    # conv2 (1,3,3), padding 1, + bn2 + relu
    up = jnp.pad(u.astype(bf16), ((0, 0), (0, 0), (1, 1), (1, 1), (0, 0)))
    o = jnp.zeros((N, T, H, W, P), f32)
    for dy in range(3):
        for dx in range(3):
            o = o + jnp.einsum("nthwp,pq->nthwq",
                               up[:, :, dy:dy + H, dx:dx + W, :],
                               p["w2"][dy, dx].astype(bf16),
                               preferred_element_type=f32)
    o = jnp.maximum(o * p["s2"] + p["b2"], 0.0)

    # conv2_t (3,1,1), padding 1, + (folded bias) + bn2_t
    otp = jnp.pad(o.astype(bf16), ((0, 0), (1, 1), (0, 0), (0, 0), (0, 0)))
    y = jnp.zeros((N, T, H, W, P), f32)
    for j in range(3):
        y = y + jnp.einsum("nthwp,pq->nthwq", otp[:, j:j + T],
                           p["w2t"][j].astype(bf16),
                           preferred_element_type=f32)
    y = y * p["s2t"] + p["b2t_eff"]

    # conv3 + bn3 + residual + relu
    z = jnp.einsum("nthwp,pq->nthwq", y.astype(bf16), p["w3"].astype(bf16),
                   preferred_element_type=f32)
    z = jnp.maximum(z * p["s3"] + p["b3"] + x, 0.0)
    return jnp.transpose(z, (0, 4, 1, 2, 3))


# ----------------------------------------------------------------------------
if __name__ == "__main__":
    def _check(planes, N, T, H, W, also_split):
        inplanes = planes * 4    # residual needs inplanes == planes*expansion
        key = jax.random.PRNGKey(0)
        kx, kp = jax.random.split(key)
        x = jax.random.normal(kx, (N, inplanes, T, H, W), jnp.float32)
        params = make_params(kp, inplanes, planes)
        ref = reference_forward(x, params)

        out, _ = bottleneck_forward((x, ()), params)
        out = jax.block_until_ready(out)
        assert out.shape == (N, inplanes, T, H, W)
        assert jnp.allclose(out, ref, atol=3e-2, rtol=3e-2), (
            "fused mismatch", float(jnp.max(jnp.abs(out - ref))))

        if also_split:
            out_s, _ = bottleneck_forward((x, ()), params, force_split=True)
            out_s = jax.block_until_ready(out_s)
            assert jnp.allclose(out_s, ref, atol=3e-2, rtol=3e-2), (
                "split mismatch", float(jnp.max(jnp.abs(out_s - ref))))

    # planes=32: small-planes path (per-tap MXU matmuls); fused + split paths.
    _check(planes=32, N=2, T=4, H=8, W=8, also_split=True)
    # planes=128: lane-aligned path (single K=9P / K=3P stacked matmuls).
    _check(planes=128, N=2, T=4, H=8, W=8, also_split=False)

    print("KERNEL_OK")
</pallas_src>

<mosaic_0001>
module attributes {stable_mosaic.version = 11 : i64} {
  func.func @_bottleneck_fused_kernel(%arg0: i32, %arg1: memref<4x64x128xf32, #tpu.memory_space<vmem>>, %arg2: memref<128x32xbf16, #tpu.memory_space<vmem>>, %arg3: memref<1x32xf32, #tpu.memory_space<vmem>>, %arg4: memref<1x32xf32, #tpu.memory_space<vmem>>, %arg5: memref<288x32xbf16, #tpu.memory_space<vmem>>, %arg6: memref<1x32xf32, #tpu.memory_space<vmem>>, %arg7: memref<1x32xf32, #tpu.memory_space<vmem>>, %arg8: memref<96x32xbf16, #tpu.memory_space<vmem>>, %arg9: memref<1x32xf32, #tpu.memory_space<vmem>>, %arg10: memref<1x32xf32, #tpu.memory_space<vmem>>, %arg11: memref<32x128xbf16, #tpu.memory_space<vmem>>, %arg12: memref<1x128xf32, #tpu.memory_space<vmem>>, %arg13: memref<1x128xf32, #tpu.memory_space<vmem>>, %arg14: memref<4x64x128xf32, #tpu.memory_space<vmem>>, %arg15: memref<4x10x16x32xf32, #tpu.memory_space<vmem>>) attributes {dimension_semantics = [#tpu.dimension_semantics<parallel>], iteration_bounds = array<i64: 2>, scalar_prefetch = 0 : i64, scratch_operands = 1 : i64, tpu.core_type = #tpu.core_type<tc>, window_params = [{transform_indices = @transform_0, window_bounds = array<i64: 4, 64, 128>}, {pipeline_mode = #tpu.pipeline_mode<synchronous>, transform_indices = @transform_1, window_bounds = array<i64: 128, 32>}, {pipeline_mode = #tpu.pipeline_mode<synchronous>, transform_indices = @transform_2, window_bounds = array<i64: 1, 32>}, {pipeline_mode = #tpu.pipeline_mode<synchronous>, transform_indices = @transform_3, window_bounds = array<i64: 1, 32>}, {pipeline_mode = #tpu.pipeline_mode<synchronous>, transform_indices = @transform_4, window_bounds = array<i64: 288, 32>}, {pipeline_mode = #tpu.pipeline_mode<synchronous>, transform_indices = @transform_5, window_bounds = array<i64: 1, 32>}, {pipeline_mode = #tpu.pipeline_mode<synchronous>, transform_indices = @transform_6, window_bounds = array<i64: 1, 32>}, {pipeline_mode = #tpu.pipeline_mode<synchronous>, transform_indices = @transform_7, window_bounds = array<i64: 96, 32>}, {pipeline_mode = #tpu.pipeline_mode<synchronous>, transform_indices = @transform_8, window_bounds = array<i64: 1, 32>}, {pipeline_mode = #tpu.pipeline_mode<synchronous>, transform_indices = @transform_9, window_bounds = array<i64: 1, 32>}, {pipeline_mode = #tpu.pipeline_mode<synchronous>, transform_indices = @transform_10, window_bounds = array<i64: 32, 128>}, {pipeline_mode = #tpu.pipeline_mode<synchronous>, transform_indices = @transform_11, window_bounds = array<i64: 1, 128>}, {pipeline_mode = #tpu.pipeline_mode<synchronous>, transform_indices = @transform_12, window_bounds = array<i64: 1, 128>}, {transform_indices = @transform_13, window_bounds = array<i64: 4, 64, 128>}]} {
    %c0 = arith.constant 0 : index
    %c0_0 = arith.constant 0 : index
    %c0_1 = arith.constant 0 : index
    %0 = vector.load %arg1[%c0, %c0_0, %c0_1] : memref<4x64x128xf32, #tpu.memory_space<vmem>>, vector<4x64x128xf32>
    %1 = vector.shape_cast %0 : vector<4x64x128xf32> to vector<256x128xf32>
    %2 = arith.truncf %1 : vector<256x128xf32> to vector<256x128xbf16>
    %c0_2 = arith.constant 0 : index
    %c0_3 = arith.constant 0 : index
    %3 = vector.load %arg2[%c0_2, %c0_3] : memref<128x32xbf16, #tpu.memory_space<vmem>>, vector<128x32xbf16>
    %cst = arith.constant dense<0.000000e+00> : vector<256x32xf32>
    %4 = tpu.matmul %2, %3, %cst {dimension_numbers = #tpu.dot_dimension_numbers<[1], [0], [0], [1], [0, 0, 1, 1], [], []>} : vector<256x128xbf16>, vector<128x32xbf16>, vector<256x32xf32> -> vector<256x32xf32>
    %c0_4 = arith.constant 0 : index
    %c0_5 = arith.constant 0 : index
    %5 = vector.load %arg3[%c0_4, %c0_5] : memref<1x32xf32, #tpu.memory_space<vmem>>, vector<1x32xf32>
    %6 = vector.broadcast %5 : vector<1x32xf32> to vector<256x32xf32>
    %7 = arith.mulf %4, %6 : vector<256x32xf32>
    %c0_6 = arith.constant 0 : index
    %c0_7 = arith.constant 0 : index
    %8 = vector.load %arg4[%c0_6, %c0_7] : memref<1x32xf32, #tpu.memory_space<vmem>>, vector<1x32xf32>
    %9 = vector.broadcast %8 : vector<1x32xf32> to vector<256x32xf32>
    %10 = arith.addf %7, %9 : vector<256x32xf32>
    %cst_8 = arith.constant 0.000000e+00 : f32
    %11 = vector.broadcast %cst_8 : f32 to vector<256x32xf32>
    %12 = arith.maximumf %10, %11 : vector<256x32xf32>
    %cst_9 = arith.constant 0.000000e+00 : f32
    %13 = vector.broadcast %cst_9 : f32 to vector<4x1x16x32xf32>
    %c0_10 = arith.constant 0 : index
    %c0_11 = arith.constant 0 : index
    %c0_12 = arith.constant 0 : index
    %c0_13 = arith.constant 0 : index
    %14 = vector.load %arg15[%c0_10, %c0_11, %c0_12, %c0_13] : memref<4x10x16x32xf32, #tpu.memory_space<vmem>>, vector<4x1x16x32xf32>
    tpu.vector_store %arg15[%c0_10, %c0_11, %c0_12, %c0_13], %13 {strides = array<i32>} : memref<4x10x16x32xf32, #tpu.memory_space<vmem>>, vector<4x1x16x32xf32>,
    %c0_14 = arith.constant 0 : index
    %c9 = arith.constant 9 : index
    %c0_15 = arith.constant 0 : index
    %c0_16 = arith.constant 0 : index
    %15 = vector.load %arg15[%c0_14, %c9, %c0_15, %c0_16] : memref<4x10x16x32xf32, #tpu.memory_space<vmem>>, vector<4x1x16x32xf32>
    tpu.vector_store %arg15[%c0_14, %c9, %c0_15, %c0_16], %13 {strides = array<i32>} : memref<4x10x16x32xf32, #tpu.memory_space<vmem>>, vector<4x1x16x32xf32>,
    %cst_17 = arith.constant 0.000000e+00 : f32
    %16 = vector.broadcast %cst_17 : f32 to vector<4x10x1x32xf32>
    %c0_18 = arith.constant 0 : index
    %c0_19 = arith.constant 0 : index
    %c0_20 = arith.constant 0 : index
    %c0_21 = arith.constant 0 : index
    %17 = vector.load %arg15[%c0_18, %c0_19, %c0_20, %c0_21] : memref<4x10x16x32xf32, #tpu.memory_space<vmem>>, vector<4x10x1x32xf32>
    tpu.vector_store %arg15[%c0_18, %c0_19, %c0_20, %c0_21], %16 {strides = array<i32>} : memref<4x10x16x32xf32, #tpu.memory_space<vmem>>, vector<4x10x1x32xf32>,
    %c0_22 = arith.constant 0 : index
    %c0_23 = arith.constant 0 : index
    %c9_24 = arith.constant 9 : index
    %c0_25 = arith.constant 0 : index
    %18 = vector.load %arg15[%c0_22, %c0_23, %c9_24, %c0_25] : memref<4x10x16x32xf32, #tpu.memory_space<vmem>>, vector<4x10x1x32xf32>
    tpu.vector_store %arg15[%c0_22, %c0_23, %c9_24, %c0_25], %16 {strides = array<i32>} : memref<4x10x16x32xf32, #tpu.memory_space<vmem>>, vector<4x10x1x32xf32>,
    %19 = vector.shape_cast %12 : vector<256x32xf32> to vector<4x8x8x32xf32>
    %c0_26 = arith.constant 0 : index
    %c1 = arith.constant 1 : index
    %c1_27 = arith.constant 1 : index
    %c0_28 = arith.constant 0 : index
    %20 = vector.load %arg15[%c0_26, %c1, %c1_27, %c0_28] : memref<4x10x16x32xf32, #tpu.memory_space<vmem>>, vector<4x8x8x32xf32>
    tpu.vector_store %arg15[%c0_26, %c1, %c1_27, %c0_28], %19 {strides = array<i32>} : memref<4x10x16x32xf32, #tpu.memory_space<vmem>>, vector<4x8x8x32xf32>,
    %c0_29 = arith.constant 0 : index
    %c0_30 = arith.constant 0 : index
    %c0_31 = arith.constant 0 : index
    %c0_32 = arith.constant 0 : index
    %21 = vector.load %arg15[%c0_29, %c0_30, %c0_31, %c0_32] : memref<4x10x16x32xf32, #tpu.memory_space<vmem>>, vector<4x8x8x32xf32>
    %22 = vector.shape_cast %21 : vector<4x8x8x32xf32> to vector<256x32xf32>
    %23 = arith.truncf %22 : vector<256x32xf32> to vector<256x32xbf16>
    %c0_33 = arith.constant 0 : index
    %c0_34 = arith.constant 0 : index
    %c1_35 = arith.constant 1 : index
    %c0_36 = arith.constant 0 : index
    %24 = vector.load %arg15[%c0_33, %c0_34, %c1_35, %c0_36] : memref<4x10x16x32xf32, #tpu.memory_space<vmem>>, vector<4x8x8x32xf32>
    %25 = vector.shape_cast %24 : vector<4x8x8x32xf32> to vector<256x32xf32>
    %26 = arith.truncf %25 : vector<256x32xf32> to vector<256x32xbf16>
    %c0_37 = arith.constant 0 : index
    %c0_38 = arith.constant 0 : index
    %c2 = arith.constant 2 : index
    %c0_39 = arith.constant 0 : index
    %27 = vector.load %arg15[%c0_37, %c0_38, %c2, %c0_39] : memref<4x10x16x32xf32, #tpu.memory_space<vmem>>, vector<4x8x8x32xf32>
    %28 = vector.shape_cast %27 : vector<4x8x8x32xf32> to vector<256x32xf32>
    %29 = arith.truncf %28 : vector<256x32xf32> to vector<256x32xbf16>
    %c0_40 = arith.constant 0 : index
    %c1_41 = arith.constant 1 : index
    %c0_42 = arith.constant 0 : index
    %c0_43 = arith.constant 0 : index
    %30 = vector.load %arg15[%c0_40, %c1_41, %c0_42, %c0_43] : memref<4x10x16x32xf32, #tpu.memory_space<vmem>>, vector<4x8x8x32xf32>
    %31 = vector.shape_cast %30 : vector<4x8x8x32xf32> to vector<256x32xf32>
    %32 = arith.truncf %31 : vector<256x32xf32> to vector<256x32xbf16>
    %c0_44 = arith.constant 0 : index
    %c1_45 = arith.constant 1 : index
    %c1_46 = arith.constant 1 : index
    %c0_47 = arith.constant 0 : index
    %33 = vector.load %arg15[%c0_44, %c1_45, %c1_46, %c0_47] : memref<4x10x16x32xf32, #tpu.memory_space<vmem>>, vector<4x8x8x32xf32>
    %34 = vector.shape_cast %33 : vector<4x8x8x32xf32> to vector<256x32xf32>
    %35 = arith.truncf %34 : vector<256x32xf32> to vector<256x32xbf16>
    %c0_48 = arith.constant 0 : index
    %c1_49 = arith.constant 1 : index
    %c2_50 = arith.constant 2 : index
    %c0_51 = arith.constant 0 : index
    %36 = vector.load %arg15[%c0_48, %c1_49, %c2_50, %c0_51] : memref<4x10x16x32xf32, #tpu.memory_space<vmem>>, vector<4x8x8x32xf32>
    %37 = vector.shape_cast %36 : vector<4x8x8x32xf32> to vector<256x32xf32>
    %38 = arith.truncf %37 : vector<256x32xf32> to vector<256x32xbf16>
    %c0_52 = arith.constant 0 : index
    %c2_53 = arith.constant 2 : index
    %c0_54 = arith.constant 0 : index
    %c0_55 = arith.constant 0 : index
    %39 = vector.load %arg15[%c0_52, %c2_53, %c0_54, %c0_55] : memref<4x10x16x32xf32, #tpu.memory_space<vmem>>, vector<4x8x8x32xf32>
    %40 = vector.shape_cast %39 : vector<4x8x8x32xf32> to vector<256x32xf32>
    %41 = arith.truncf %40 : vector<256x32xf32> to vector<256x32xbf16>
    %c0_56 = arith.constant 0 : index
    %c2_57 = arith.constant 2 : index
    %c1_58 = arith.constant 1 : index
    %c0_59 = arith.constant 0 : index
    %42 = vector.load %arg15[%c0_56, %c2_57, %c1_58, %c0_59] : memref<4x10x16x32xf32, #tpu.memory_space<vmem>>, vector<4x8x8x32xf32>
    %43 = vector.shape_cast %42 : vector<4x8x8x32xf32> to vector<256x32xf32>
    %44 = arith.truncf %43 : vector<256x32xf32> to vector<256x32xbf16>
    %c0_60 = arith.constant 0 : index
    %c2_61 = arith.constant 2 : index
    %c2_62 = arith.constant 2 : index
    %c0_63 = arith.constant 0 : index
    %45 = vector.load %arg15[%c0_60, %c2_61, %c2_62, %c0_63] : memref<4x10x16x32xf32, #tpu.memory_space<vmem>>, vector<4x8x8x32xf32>
    %46 = vector.shape_cast %45 : vector<4x8x8x32xf32> to vector<256x32xf32>
    %47 = arith.truncf %46 : vector<256x32xf32> to vector<256x32xbf16>
    %c0_64 = arith.constant 0 : index
    %c0_65 = arith.constant 0 : index
    %48 = vector.load %arg5[%c0_64, %c0_65] : memref<288x32xbf16, #tpu.memory_space<vmem>>, vector<288x32xbf16>
    %49 = vector.extract_strided_slice %48 {offsets = [0, 0], sizes = [32, 32], strides = [1, 1]} : vector<288x32xbf16> to vector<32x32xbf16>
    %cst_66 = arith.constant dense<0.000000e+00> : vector<256x32xf32>
    %50 = tpu.matmul %23, %49, %cst_66 {dimension_numbers = #tpu.dot_dimension_numbers<[1], [0], [0], [1], [0, 0, 1, 1], [], []>} : vector<256x32xbf16>, vector<32x32xbf16>, vector<256x32xf32> -> vector<256x32xf32>
    %51 = vector.extract_strided_slice %48 {offsets = [32, 0], sizes = [32, 32], strides = [1, 1]} : vector<288x32xbf16> to vector<32x32xbf16>
    %cst_67 = arith.constant dense<0.000000e+00> : vector<256x32xf32>
    %52 = tpu.matmul %26, %51, %cst_67 {dimension_numbers = #tpu.dot_dimension_numbers<[1], [0], [0], [1], [0, 0, 1, 1], [], []>} : vector<256x32xbf16>, vector<32x32xbf16>, vector<256x32xf32> -> vector<256x32xf32>
    %53 = arith.addf %50, %52 : vector<256x32xf32>
    %54 = vector.extract_strided_slice %48 {offsets = [64, 0], sizes = [32, 32], strides = [1, 1]} : vector<288x32xbf16> to vector<32x32xbf16>
    %cst_68 = arith.constant dense<0.000000e+00> : vector<256x32xf32>
    %55 = tpu.matmul %29, %54, %cst_68 {dimension_numbers = #tpu.dot_dimension_numbers<[1], [0], [0], [1], [0, 0, 1, 1], [], []>} : vector<256x32xbf16>, vector<32x32xbf16>, vector<256x32xf32> -> vector<256x32xf32>
    %56 = arith.addf %53, %55 : vector<256x32xf32>
    %57 = vector.extract_strided_slice %48 {offsets = [96, 0], sizes = [32, 32], strides = [1, 1]} : vector<288x32xbf16> to vector<32x32xbf16>
    %cst_69 = arith.constant dense<0.000000e+00> : vector<256x32xf32>
    %58 = tpu.matmul %32, %57, %cst_69 {dimension_numbers = #tpu.dot_dimension_numbers<[1], [0], [0], [1], [0, 0, 1, 1], [], []>} : vector<256x32xbf16>, vector<32x32xbf16>, vector<256x32xf32> -> vector<256x32xf32>
    %59 = arith.addf %56, %58 : vector<256x32xf32>
    %60 = vector.extract_strided_slice %48 {offsets = [128, 0], sizes = [32, 32], strides = [1, 1]} : vector<288x32xbf16> to vector<32x32xbf16>
    %cst_70 = arith.constant dense<0.000000e+00> : vector<256x32xf32>
    %61 = tpu.matmul %35, %60, %cst_70 {dimension_numbers = #tpu.dot_dimension_numbers<[1], [0], [0], [1], [0, 0, 1, 1], [], []>} : vector<256x32xbf16>, vector<32x32xbf16>, vector<256x32xf32> -> vector<256x32xf32>
    %62 = arith.addf %59, %61 : vector<256x32xf32>
    %63 = vector.extract_strided_slice %48 {offsets = [160, 0], sizes = [32, 32], strides = [1, 1]} : vector<288x32xbf16> to vector<32x32xbf16>
    %cst_71 = arith.constant dense<0.000000e+00> : vector<256x32xf32>
    %64 = tpu.matmul %38, %63, %cst_71 {dimension_numbers = #tpu.dot_dimension_numbers<[1], [0], [0], [1], [0, 0, 1, 1], [], []>} : vector<256x32xbf16>, vector<32x32xbf16>, vector<256x32xf32> -> vector<256x32xf32>
    %65 = arith.addf %62, %64 : vector<256x32xf32>
    %66 = vector.extract_strided_slice %48 {offsets = [192, 0], sizes = [32, 32], strides = [1, 1]} : vector<288x32xbf16> to vector<32x32xbf16>
    %cst_72 = arith.constant dense<0.000000e+00> : vector<256x32xf32>
    %67 = tpu.matmul %41, %66, %cst_72 {dimension_numbers = #tpu.dot_dimension_numbers<[1], [0], [0], [1], [0, 0, 1, 1], [], []>} : vector<256x32xbf16>, vector<32x32xbf16>, vector<256x32xf32> -> vector<256x32xf32>
    %68 = arith.addf %65, %67 : vector<256x32xf32>
    %69 = vector.extract_strided_slice %48 {offsets = [224, 0], sizes = [32, 32], strides = [1, 1]} : vector<288x32xbf16> to vector<32x32xbf16>
    %cst_73 = arith.constant dense<0.000000e+00> : vector<256x32xf32>
    %70 = tpu.matmul %44, %69, %cst_73 {dimension_numbers = #tpu.dot_dimension_numbers<[1], [0], [0], [1], [0, 0, 1, 1], [], []>} : vector<256x32xbf16>, vector<32x32xbf16>, vector<256x32xf32> -> vector<256x32xf32>
    %71 = arith.addf %68, %70 : vector<256x32xf32>
    %72 = vector.extract_strided_slice %48 {offsets = [256, 0], sizes = [32, 32], strides = [1, 1]} : vector<288x32xbf16> to vector<32x32xbf16>
    %cst_74 = arith.constant dense<0.000000e+00> : vector<256x32xf32>
    %73 = tpu.matmul %47, %72, %cst_74 {dimension_numbers = #tpu.dot_dimension_numbers<[1], [0], [0], [1], [0, 0, 1, 1], [], []>} : vector<256x32xbf16>, vector<32x32xbf16>, vector<256x32xf32> -> vector<256x32xf32>
    %74 = arith.addf %71, %73 : vector<256x32xf32>
    %c0_75 = arith.constant 0 : index
    %c0_76 = arith.constant 0 : index
    %75 = vector.load %arg6[%c0_75, %c0_76] : memref<1x32xf32, #tpu.memory_space<vmem>>, vector<1x32xf32>
    %76 = vector.broadcast %75 : vector<1x32xf32> to vector<256x32xf32>
    %77 = arith.mulf %74, %76 : vector<256x32xf32>
    %c0_77 = arith.constant 0 : index
    %c0_78 = arith.constant 0 : index
    %78 = vector.load %arg7[%c0_77, %c0_78] : memref<1x32xf32, #tpu.memory_space<vmem>>, vector<1x32xf32>
    %79 = vector.broadcast %78 : vector<1x32xf32> to vector<256x32xf32>
    %80 = arith.addf %77, %79 : vector<256x32xf32>
    %cst_79 = arith.constant 0.000000e+00 : f32
    %81 = vector.broadcast %cst_79 : f32 to vector<256x32xf32>
    %82 = arith.maximumf %80, %81 : vector<256x32xf32>
    %83 = arith.truncf %82 : vector<256x32xf32> to vector<256x32xbf16>
    %84 = vector.shape_cast %83 : vector<256x32xbf16> to vector<4x64x32xbf16>
    %cst_80 = arith.constant 0.000000e+00 : bf16
    %85 = vector.broadcast %cst_80 : bf16 to vector<1x64x32xbf16>
    %86 = vector.extract_strided_slice %84 {offsets = [0, 0, 0], sizes = [3, 64, 32], strides = [1, 1, 1]} : vector<4x64x32xbf16> to vector<3x64x32xbf16>
    %87 = tpu.concatenate %85, %86 in 0 : vector<1x64x32xbf16>, vector<3x64x32xbf16> -> vector<4x64x32xbf16>
    %88 = vector.extract_strided_slice %84 {offsets = [1, 0, 0], sizes = [3, 64, 32], strides = [1, 1, 1]} : vector<4x64x32xbf16> to vector<3x64x32xbf16>
    %89 = tpu.concatenate %88, %85 in 0 : vector<3x64x32xbf16>, vector<1x64x32xbf16> -> vector<4x64x32xbf16>
    %c0_81 = arith.constant 0 : index
    %c0_82 = arith.constant 0 : index
    %90 = vector.load %arg8[%c0_81, %c0_82] : memref<96x32xbf16, #tpu.memory_space<vmem>>, vector<96x32xbf16>
    %91 = vector.shape_cast %87 : vector<4x64x32xbf16> to vector<256x32xbf16>
    %92 = vector.extract_strided_slice %90 {offsets = [0, 0], sizes = [32, 32], strides = [1, 1]} : vector<96x32xbf16> to vector<32x32xbf16>
    %cst_83 = arith.constant dense<0.000000e+00> : vector<256x32xf32>
    %93 = tpu.matmul %91, %92, %cst_83 {dimension_numbers = #tpu.dot_dimension_numbers<[1], [0], [0], [1], [0, 0, 1, 1], [], []>} : vector<256x32xbf16>, vector<32x32xbf16>, vector<256x32xf32> -> vector<256x32xf32>
    %94 = vector.shape_cast %84 : vector<4x64x32xbf16> to vector<256x32xbf16>
    %95 = vector.extract_strided_slice %90 {offsets = [32, 0], sizes = [32, 32], strides = [1, 1]} : vector<96x32xbf16> to vector<32x32xbf16>
    %cst_84 = arith.constant dense<0.000000e+00> : vector<256x32xf32>
    %96 = tpu.matmul %94, %95, %cst_84 {dimension_numbers = #tpu.dot_dimension_numbers<[1], [0], [0], [1], [0, 0, 1, 1], [], []>} : vector<256x32xbf16>, vector<32x32xbf16>, vector<256x32xf32> -> vector<256x32xf32>
    %97 = arith.addf %93, %96 : vector<256x32xf32>
    %98 = vector.shape_cast %89 : vector<4x64x32xbf16> to vector<256x32xbf16>
    %99 = vector.extract_strided_slice %90 {offsets = [64, 0], sizes = [32, 32], strides = [1, 1]} : vector<96x32xbf16> to vector<32x32xbf16>
    %cst_85 = arith.constant dense<0.000000e+00> : vector<256x32xf32>
    %100 = tpu.matmul %98, %99, %cst_85 {dimension_numbers = #tpu.dot_dimension_numbers<[1], [0], [0], [1], [0, 0, 1, 1], [], []>} : vector<256x32xbf16>, vector<32x32xbf16>, vector<256x32xf32> -> vector<256x32xf32>
    %101 = arith.addf %97, %100 : vector<256x32xf32>
    %c0_86 = arith.constant 0 : index
    %c0_87 = arith.constant 0 : index
    %102 = vector.load %arg9[%c0_86, %c0_87] : memref<1x32xf32, #tpu.memory_space<vmem>>, vector<1x32xf32>
    %103 = vector.broadcast %102 : vector<1x32xf32> to vector<256x32xf32>
    %104 = arith.mulf %101, %103 : vector<256x32xf32>
    %c0_88 = arith.constant 0 : index
    %c0_89 = arith.constant 0 : index
    %105 = vector.load %arg10[%c0_88, %c0_89] : memref<1x32xf32, #tpu.memory_space<vmem>>, vector<1x32xf32>
    %106 = vector.broadcast %105 : vector<1x32xf32> to vector<256x32xf32>
    %107 = arith.addf %104, %106 : vector<256x32xf32>
    %108 = arith.truncf %107 : vector<256x32xf32> to vector<256x32xbf16>
    %c0_90 = arith.constant 0 : index
    %c0_91 = arith.constant 0 : index
    %109 = vector.load %arg11[%c0_90, %c0_91] : memref<32x128xbf16, #tpu.memory_space<vmem>>, vector<32x128xbf16>
    %cst_92 = arith.constant dense<0.000000e+00> : vector<256x128xf32>
    %110 = tpu.matmul %108, %109, %cst_92 {dimension_numbers = #tpu.dot_dimension_numbers<[1], [0], [0], [1], [0, 0, 1, 1], [], []>} : vector<256x32xbf16>, vector<32x128xbf16>, vector<256x128xf32> -> vector<256x128xf32>
    %c0_93 = arith.constant 0 : index
    %c0_94 = arith.constant 0 : index
    %111 = vector.load %arg12[%c0_93, %c0_94] : memref<1x128xf32, #tpu.memory_space<vmem>>, vector<1x128xf32>
    %112 = vector.broadcast %111 : vector<1x128xf32> to vector<256x128xf32>
    %113 = arith.mulf %110, %112 : vector<256x128xf32>
    %c0_95 = arith.constant 0 : index
    %c0_96 = arith.constant 0 : index
    %114 = vector.load %arg13[%c0_95, %c0_96] : memref<1x128xf32, #tpu.memory_space<vmem>>, vector<1x128xf32>
    %115 = vector.broadcast %114 : vector<1x128xf32> to vector<256x128xf32>
    %116 = arith.addf %113, %115 : vector<256x128xf32>
    %117 = vector.shape_cast %0 : vector<4x64x128xf32> to vector<256x128xf32>
    %118 = arith.addf %116, %117 : vector<256x128xf32>
    %cst_97 = arith.constant 0.000000e+00 : f32
    %119 = vector.broadcast %cst_97 : f32 to vector<256x128xf32>
    %120 = arith.maximumf %118, %119 : vector<256x128xf32>
    %121 = vector.shape_cast %120 : vector<256x128xf32> to vector<4x64x128xf32>
    %c0_98 = arith.constant 0 : index
    %c0_99 = arith.constant 0 : index
    %c0_100 = arith.constant 0 : index
    %122 = vector.load %arg14[%c0_98, %c0_99, %c0_100] : memref<4x64x128xf32, #tpu.memory_space<vmem>>, vector<4x64x128xf32>
    tpu.vector_store %arg14[%c0_98, %c0_99, %c0_100], %121 {strides = array<i32>} : memref<4x64x128xf32, #tpu.memory_space<vmem>>, vector<4x64x128xf32>,
    return
  }
  func.func @transform_0(%arg0: i32) -> (i32, i32, i32) {
    %c0_i32 = arith.constant 0 : i32
    %c0_i32_0 = arith.constant 0 : i32
    %c0_i32_1 = arith.constant 0 : i32
    return %arg0, %c0_i32, %c0_i32_0 : i32, i32, i32
  }
  func.func @transform_1(%arg0: i32) -> (i32, i32) {
    %c0_i32 = arith.constant 0 : i32
    %c0_i32_0 = arith.constant 0 : i32
    %c0_i32_1 = arith.constant 0 : i32
    return %c0_i32, %c0_i32_0 : i32, i32
  }
  func.func @transform_2(%arg0: i32) -> (i32, i32) {
    %c0_i32 = arith.constant 0 : i32
    %c0_i32_0 = arith.constant 0 : i32
    %c0_i32_1 = arith.constant 0 : i32
    return %c0_i32, %c0_i32_0 : i32, i32
  }
  func.func @transform_3(%arg0: i32) -> (i32, i32) {
    %c0_i32 = arith.constant 0 : i32
    %c0_i32_0 = arith.constant 0 : i32
    %c0_i32_1 = arith.constant 0 : i32
    return %c0_i32, %c0_i32_0 : i32, i32
  }
  func.func @transform_4(%arg0: i32) -> (i32, i32) {
    %c0_i32 = arith.constant 0 : i32
    %c0_i32_0 = arith.constant 0 : i32
    %c0_i32_1 = arith.constant 0 : i32
    return %c0_i32, %c0_i32_0 : i32, i32
  }
  func.func @transform_5(%arg0: i32) -> (i32, i32) {
    %c0_i32 = arith.constant 0 : i32
    %c0_i32_0 = arith.constant 0 : i32
    %c0_i32_1 = arith.constant 0 : i32
    return %c0_i32, %c0_i32_0 : i32, i32
  }
  func.func @transform_6(%arg0: i32) -> (i32, i32) {
    %c0_i32 = arith.constant 0 : i32
    %c0_i32_0 = arith.constant 0 : i32
    %c0_i32_1 = arith.constant 0 : i32
    return %c0_i32, %c0_i32_0 : i32, i32
  }
  func.func @transform_7(%arg0: i32) -> (i32, i32) {
    %c0_i32 = arith.constant 0 : i32
    %c0_i32_0 = arith.constant 0 : i32
    %c0_i32_1 = arith.constant 0 : i32
    return %c0_i32, %c0_i32_0 : i32, i32
  }
  func.func @transform_8(%arg0: i32) -> (i32, i32) {
    %c0_i32 = arith.constant 0 : i32
    %c0_i32_0 = arith.constant 0 : i32
    %c0_i32_1 = arith.constant 0 : i32
    return %c0_i32, %c0_i32_0 : i32, i32
  }
  func.func @transform_9(%arg0: i32) -> (i32, i32) {
    %c0_i32 = arith.constant 0 : i32
    %c0_i32_0 = arith.constant 0 : i32
    %c0_i32_1 = arith.constant 0 : i32
    return %c0_i32, %c0_i32_0 : i32, i32
  }
  func.func @transform_10(%arg0: i32) -> (i32, i32) {
    %c0_i32 = arith.constant 0 : i32
    %c0_i32_0 = arith.constant 0 : i32
    %c0_i32_1 = arith.constant 0 : i32
    return %c0_i32, %c0_i32_0 : i32, i32
  }
  func.func @transform_11(%arg0: i32) -> (i32, i32) {
    %c0_i32 = arith.constant 0 : i32
    %c0_i32_0 = arith.constant 0 : i32
    %c0_i32_1 = arith.constant 0 : i32
    return %c0_i32, %c0_i32_0 : i32, i32
  }
  func.func @transform_12(%arg0: i32) -> (i32, i32) {
    %c0_i32 = arith.constant 0 : i32
    %c0_i32_0 = arith.constant 0 : i32
    %c0_i32_1 = arith.constant 0 : i32
    return %c0_i32, %c0_i32_0 : i32, i32
  }
  func.func @transform_13(%arg0: i32) -> (i32, i32, i32) {
    %c0_i32 = arith.constant 0 : i32
    %c0_i32_0 = arith.constant 0 : i32
    %c0_i32_1 = arith.constant 0 : i32
    return %arg0, %c0_i32, %c0_i32_0 : i32, i32, i32
  }
}

</mosaic_0001>

<bundles_post_ra>
// kernel: _bottleneck_impl.1
= control target key start
LH: loop header
LB: loop body
LE: loop exit
PB: predicated region body
PF: predicated region fallthrough
CT: control target
= control target key end

     0   :  { %s6963_s0 = inlined_call_operand.hbm [shape: f32[8,64,128], index: 0, kind: input, shape index: {}]   ;;  %s6964_s1 = inlined_call_operand.vmem [shape: bf16[128,32], index: 1, kind: input, shape index: {}]   ;;  %s6965_s2 = inlined_call_operand.vmem [shape: f32[1,32], index: 2, kind: input, shape index: {}]   ;;  %s6966_s3 = inlined_call_operand.vmem [shape: f32[1,32], index: 3, kind: input, shape index: {}]   ;;  %s6967_s4 = inlined_call_operand.vmem [shape: bf16[288,32], index: 4, kind: input, shape index: {}]   ;;  %s6968_s5 = inlined_call_operand.vmem [shape: f32[1,32], index: 5, kind: input, shape index: {}]   ;;  %s6969_s6 = inlined_call_operand.vmem [shape: f32[1,32], index: 6, kind: input, shape index: {}]   ;;  %s6970_s7 = inlined_call_operand.vmem [shape: bf16[96,32], index: 7, kind: input, shape index: {}]   ;;  %s6971_s8 = inlined_call_operand.vmem [shape: f32[1,32], index: 8, kind: input, shape index: {}]   ;;  %s6972_s9 = inlined_call_operand.vmem [shape: f32[1,32], index: 9, kind: input, shape index: {}]   ;;  %s6973_s10 = inlined_call_operand.vmem [shape: bf16[32,128], index: 10, kind: input, shape index: {}]   ;;  %s6974_s11 = inlined_call_operand.vmem [shape: f32[1,128], index: 11, kind: input, shape index: {}]   ;;  %s6975_s12 = inlined_call_operand.vmem [shape: f32[1,128], index: 12, kind: input, shape index: {}]   ;;  %s6976_s13 = inlined_call_operand.hbm [shape: f32[8,64,128], index: 13, kind: output, shape index: {}]  }
   0x1   :  { %7046 = sst [smem:[#allocation79_spill]] %s6963_s0 }
   0x2   :  { %7047 = sst [smem:[#allocation80_spill]] %s6976_s13 }
   0x3   :  { %18 = vsyncpa [#allocation4], 0 }
   0x4   :  { %20 = vsyncpa [#allocation4 + $0x1], 0 }
   0x5   :  { %21 = vsyncpa [#allocation5], 0 }
   0x6   :  { %23 = vsyncpa [#allocation5 + $0x1], 0  ;;  %s4719_s25 = smov 0   ;;  %s4721_s26 = smov 0  }
   0x7   :  { %s4723_s27 = smov 0   ;;  %s4725_s28 = smov 0  }
   0x8 LB: > { %7048 = sst [smem:[#allocation9_spill]] %s4629_s25  ;;  %s4740_s29 = sadd.s32 4294967295, %s4641_s28   ;;  %s4641_s28 = sphi %s4725_s28, %s7305_s28   ;;  %s4637_s27 = sphi %s4723_s27, %s7307_s27   ;;  %s4633_s26 = sphi %s4721_s26, %s7309_s26   ;;  %s4629_s25 = sphi %s4719_s25, %s7308_s25  }
   0x9   : > { %7049 = sst [smem:[#allocation10_spill]] %s4637_s27  ;;  %s4055_s30 = sadd.s32 4294967294, %s4641_s28  }
   0xa   : > { %s4744_s14 = sadd.s32 1, %s4641_s28   ;;  %s36_s15 = sadd.s32 1, %s4637_s27 }
   0xb   : > { %7050 = sst [smem:[#allocation11_spill]] %s4744_s14  ;;  %s33_s16 = ssub.s32 %s4641_s28, %s4744_s14 }
   0xc   : > { %p43_p0 = scmp.ne.s32.totalorder %s4637_s27, %s4633_s26  ;;  %p34_p1 = scmp.eq.s32.totalorder %s33_s16, 0 }
   0xd   : > { %p44_p2 = scmp.eq.s32.totalorder %s4641_s28, 0  ;;  %p49_p3 = scmp.ne.s32.totalorder %s4633_s26, %s4629_s25 }
   0xe   : > { %p50_p4 = scmp.eq.s32.totalorder %s4740_s29, 0  ;;  %p325_p7 = scmp.eq.s32.totalorder %s4740_s29, 1 }
   0xf   : > { %s4756_s17 = scalar_select %p34_p1, %s4637_s27, %s36_s15  }
  0x10   : > { %p4758_p5 = por %p44_p2, %p43_p0  ;;  %p4762_p6 = por %p50_p4, %p49_p3 }
  0x11   : > { %7051 = sst [smem:[#allocation12_spill]] %s4756_s17  ;;  %p331_p8 = scmp.eq.s32.totalorder %s4055_s30, 1 }
  0x12   : > { %p4465_p10 = scmp.lt.s32.totalorder %s4641_s28, 2  ;;  %p4769_p11 = por %p325_p7, %p43_p0 }
  0x13   : > { %p4773_p12 = por %p331_p8, %p49_p3  ;;  %s387_s22 = sand.u32 1, %s4637_s27  }
  0x14   : > { %s7054_s20 = scalar_select %p4769_p11, 1, 0 }
  0x15   : > { %s7056_s21 = scalar_select %p4773_p12, 1, 0 }
  0x16   : > { %7055 = sst [smem:[#allocation13_spill]] %s7054_s20  ;;  %s4412_s23 = sshll.u32 %s4641_s28, 8 }
  0x17   : > { %7057 = sst [smem:[#allocation14_spill]] %s7056_s21  ;;  %s4058_s24 = sshll.u32 %s387_s22, 8 }
  0x18   : > { %s7058_s0 = sld [smem:[#allocation79_spill]]  ;;  %s391_s30 = scalar_lea.vmem [#allocation3], %s4058_s24 }
  0x19   : > { %s400_s25 = sshll.u32 %s391_s30, 4  ;;  %p4784_p13 = pnand %p4465_p10, %p4758_p5  ;;  %s401_s25 = int_to_ptr.vmem [resolvable:$true] %s400_s25 }
  0x1a   : > { %p4062_p0 = scmp.ge.s32.totalorder %s4641_s28, 1  ;;  %p408_p1 = scmp.lt.s32.totalorder %s4641_s28, 3 }
  0x1b   : > { %s388_s27 = scalar_lea.sflag [#allocation4], %s387_s22  ;;  %p4549_p3 = pneg %p4784_p13 }
  0x1e   : > { %s397_s17 = scalar_lea.hbm %s7058_s0, %s4412_s23  ;;  %s4552_s18 = scalar_lea.hbm %s7058_s0, 512 }
  0x1f   : > { %s398_s14 = sshll.u32 %s397_s17, 4  ;;  %s399_s14 = int_to_ptr.hbm [resolvable:$true] %s398_s14 }
  0x20   : > { %s4545_s21 = sshra.s32 %s399_s14, 4  ;;  %s4546_s21 = int_to_ptr.hbm [resolvable:$true] %s4545_s21 }
  0x21   : > { %s4547_s20 = scalar_lea.hbm %s4546_s21, 256  ;;  %p4553_p5 = scmp.lt.s32.totalorder %s4546_s21, %s7058_s0 }
  0x22   : > { %p4548_p2 = scmp.ne.s32.totalorder %s4546_s21, %s4547_s20  ;;  %p4554_p8 = scmp.lt.s32.totalorder %s4552_s18, %s4547_s20 }
  0x24   : > { %p4550_p4 = pnand %p4549_p3, %p4548_p2  ;;  %p4555_p10 = por %p4554_p8, %p4553_p5 }
  0x26   : > { %p4551_p7 = pneg %p4550_p4 }
  0x28   : > { %p4556_p9 = pnand %p4555_p10, %p4551_p7 }
  0x2a   : > { %4559 = shalt.err (!%p4556_p9)
}
  0x2b   : > { %s4643_s22 = smov 128   ;;  %s4644_s16 = smov 8  }
  0x2c   : > { %4460 = dma.hbm_to_vmem [thread:$0]  (!%p4784_p13), %s399_s14, 4096, %s401_s25, %s388_s27, %s4643_s22, %s4643_s22, %s4644_s16  }
  0x2d   : > { %p409_p2 = pnand %p4062_p0, %p408_p1 }
  0x2f   : > { %412 = sbr.rel (%p409_p2) target bundleno = 1541 (0x605), region = 72 }
  0x34   : > { %s4805_s30 = sand.u32 1, %s4633_s26  }
  0x35   : > { %s4063_s20 = sshll.u32 %s4805_s30, 8  ;;  %s415_s21 = scalar_lea.sflag [#allocation4], %s4805_s30 }
  0x36   : > { %s4811_s17 = scalar_lea.vmem [#allocation3], %s4063_s20 }
  0x37   : > { %4620 = dma.done.wait (%p4762_p6), %s415_s21, 4096  }
  0x38   : > { %4622 = vsyncadd (%p4762_p6), %s415_s21, 4294963200  ;;  %v4420_v0 = vld [vmem:[%s6964_s1 + $0x38] sm:$0xff]  ;;  %v4419_v1 = vld [vmem:[%s6964_s1 + $0x30] sm:$0xff]  ;;  %vm770_vm0 = vcmask 261120   ;;  %v4645_v29 = vmov 0.0   ;;  %vm788_vm1 = vcmask 253952  }
  0x39   : > { %577 = vmatpush.bf16.msra.mxu0 %v4420_v0  ;;  %v4418_v2 = vld [vmem:[%s6964_s1 + $0x28] sm:$0xff]  ;;  %v4417_v3 = vld [vmem:[%s6964_s1 + $0x20] sm:$0xff]  ;;  %v4416_v4 = vld [vmem:[%s6964_s1 + $0x18] sm:$0xff]  ;;  %771 = vst.msk [vmem:[#allocation2] sm:$0xff] %vm770_vm0, %v4645_v29  ;;  %s6770_s13 = scalar_lea.vmem [#allocation6], %s4063_s20  ;;  %s4448_s20 = sshll.u32 %s4740_s29, 8 }
  0x3a   : > { %v4415_v5 = vld [vmem:[%s6964_s1 + $0x10] sm:$0xff]  ;;  %v4414_v6 = vld [vmem:[%s6964_s1 + $0x8] sm:$0xff]  ;;  %v4413_v7 = vld [vmem:[%s6964_s1] sm:$0xff]  ;;  %772 = vst.msk [vmem:[#allocation2 + $0x8] sm:$0xff] %vm770_vm0, %v4645_v29  ;;  %s7300_s14 = sld [smem:[#allocation80_spill]]  ;;  %s3979_s19 = sshll.u32 %s6770_s13, 4  ;;  %s3980_s19 = int_to_ptr.vmem [resolvable:$true] %s3979_s19 }
  0x3b   : > { %v465_v8 = vld [vmem:[%s4811_s17] sm:$0xff]  ;;  %v466_v9 = vld [vmem:[%s4811_s17 + $0x8] sm:$0xff]  ;;  %v467_v11 = vld [vmem:[%s4811_s17 + $0x10] sm:$0xff]  ;;  %789 = vst.msk [vmem:[#allocation2] sm:$0x1] %vm788_vm1, %v4645_v29  ;;  %s3966_s29 = scalar_lea.sflag [#allocation5], %s4805_s30 }
  0x3c   : > { %v497_v10 = vpack.c.bf16 %v466_v9, %v465_v8  ;;  %v468_v12 = vld [vmem:[%s4811_s17 + $0x18] sm:$0xff]  ;;  %v469_v14 = vld [vmem:[%s4811_s17 + $0x20] sm:$0xff]  ;;  %v470_v15 = vld [vmem:[%s4811_s17 + $0x28] sm:$0xff]  ;;  %773 = vst.msk [vmem:[#allocation2 + $0xa0] sm:$0xff] %vm770_vm0, %v4645_v29 }
  0x3d   : > { %578 = vmatpush.bf16.msra.mxu0 %v4419_v1  ;;  %v498_v13 = vpack.c.bf16 %v468_v12, %v467_v11  ;;  %v499_v16 = vpack.c.bf16 %v470_v15, %v469_v14  ;;  %v471_v17 = vld [vmem:[%s4811_s17 + $0x30] sm:$0xff]  ;;  %v472_v18 = vld [vmem:[%s4811_s17 + $0x38] sm:$0xff]  ;;  %v473_v20 = vld [vmem:[%s4811_s17 + $0x40] sm:$0xff]  ;;  %774 = vst.msk [vmem:[#allocation2 + $0xa8] sm:$0xff] %vm770_vm0, %v4645_v29 }
  0x3e   : > { %v500_v19 = vpack.c.bf16 %v472_v18, %v471_v17  ;;  %v474_v21 = vld [vmem:[%s4811_s17 + $0x48] sm:$0xff]  ;;  %v475_v23 = vld [vmem:[%s4811_s17 + $0x50] sm:$0xff]  ;;  %v476_v24 = vld [vmem:[%s4811_s17 + $0x58] sm:$0xff]  ;;  %775 = vst.msk [vmem:[#allocation2 + $0x140] sm:$0xff] %vm770_vm0, %v4645_v29 }
  0x3f   : > { %v501_v22 = vpack.c.bf16 %v474_v21, %v473_v20  ;;  %v502_v25 = vpack.c.bf16 %v476_v24, %v475_v23  ;;  %v477_v26 = vld [vmem:[%s4811_s17 + $0x60] sm:$0xff]  ;;  %v478_v27 = vld [vmem:[%s4811_s17 + $0x68] sm:$0xff]  ;;  %v4424_v30 = vld [vmem:[%s6967_s4 + $0x18] sm:$0xff]  ;;  %776 = vst.msk [vmem:[#allocation2 + $0x148] sm:$0xff] %vm770_vm0, %v4645_v29 }
  0x40   : > { %v503_v28 = vpack.c.bf16 %v478_v27, %v477_v26  ;;  %1437 = vmatpush.bf16.msra.mxu1 %v4424_v30  ;;  %4449 = vmatpush.bf16.msra.mxu3 %v4424_v30  ;;  %v479_v31 = vld [vmem:[%s4811_s17 + $0x70] sm:$0xff]  ;;  %v480_v32 = vld [vmem:[%s4811_s17 + $0x78] sm:$0xff]  ;;  %777 = vst.msk [vmem:[#allocation2 + $0x1e0] sm:$0xff] %vm770_vm0, %v4645_v29  ;;  %v481_v35 = vld [vmem:[%s4811_s17 + $0x80] sm:$0xff]  ;;  %s3978_s23 = scalar_lea.hbm %s7300_s14, %s4448_s20  ;;  %s4595_s20 = scalar_lea.hbm %s7300_s14, 512 }
  0x41   : > { %579 = vmatpush.bf16.msra.mxu0 %v4418_v2  ;;  %v4423_v33 = vld [vmem:[%s6967_s4 + $0x10] sm:$0xff]  ;;  %778 = vst.msk [vmem:[#allocation2 + $0x1e8] sm:$0xff] %vm770_vm0, %v4645_v29  ;;  %v504_v34 = vpack.c.bf16 %v480_v32, %v479_v31  ;;  %v482_v36 = vld [vmem:[%s4811_s17 + $0x88] sm:$0xff]  ;;  %v4914_v37 = vld [vmem:[%s6965_s2] ss:$0 sm:$0xff]  ;;  %s3981_s24 = sshll.u32 %s3978_s23, 4  ;;  %s3982_s24 = int_to_ptr.hbm [resolvable:$true] %s3981_s24 }
  0x42   : > { %780 = vst.msk [vmem:[#allocation2 + $0x90] sm:$0xff] %vm770_vm0, %v4645_v29  ;;  %v4923_v38 = vld [vmem:[%s6966_s3] ss:$0 sm:$0xff]  ;;  %v505_v39 = vpack.c.bf16 %v482_v36, %v481_v35  ;;  %v950_v47 = vld [vmem:[#allocation2 + $0x1] sm:$0xff]  ;;  %v483_v48 = vld [vmem:[%s4811_s17 + $0x90] sm:$0xff]  ;;  %s4589_s15 = sshra.s32 %s3982_s24, 4  ;;  %s4590_s15 = int_to_ptr.hbm [resolvable:$true] %s4589_s15 }
  0x43   : > { %781 = vst.msk [vmem:[#allocation2 + $0x98] sm:$0xff] %vm770_vm0, %v4645_v29  ;;  %v484_v49 = vld [vmem:[%s4811_s17 + $0x98] sm:$0xff]  ;;  %v489_v24 = vld [vmem:[%s4811_s17 + $0xc0] sm:$0xff]  ;;  %s4591_s22 = scalar_lea.hbm %s4590_s15, 256  ;;  %p4596_p0 = scmp.lt.s32.totalorder %s4590_s15, %s7300_s14 }
  0x44   : > { %1438 = vmatpush.bf16.msra.mxu1 %v4423_v33  ;;  %4450 = vmatpush.bf16.msra.mxu3 %v4423_v33  ;;  %782 = vst.msk [vmem:[#allocation2 + $0x130] sm:$0xff] %vm770_vm0, %v4645_v29  ;;  %v506_v53 = vpack.c.bf16 %v484_v49, %v483_v48  ;;  %v488_v8 = vld [vmem:[%s4811_s17 + $0xb8] sm:$0xff]  ;;  %p4592_p6 = scmp.ne.s32.totalorder %s4590_s15, %s4591_s22  ;;  %p4597_p1 = scmp.lt.s32.totalorder %s4595_s20, %s4591_s22 }
  0x45   : > { %580 = vmatpush.bf16.msra.mxu0 %v4417_v3  ;;  %783 = vst.msk [vmem:[#allocation2 + $0x138] sm:$0xff] %vm770_vm0, %v4645_v29  ;;  %v485_v3 = vld [vmem:[%s4811_s17 + $0xa0] sm:$0xff] }
  0x46   : > { %784 = vst.msk [vmem:[#allocation2 + $0x1d0] sm:$0xff] %vm770_vm0, %v4645_v29  ;;  %p4593_p9 = pnand %p4592_p6, %p4769_p11  ;;  %p4598_p3 = por %p4597_p1, %p4596_p0 }
  0x47   : > { %785 = vst.msk [vmem:[#allocation2 + $0x1d8] sm:$0xff] %vm770_vm0, %v4645_v29 }
  0x48   : > { %786 = vst.msk [vmem:[#allocation2 + $0x270] sm:$0xff] %vm770_vm0, %v4645_v29  ;;  %p4594_p13 = pneg %p4593_p9 }
  0x49   : > { %581 = vmatpush.bf16.msra.mxu0 %v4416_v4  ;;  %787 = vst.msk [vmem:[#allocation2 + $0x278] sm:$0xff] %vm770_vm0, %v4645_v29  ;;  %v486_v4 = vld [vmem:[%s4811_s17 + $0xa8] sm:$0xff] }
  0x4a   : > { %790 = vst.msk [vmem:[#allocation2 + $0x10] sm:$0x1] %vm788_vm1, %v4645_v29  ;;  %p4599_p4 = pnand %p4598_p3, %p4594_p13 }
  0x4b   : > { %791 = vst.msk [vmem:[#allocation2 + $0x20] sm:$0x1] %vm788_vm1, %v4645_v29 }
  0x4c   : > { %792 = vst.msk [vmem:[#allocation2 + $0x30] sm:$0x1] %vm788_vm1, %v4645_v29 }
  0x4d   : > { %582 = vmatpush.bf16.msra.mxu0 %v4415_v5  ;;  %793 = vst.msk [vmem:[#allocation2 + $0x40] sm:$0x1] %vm788_vm1, %v4645_v29  ;;  %v507_v5 = vpack.c.bf16 %v486_v4, %v485_v3 }
  0x4e   : > { %794 = vst.msk [vmem:[#allocation2 + $0x50] sm:$0x1] %vm788_vm1, %v4645_v29 }
  0x4f   : > { %795 = vst.msk [vmem:[#allocation2 + $0x60] sm:$0x1] %vm788_vm1, %v4645_v29 }
  0x50   : > { %796 = vst.msk [vmem:[#allocation2 + $0x70] sm:$0x1] %vm788_vm1, %v4645_v29 }
  0x51   : > { %583 = vmatpush.bf16.msra.mxu0 %v4414_v6  ;;  %797 = vst.msk [vmem:[#allocation2 + $0x80] sm:$0x1] %vm788_vm1, %v4645_v29 }
  0x52   : > { %800 = vst.msk [vmem:[#allocation2 + $0xb0] sm:$0x1] %vm788_vm1, %v4645_v29 }
  0x53   : > { %801 = vst.msk [vmem:[#allocation2 + $0xc0] sm:$0x1] %vm788_vm1, %v4645_v29 }
  0x54   : > { %802 = vst.msk [vmem:[#allocation2 + $0xd0] sm:$0x1] %vm788_vm1, %v4645_v29 }
  0x55   : > { %584 = vmatpush.bf16.msra.mxu0 %v4413_v7  ;;  %803 = vst.msk [vmem:[#allocation2 + $0xe0] sm:$0x1] %vm788_vm1, %v4645_v29  ;;  %v487_v7 = vld [vmem:[%s4811_s17 + $0xb0] sm:$0xff] }
  0x56   : > { %804 = vst.msk [vmem:[#allocation2 + $0xf0] sm:$0x1] %vm788_vm1, %v4645_v29 }
  0x57   : > { %805 = vst.msk [vmem:[#allocation2 + $0x100] sm:$0x1] %vm788_vm1, %v4645_v29 }
  0x58   : > { %585 = vmatmul.bf16.vlgmr.msra.gmra.mxu0 %v497_v10  ;;  %806 = vst.msk [vmem:[#allocation2 + $0x110] sm:$0x1] %vm788_vm1, %v4645_v29  ;;  %v508_v10 = vpack.c.bf16 %v488_v8, %v487_v7 }
  0x59   : > { %807 = vst.msk [vmem:[#allocation2 + $0x120] sm:$0x1] %vm788_vm1, %v4645_v29 }
  0x5a   : > { %810 = vst.msk [vmem:[#allocation2 + $0x150] sm:$0x1] %vm788_vm1, %v4645_v29 }
  0x5b   : > { %811 = vst.msk [vmem:[#allocation2 + $0x160] sm:$0x1] %vm788_vm1, %v4645_v29 }
  0x5c   : > { %812 = vst.msk [vmem:[#allocation2 + $0x170] sm:$0x1] %vm788_vm1, %v4645_v29 }
  0x5d   : > { %813 = vst.msk [vmem:[#allocation2 + $0x180] sm:$0x1] %vm788_vm1, %v4645_v29 }
  0x5e   : > { %814 = vst.msk [vmem:[#allocation2 + $0x190] sm:$0x1] %vm788_vm1, %v4645_v29 }
  0x5f   : > { %815 = vst.msk [vmem:[#allocation2 + $0x1a0] sm:$0x1] %vm788_vm1, %v4645_v29 }
  0x60   : > { %816 = vst.msk [vmem:[#allocation2 + $0x1b0] sm:$0x1] %vm788_vm1, %v4645_v29 }
  0x61   : > { %817 = vst.msk [vmem:[#allocation2 + $0x1c0] sm:$0x1] %vm788_vm1, %v4645_v29 }
  0x62   : > { %820 = vst.msk [vmem:[#allocation2 + $0x1f0] sm:$0x1] %vm788_vm1, %v4645_v29 }
  0x63   : > { %821 = vst.msk [vmem:[#allocation2 + $0x200] sm:$0x1] %vm788_vm1, %v4645_v29 }
  0x64   : > { %822 = vst.msk [vmem:[#allocation2 + $0x210] sm:$0x1] %vm788_vm1, %v4645_v29 }
  0x65   : > { %823 = vst.msk [vmem:[#allocation2 + $0x220] sm:$0x1] %vm788_vm1, %v4645_v29 }
  0x66   : > { %824 = vst.msk [vmem:[#allocation2 + $0x230] sm:$0x1] %vm788_vm1, %v4645_v29 }
  0x67   : > { %825 = vst.msk [vmem:[#allocation2 + $0x240] sm:$0x1] %vm788_vm1, %v4645_v29 }
  0x68   : > { %590 = vmatmul.bf16.gmra.mxu0 %v498_v13  ;;  %826 = vst.msk [vmem:[#allocation2 + $0x250] sm:$0x1] %vm788_vm1, %v4645_v29 }
  0x69   : > { %827 = vst.msk [vmem:[#allocation2 + $0x260] sm:$0x1] %vm788_vm1, %v4645_v29 }
  0x6a   : > { %829 = vst.msk [vmem:[#allocation2 + $0x9] sm:$0x1] %vm788_vm1, %v4645_v29 }
  0x6b   : > { %830 = vst.msk [vmem:[#allocation2 + $0x19] sm:$0x1] %vm788_vm1, %v4645_v29 }
  0x6c   : > { %831 = vst.msk [vmem:[#allocation2 + $0x29] sm:$0x1] %vm788_vm1, %v4645_v29 }
  0x6d   : > { %832 = vst.msk [vmem:[#allocation2 + $0x39] sm:$0x1] %vm788_vm1, %v4645_v29 }
  0x6e   : > { %833 = vst.msk [vmem:[#allocation2 + $0x49] sm:$0x1] %vm788_vm1, %v4645_v29 }
  0x6f   : > { %834 = vst.msk [vmem:[#allocation2 + $0x59] sm:$0x1] %vm788_vm1, %v4645_v29 }
  0x70   : > { %835 = vst.msk [vmem:[#allocation2 + $0x69] sm:$0x1] %vm788_vm1, %v4645_v29 }
  0x71   : > { %836 = vst.msk [vmem:[#allocation2 + $0x79] sm:$0x1] %vm788_vm1, %v4645_v29 }
  0x72   : > { %837 = vst.msk [vmem:[#allocation2 + $0x89] sm:$0x1] %vm788_vm1, %v4645_v29 }
  0x73   : > { %840 = vst.msk [vmem:[#allocation2 + $0xb9] sm:$0x1] %vm788_vm1, %v4645_v29 }
  0x74   : > { %841 = vst.msk [vmem:[#allocation2 + $0xc9] sm:$0x1] %vm788_vm1, %v4645_v29 }
  0x75   : > { %842 = vst.msk [vmem:[#allocation2 + $0xd9] sm:$0x1] %vm788_vm1, %v4645_v29 }
  0x76   : > { %843 = vst.msk [vmem:[#allocation2 + $0xe9] sm:$0x1] %vm788_vm1, %v4645_v29 }
  0x77   : > { %844 = vst.msk [vmem:[#allocation2 + $0xf9] sm:$0x1] %vm788_vm1, %v4645_v29 }
  0x78   : > { %595 = vmatmul.bf16.gmra.mxu0 %v499_v16  ;;  %845 = vst.msk [vmem:[#allocation2 + $0x109] sm:$0x1] %vm788_vm1, %v4645_v29 }
  0x79   : > { %846 = vst.msk [vmem:[#allocation2 + $0x119] sm:$0x1] %vm788_vm1, %v4645_v29 }
  0x7a   : > { %847 = vst.msk [vmem:[#allocation2 + $0x129] sm:$0x1] %vm788_vm1, %v4645_v29 }
  0x7b   : > { %850 = vst.msk [vmem:[#allocation2 + $0x159] sm:$0x1] %vm788_vm1, %v4645_v29 }
  0x7c   : > { %851 = vst.msk [vmem:[#allocation2 + $0x169] sm:$0x1] %vm788_vm1, %v4645_v29 }
  0x7d   : > { %852 = vst.msk [vmem:[#allocation2 + $0x179] sm:$0x1] %vm788_vm1, %v4645_v29 }
  0x7e   : > { %853 = vst.msk [vmem:[#allocation2 + $0x189] sm:$0x1] %vm788_vm1, %v4645_v29 }
  0x7f   : > { %854 = vst.msk [vmem:[#allocation2 + $0x199] sm:$0x1] %vm788_vm1, %v4645_v29 }
  0x80   : > { %855 = vst.msk [vmem:[#allocation2 + $0x1a9] sm:$0x1] %vm788_vm1, %v4645_v29 }
  0x81   : > { %856 = vst.msk [vmem:[#allocation2 + $0x1b9] sm:$0x1] %vm788_vm1, %v4645_v29 }
  0x82   : > { %857 = vst.msk [vmem:[#allocation2 + $0x1c9] sm:$0x1] %vm788_vm1, %v4645_v29 }
  0x83   : > { %860 = vst.msk [vmem:[#allocation2 + $0x1f9] sm:$0x1] %vm788_vm1, %v4645_v29 }
  0x84   : > { %861 = vst.msk [vmem:[#allocation2 + $0x209] sm:$0x1] %vm788_vm1, %v4645_v29 }
  0x85   : > { %862 = vst.msk [vmem:[#allocation2 + $0x219] sm:$0x1] %vm788_vm1, %v4645_v29 }
  0x86   : > { %863 = vst.msk [vmem:[#allocation2 + $0x229] sm:$0x1] %vm788_vm1, %v4645_v29 }
  0x87   : > { %864 = vst.msk [vmem:[#allocation2 + $0x239] sm:$0x1] %vm788_vm1, %v4645_v29 }
  0x88   : > { %600 = vmatmul.bf16.gmra.mxu0 %v500_v19  ;;  %865 = vst.msk [vmem:[#allocation2 + $0x249] sm:$0x1] %vm788_vm1, %v4645_v29 }
  0x89   : > { %866 = vst.msk [vmem:[#allocation2 + $0x259] sm:$0x1] %vm788_vm1, %v4645_v29 }
  0x8a   : > { %867 = vst.msk [vmem:[#allocation2 + $0x269] sm:$0x1] %vm788_vm1, %v4645_v29 }
  0x8b   : > { %798 = vst.msk [vmem:[#allocation2 + $0x90] sm:$0x1] %vm788_vm1, %v4645_v29 }
  0x8c   : > { %799 = vst.msk [vmem:[#allocation2 + $0xa0] sm:$0x1] %vm788_vm1, %v4645_v29 }
  0x8d   : > { %808 = vst.msk [vmem:[#allocation2 + $0x130] sm:$0x1] %vm788_vm1, %v4645_v29 }
  0x8e   : > { %809 = vst.msk [vmem:[#allocation2 + $0x140] sm:$0x1] %vm788_vm1, %v4645_v29 }
  0x8f   : > { %818 = vst.msk [vmem:[#allocation2 + $0x1d0] sm:$0x1] %vm788_vm1, %v4645_v29 }
  0x90   : > { %819 = vst.msk [vmem:[#allocation2 + $0x1e0] sm:$0x1] %vm788_vm1, %v4645_v29 }
  0x91   : > { %828 = vst.msk [vmem:[#allocation2 + $0x270] sm:$0x1] %vm788_vm1, %v4645_v29 }
  0x92   : > { %838 = vst.msk [vmem:[#allocation2 + $0x99] sm:$0x1] %vm788_vm1, %v4645_v29 }
  0x93   : > { %839 = vst.msk [vmem:[#allocation2 + $0xa9] sm:$0x1] %vm788_vm1, %v4645_v29 }
  0x94   : > { %848 = vst.msk [vmem:[#allocation2 + $0x139] sm:$0x1] %vm788_vm1, %v4645_v29 }
  0x95   : > { %849 = vst.msk [vmem:[#allocation2 + $0x149] sm:$0x1] %vm788_vm1, %v4645_v29 }
  0x96   : > { %858 = vst.msk [vmem:[#allocation2 + $0x1d9] sm:$0x1] %vm788_vm1, %v4645_v29 }
  0x97   : > { %859 = vst.msk [vmem:[#allocation2 + $0x1e9] sm:$0x1] %vm788_vm1, %v4645_v29 }
  0x98   : > { %605 = vmatmul.bf16.gmra.mxu0 %v501_v22  ;;  %868 = vst.msk [vmem:[#allocation2 + $0x279] sm:$0x1] %vm788_vm1, %v4645_v29 }
  0xa8   : > { %610 = vmatmul.bf16.gmra.mxu0 %v502_v25  ;;  %v490_v25 = vld [vmem:[%s4811_s17 + $0xc8] sm:$0xff] }
  0xa9   : > { %v509_v31 = vpack.c.bf16 %v490_v25, %v489_v24 }
  0xb8   : > { %615 = vmatmul.bf16.gmra.mxu0 %v503_v28 }
  0xc8   : > { %620 = vmatmul.bf16.gmra.mxu0 %v504_v34 }
  0xd5   : > { %v586_v40 = vpop.f32.mrf.mxu0 }
  0xd6   : > { %v670_v41 = vmul.f32 %v4914_v37, %v586_v40 }
  0xd8   : > { %v706_v42 = vadd.f32 %v4923_v38, %v670_v41  ;;  %625 = vmatmul.bf16.gmra.mxu0 %v505_v39 }
  0xda   : > { %v738_v43 = vmax.f32 %v706_v42, 0.0 }
  0xdc   : > { %870 = vst.msk [vmem:[#allocation2 + $0x11] sm:$0xff] %vm770_vm0, %v738_v43 }
  0xdd   : > { %v588_v44 = vpop.f32.mrf.mxu0 }
  0xde   : > { %v671_v45 = vmul.f32 %v4914_v37, %v588_v44 }
  0xe0   : > { %v707_v46 = vadd.f32 %v4923_v38, %v671_v45 }
  0xe2   : > { %v739_v50 = vmax.f32 %v707_v46, 0.0 }
  0xe3   : > { %v4960_v51 = vld [vmem:[#allocation2 + $0x11] sm:$0xff] }
  0xe4   : > { %871 = vst.msk [vmem:[#allocation2 + $0x21] sm:$0xff] %vm770_vm0, %v739_v50  ;;  %v982_v52 = vpack.c.bf16 %v4960_v51, %v950_v47  ;;  %v5018_v62 = vld [vmem:[#allocation2 + $0x12] sm:$0xff] }
  0xe5   : > { %v591_v54 = vpop.f32.mrf.mxu0  ;;  %7060 = vst [vmem:[#allocation15_spill] sm:$0xff] %v5018_v62 }
  0xe6   : > { %v672_v55 = vmul.f32 %v4914_v37, %v591_v54  ;;  %4105 = vmatmul.msk.bf16.vlgmr.msra.gmra.mxu1 %vm770_vm0, %v982_v52  ;;  %v492_v54 = vld [vmem:[%s4811_s17 + $0xd8] sm:$0xff] }
  0xe8   : > { %v708_v56 = vadd.f32 %v4923_v38, %v672_v55  ;;  %630 = vmatmul.bf16.gmra.mxu0 %v506_v53  ;;  %v491_v53 = vld [vmem:[%s4811_s17 + $0xd0] sm:$0xff] }
  0xea   : > { %v740_v57 = vmax.f32 %v708_v56, 0.0  ;;  %v510_v56 = vpack.c.bf16 %v492_v54, %v491_v53 }
  0xeb   : > { %v5002_v59 = vld [vmem:[#allocation2 + $0x21] sm:$0xff] }
  0xec   : > { %872 = vst.msk [vmem:[#allocation2 + $0x31] sm:$0xff] %vm770_vm0, %v740_v57  ;;  %v5012_v61 = vld [vmem:[#allocation2 + $0x22] sm:$0xff] }
  0xed   : > { %v593_v58 = vpop.f32.mrf.mxu0 }
  0xee   : > { %v673_v11 = vmul.f32 %v4914_v37, %v593_v58 }
  0xf0   : > { %v709_v15 = vadd.f32 %v4923_v38, %v673_v11 }
  0xf2   : > { %v741_v21 = vmax.f32 %v709_v15, 0.0 }
  0xf3   : > { %v5028_v0 = vld [vmem:[#allocation2 + $0x31] sm:$0xff] }
  0xf4   : > { %v983_v2 = vpack.c.bf16 %v5028_v0, %v5002_v59  ;;  %873 = vst.msk [vmem:[#allocation2 + $0x41] sm:$0xff] %vm770_vm0, %v741_v21  ;;  %v5125_v39 = vld [vmem:[#allocation2 + $0x32] sm:$0xff] }
  0xf5   : > { %v596_v1 = vpop.f32.mrf.mxu0  ;;  %7061 = vst [vmem:[#allocation16_spill] sm:$0xff] %v5125_v39 }
  0xf6   : > { %4106 = vmatmul.msk.bf16.gmra.mxu1 %vm770_vm0, %v983_v2  ;;  %v674_v12 = vmul.f32 %v4914_v37, %v596_v1 }
  0xf8   : > { %635 = vmatmul.bf16.gmra.mxu0 %v507_v5  ;;  %v710_v17 = vadd.f32 %v4923_v38, %v674_v12 }
  0xfa   : > { %v742_v23 = vmax.f32 %v710_v17, 0.0 }
  0xfb   : > { %v5120_v34 = vld [vmem:[#allocation2 + $0x41] sm:$0xff] }
  0xfc   : > { %874 = vst.msk [vmem:[#allocation2 + $0x51] sm:$0xff] %vm770_vm0, %v742_v23  ;;  %v5129_v41 = vld [vmem:[#allocation2 + $0x42] sm:$0xff] }
  0xfd   : > { %v598_v6 = vpop.f32.mrf.mxu0 }
  0xfe   : > { %v675_v13 = vmul.f32 %v4914_v37, %v598_v6 }
 0x100   : > { %v711_v19 = vadd.f32 %v4923_v38, %v675_v13  ;;  %v493_v13 = vld [vmem:[%s4811_s17 + $0xe0] sm:$0xff] }
 0x102   : > { %v743_v26 = vmax.f32 %v711_v19, 0.0 }
 0x103   : > { %v5123_v35 = vld [vmem:[#allocation2 + $0x51] sm:$0xff] }
 0x104   : > { %875 = vst.msk [vmem:[#allocation2 + $0x61] sm:$0xff] %vm770_vm0, %v743_v26  ;;  %v984_v42 = vpack.c.bf16 %v5123_v35, %v5120_v34  ;;  %v5138_v46 = vld [vmem:[#allocation2 + $0x52] sm:$0xff] }
 0x105   : > { %v601_v9 = vpop.f32.mrf.mxu0  ;;  %7062 = vst [vmem:[#allocation17_spill] sm:$0xff] %v5138_v46 }
 0x106   : > { %v676_v14 = vmul.f32 %v4914_v37, %v601_v9  ;;  %4107 = vmatmul.msk.bf16.gmra.mxu1 %vm770_vm0, %v984_v42  ;;  %v4421_v42 = vld [vmem:[%s6967_s4] sm:$0xff] }
 0x108   : > { %640 = vmatmul.bf16.gmra.mxu0 %v508_v10  ;;  %v712_v20 = vadd.f32 %v4923_v38, %v676_v14  ;;  %v494_v14 = vld [vmem:[%s4811_s17 + $0xe8] sm:$0xff] }
 0x109   : > { %v511_v17 = vpack.c.bf16 %v494_v14, %v493_v13 }
 0x10a   : > { %v744_v27 = vmax.f32 %v712_v20, 0.0  ;;  %v958_v20 = vld [vmem:[#allocation2 + $0xa1] sm:$0xff] }
 0x10b   : > { %v5133_v43 = vld [vmem:[#allocation2 + $0x61] sm:$0xff] }
 0x10c   : > { %876 = vst.msk [vmem:[#allocation2 + $0x71] sm:$0xff] %vm770_vm0, %v744_v27  ;;  %v5142_v48 = vld [vmem:[#allocation2 + $0x62] sm:$0xff] }
 0x10d   : > { %v603_v16 = vpop.f32.mrf.mxu0 }
 0x10e   : > { %v677_v18 = vmul.f32 %v4914_v37, %v603_v16 }
 0x110   : > { %v713_v22 = vadd.f32 %v4923_v38, %v677_v18 }
 0x112   : > { %v745_v28 = vmax.f32 %v713_v22, 0.0 }
 0x113   : > { %v5153_v1 = vld [vmem:[#allocation2 + $0x71] sm:$0xff] }
 0x114   : > { %877 = vst.msk [vmem:[#allocation2 + $0x81] sm:$0xff] %vm770_vm0, %v745_v28  ;;  %v985_v4 = vpack.c.bf16 %v5153_v1, %v5133_v43  ;;  %v5353_v40 = vld [vmem:[#allocation2 + $0x70] sm:$0xff] }
 0x115   : > { %v606_v30 = vpop.f32.mrf.mxu0 }
 0x116   : > { %v678_v32 = vmul.f32 %v4914_v37, %v606_v30  ;;  %4108 = vmatmul.msk.bf16.gmra.mxu1 %vm770_vm0, %v985_v4 }
 0x118   : > { %v714_v33 = vadd.f32 %v4923_v38, %v678_v32  ;;  %645 = vmatmul.bf16.gmra.mxu0 %v509_v31  ;;  %v4422_v31 = vld [vmem:[%s6967_s4 + $0x8] sm:$0xff] }
 0x119   : > { %4451 = vmatpush.bf16.msra.mxu2 %v4422_v31  ;;  %1586 = vmatpush.bf16.msrb.mxu0 %v4422_v31 }
 0x11a   : > { %v746_v29 = vmax.f32 %v714_v33, 0.0 }
 0x11c   : > { %878 = vst.msk [vmem:[#allocation2 + $0xb1] sm:$0xff] %vm770_vm0, %v746_v29  ;;  %v495_v29 = vld [vmem:[%s4811_s17 + $0xf0] sm:$0xff] }
 0x11d   : > { %v608_v36 = vpop.f32.mrf.mxu0  ;;  %4452 = vmatpush.bf16.msra.mxu2 %v4421_v42  ;;  %1587 = vmatpush.bf16.msrb.mxu0 %v4421_v42 }
 0x11e   : > { %v679_v44 = vmul.f32 %v4914_v37, %v608_v36  ;;  %v496_v36 = vld [vmem:[%s4811_s17 + $0xf8] sm:$0xff] }
 0x120   : > { %v715_v49 = vadd.f32 %v4923_v38, %v679_v44  ;;  %v966_v44 = vld [vmem:[#allocation2 + $0x141] sm:$0xff] }
 0x122   : > { %v747_v52 = vmax.f32 %v715_v49, 0.0 }
 0x123   : > { %v5160_v5 = vld [vmem:[#allocation2 + $0xb1] sm:$0xff] }
 0x124   : > { %879 = vst.msk [vmem:[#allocation2 + $0xc1] sm:$0xff] %vm770_vm0, %v747_v52  ;;  %v5169_v11 = vld [vmem:[#allocation2 + $0xb2] sm:$0xff]  ;;  %v986_v23 = vpack.c.bf16 %v5160_v5, %v958_v20  ;;  %v512_v52 = vpack.c.bf16 %v496_v36, %v495_v29  ;;  %v902_v20 = vld [vmem:[#allocation2] sm:$0xff] }
 0x125   : > { %v611_v55 = vpop.f32.mrf.mxu0  ;;  %7064 = vst [vmem:[#allocation19_spill] sm:$0xff] %v5169_v11 }
 0x126   : > { %v680_v57 = vmul.f32 %v4914_v37, %v611_v55  ;;  %4109 = vmatmul.msk.bf16.gmra.mxu1 %vm770_vm0, %v986_v23 }
 0x128   : > { %v716_v58 = vadd.f32 %v4923_v38, %v680_v57  ;;  %650 = vmatmul.bf16.gmra.mxu0 %v510_v56 }
 0x12a   : > { %v748_v2 = vmax.f32 %v716_v58, 0.0 }
 0x12b   : > { %v5155_v3 = vld [vmem:[#allocation2 + $0xc1] sm:$0xff] }
 0x12c   : > { %880 = vst.msk [vmem:[#allocation2 + $0xd1] sm:$0xff] %vm770_vm0, %v748_v2  ;;  %v5165_v9 = vld [vmem:[#allocation2 + $0xc2] sm:$0xff] }
 0x12d   : > { %v613_v6 = vpop.f32.mrf.mxu0  ;;  %7063 = vst [vmem:[#allocation18_spill] sm:$0xff] %v5165_v9 }
 0x12e   : > { %v681_v7 = vmul.f32 %v4914_v37, %v613_v6 }
 0x130   : > { %v717_v10 = vadd.f32 %v4923_v38, %v681_v7 }
 0x132   : > { %v749_v12 = vmax.f32 %v717_v10, 0.0 }
 0x133   : > { %v5182_v24 = vld [vmem:[#allocation2 + $0xd1] sm:$0xff] }
 0x134   : > { %881 = vst.msk [vmem:[#allocation2 + $0xe1] sm:$0xff] %vm770_vm0, %v749_v12  ;;  %v5194_v32 = vld [vmem:[#allocation2 + $0xd2] sm:$0xff]  ;;  %v987_v57 = vpack.c.bf16 %v5182_v24, %v5155_v3 }
 0x135   : > { %v616_v16 = vpop.f32.mrf.mxu0  ;;  %7066 = vst [vmem:[#allocation21_spill] sm:$0xff] %v5194_v32  ;;  %v4428_v12 = vld [vmem:[%s6967_s4 + $0x38] sm:$0xff] }
 0x136   : > { %v682_v18 = vmul.f32 %v4914_v37, %v616_v16  ;;  %4110 = vmatmul.msk.bf16.gmra.mxu1 %vm770_vm0, %v987_v57 }
 0x137   : > { %1916 = vmatpush.bf16.msrb.mxu1 %v4428_v12  ;;  %v5264_v12 = vld [vmem:[#allocation2 + $0x20] sm:$0xff] }
 0x138   : > { %v718_v19 = vadd.f32 %v4923_v38, %v682_v18  ;;  %655 = vmatmul.bf16.gmra.mxu0 %v511_v17 }
 0x13a   : > { %v750_v21 = vmax.f32 %v718_v19, 0.0 }
 0x13b   : > { %v5178_v22 = vld [vmem:[#allocation2 + $0xe1] sm:$0xff] }
 0x13c   : > { %882 = vst.msk [vmem:[#allocation2 + $0xf1] sm:$0xff] %vm770_vm0, %v750_v21  ;;  %v5187_v28 = vld [vmem:[#allocation2 + $0xe2] sm:$0xff]  ;;  %v5236_v21 = vld [vmem:[#allocation2 + $0x10] sm:$0xff] }
 0x13d   : > { %v618_v25 = vpop.f32.mrf.mxu0  ;;  %7065 = vst [vmem:[#allocation20_spill] sm:$0xff] %v5187_v28 }
 0x13e   : > { %v683_v26 = vmul.f32 %v4914_v37, %v618_v25 }
 0x140   : > { %v719_v30 = vadd.f32 %v4923_v38, %v683_v26  ;;  %v934_v26 = vpack.c.bf16 %v5236_v21, %v902_v20 }
 0x142   : > { %v751_v33 = vmax.f32 %v719_v30, 0.0 }
 0x143   : > { %v5211_v58 = vld [vmem:[#allocation2 + $0xf1] sm:$0xff] }
 0x144   : > { %883 = vst.msk [vmem:[#allocation2 + $0x101] sm:$0xff] %vm770_vm0, %v751_v33  ;;  %v5223_v13 = vld [vmem:[#allocation2 + $0xf2] sm:$0xff]  ;;  %v988_v33 = vpack.c.bf16 %v5211_v58, %v5178_v22 }
 0x145   : > { %v621_v49 = vpop.f32.mrf.mxu0  ;;  %7068 = vst [vmem:[#allocation23_spill] sm:$0xff] %v5223_v13 }
 0x146   : > { %v684_v53 = vmul.f32 %v4914_v37, %v621_v49  ;;  %4111 = vmatmul.msk.bf16.gmra.mxu1 %vm770_vm0, %v988_v33  ;;  %v4427_v49 = vld [vmem:[%s6967_s4 + $0x30] sm:$0xff] }
 0x147   : > { %1917 = vmatpush.bf16.msrb.mxu1 %v4427_v49 }
 0x148   : > { %v720_v54 = vadd.f32 %v4923_v38, %v684_v53  ;;  %660 = vmatmul.bf16.gmra.mxu0 %v512_v52  ;;  %v4426_v52 = vld [vmem:[%s6967_s4 + $0x28] sm:$0xff]  ;;  %v918_v53 = vld [vmem:[#allocation2 + $0x140] sm:$0xff] }
 0x149   : > { %1735 = vmatpush.bf16.msrb.mxu3 %v4426_v52 }
 0x14a   : > { %v752_v55 = vmax.f32 %v720_v54, 0.0 }
 0x14b   : > { %v5206_v56 = vld [vmem:[#allocation2 + $0x101] sm:$0xff] }
 0x14c   : > { %884 = vst.msk [vmem:[#allocation2 + $0x111] sm:$0xff] %vm770_vm0, %v752_v55  ;;  %v5216_v7 = vld [vmem:[#allocation2 + $0x102] sm:$0xff] }
 0x14d   : > { %v623_v2 = vpop.f32.mrf.mxu0  ;;  %7067 = vst [vmem:[#allocation22_spill] sm:$0xff] %v5216_v7  ;;  %v5227_v17 = vld [vmem:[#allocation2 + $0x100] sm:$0xff] }
 0x14e   : > { %v685_v4 = vmul.f32 %v4914_v37, %v623_v2  ;;  %v5260_v2 = vld [vmem:[#allocation2 + $0x30] sm:$0xff]  ;;  %v4429_v7 = vld [vmem:[%s6967_s4 + $0x40] sm:$0xff] }
 0x150   : > { %v721_v10 = vadd.f32 %v4923_v38, %v685_v4 }
 0x152   : > { %v753_v14 = vmax.f32 %v721_v10, 0.0 }
 0x153   : > { %v5229_v18 = vld [vmem:[#allocation2 + $0x110] sm:$0xff] }
 0x154   : > { %885 = vst.msk [vmem:[#allocation2 + $0x121] sm:$0xff] %vm770_vm0, %v753_v14  ;;  %v5234_v19 = vpack.c.bf16 %v5229_v18, %v5227_v17  ;;  %v5268_v14 = vpack.c.bf16 %v5260_v2, %v5264_v12 }
 0x155   : > { %v626_v23 = vpop.f32.mrf.mxu0 }
 0x156   : > { %v686_v25 = vmul.f32 %v4914_v37, %v626_v23  ;;  %4136 = vmatmul.msk.bf16.vlgmr.msra.gmra.mxu2 %vm770_vm0, %v5234_v19  ;;  %v5271_v23 = vld [vmem:[#allocation2 + $0x111] sm:$0xff] }
 0x157   : > { %7069 = vst [vmem:[#allocation24_spill] sm:$0xff] %v5271_v23 }
 0x158   : > { %v722_v30 = vadd.f32 %v4923_v38, %v686_v25  ;;  %4129 = vmatmul.msk.bf16.vlgmr.msrb.gmra.mxu0 %vm770_vm0, %v934_v26 }
 0x15a   : > { %v754_v31 = vmax.f32 %v722_v30, 0.0 }
 0x15c   : > { %886 = vst.msk [vmem:[#allocation2 + $0x151] sm:$0xff] %vm770_vm0, %v754_v31  ;;  %v989_v31 = vpack.c.bf16 %v5271_v23, %v5206_v56 }
 0x15d   : > { %v628_v29 = vpop.f32.mrf.mxu0 }
 0x15e   : > { %v687_v36 = vmul.f32 %v4914_v37, %v628_v29  ;;  %4112 = vmatmul.msk.bf16.gmra.mxu1 %vm770_vm0, %v989_v31 }
 0x160   : > { %v723_v42 = vadd.f32 %v4923_v38, %v687_v36 }
 0x162   : > { %v755_v54 = vmax.f32 %v723_v42, 0.0 }
 0x163   : > { %v5256_v55 = vld [vmem:[#allocation2 + $0x150] sm:$0xff] }
 0x164   : > { %887 = vst.msk [vmem:[#allocation2 + $0x161] sm:$0xff] %vm770_vm0, %v755_v54  ;;  %v942_v57 = vpack.c.bf16 %v5256_v55, %v918_v53  ;;  %v5282_v33 = vld [vmem:[#allocation2 + $0x151] sm:$0xff] }
 0x165   : > { %v631_v4 = vpop.f32.mrf.mxu0  ;;  %7071 = vst [vmem:[#allocation26_spill] sm:$0xff] %v5282_v33  ;;  %v5293_v54 = vld [vmem:[#allocation2 + $0x152] sm:$0xff] }
 0x166   : > { %v688_v10 = vmul.f32 %v4914_v37, %v631_v4  ;;  %4137 = vmatmul.msk.bf16.gmra.mxu2 %vm770_vm0, %v942_v57  ;;  %7073 = vst [vmem:[#allocation28_spill] sm:$0xff] %v5293_v54  ;;  %v5315_v4 = vld [vmem:[#allocation2 + $0x40] sm:$0xff] }
 0x168   : > { %v724_v20 = vadd.f32 %v4923_v38, %v688_v10  ;;  %4130 = vmatmul.msk.bf16.gmra.mxu0 %vm770_vm0, %v5268_v14 }
 0x16a   : > { %v756_v25 = vmax.f32 %v724_v20, 0.0 }
 0x16b   : > { %v5275_v26 = vld [vmem:[#allocation2 + $0x161] sm:$0xff] }
 0x16c   : > { %7070 = vst [vmem:[#allocation25_spill] sm:$0xff] %v5275_v26  ;;  %v5277_v30 = vld [vmem:[#allocation2 + $0x160] sm:$0xff] }
 0x16d   : > { %888 = vst.msk [vmem:[#allocation2 + $0x171] sm:$0xff] %vm770_vm0, %v756_v25  ;;  %v633_v29 = vpop.f32.mrf.mxu0  ;;  %v5289_v52 = vld [vmem:[#allocation2 + $0x162] sm:$0xff] }
 0x16e   : > { %v689_v42 = vmul.f32 %v4914_v37, %v633_v29  ;;  %7072 = vst [vmem:[#allocation27_spill] sm:$0xff] %v5289_v52  ;;  %v5308_v29 = vld [vmem:[#allocation2 + $0x50] sm:$0xff] }
 0x16f   : > { %v5320_v16 = vpack.c.bf16 %v5308_v29, %v5315_v4 }
 0x170   : > { %v725_v53 = vadd.f32 %v4923_v38, %v689_v42  ;;  %v5310_v42 = vpop.f32.mrf.mxu1 }
 0x171   : > { %7075 = vst [vmem:[#allocation30_spill] sm:$0xff] %v5310_v42 }
 0x172   : > { %v757_v57 = vmax.f32 %v725_v53, 0.0 }
 0x174   : > { %v5297_v10 = vld [vmem:[#allocation2 + $0x171] sm:$0xff]  ;;  %889 = vst.msk [vmem:[#allocation2 + $0x181] sm:$0xff] %vm770_vm0, %v757_v57 }
 0x175   : > { %7074 = vst [vmem:[#allocation29_spill] sm:$0xff] %v5297_v10  ;;  %v5299_v20 = vld [vmem:[#allocation2 + $0x170] sm:$0xff]  ;;  %v991_v25 = vpack.c.bf16 %v5297_v10, %v5275_v26  ;;  %v636_v53 = vpop.f32.mrf.mxu0 }
 0x176   : > { %v5306_v31 = vpack.c.bf16 %v5299_v20, %v5277_v30  ;;  %v690_v57 = vmul.f32 %v4914_v37, %v636_v53  ;;  %v4430_v53 = vld [vmem:[%s6967_s4 + $0x48] sm:$0xff]  ;;  %v5345_v8 = vld [vmem:[#allocation2 + $0x172] sm:$0xff] }
 0x177   : > { %4114 = vmatmul.msk.bf16.vlgmr.msra.gmra.mxu3 %vm770_vm0, %v991_v25  ;;  %v990_v25 = vpack.c.bf16 %v5282_v33, %v966_v44  ;;  %2097 = vmatpush.bf16.msrb.mxu2 %v4430_v53  ;;  %7079 = vst [vmem:[#allocation34_spill] sm:$0xff] %v5345_v8  ;;  %v910_v8 = vld [vmem:[#allocation2 + $0xa0] sm:$0xff]  ;;  %v5479_v26 = vld [vmem:[#allocation2 + $0xf0] sm:$0xff] }
 0x178   : > { %4138 = vmatmul.msk.bf16.gmra.mxu2 %vm770_vm0, %v5306_v31  ;;  %v726_v15 = vadd.f32 %v4923_v38, %v690_v57  ;;  %4131 = vmatmul.msk.bf16.gmra.mxu0 %vm770_vm0, %v5320_v16 }
 0x179   : > { %4113 = vmatmul.msk.bf16.gmra.mxu1 %vm770_vm0, %v990_v25 }
 0x17a   : > { %v758_v50 = vmax.f32 %v726_v15, 0.0  ;;  %v5338_v15 = vpop.f32.mrf.mxu1 }
 0x17b   : > { %v5326_v45 = vld [vmem:[#allocation2 + $0x181] sm:$0xff]  ;;  %7077 = vst [vmem:[#allocation32_spill] sm:$0xff] %v5338_v15  ;;  %2098 = vmatpush.bf16.msrb.mxu2 %v4429_v7 }
 0x17c   : > { %7076 = vst [vmem:[#allocation31_spill] sm:$0xff] %v5326_v45  ;;  %v5328_v63 = vld [vmem:[#allocation2 + $0x180] sm:$0xff] }
 0x17d   : > { %890 = vst.msk [vmem:[#allocation2 + $0x191] sm:$0xff] %vm770_vm0, %v758_v50  ;;  %v638_v49 = vpop.f32.mrf.mxu0  ;;  %v5341_v27 = vld [vmem:[#allocation2 + $0x182] sm:$0xff] }
 0x17e   : > { %v691_v44 = vmul.f32 %v4914_v37, %v638_v49  ;;  %7078 = vst [vmem:[#allocation33_spill] sm:$0xff] %v5341_v27 }
 0x180   : > { %v727_v50 = vadd.f32 %v4923_v38, %v691_v44  ;;  %v5362_v44 = vld [vmem:[#allocation2 + $0x60] sm:$0xff] }
 0x182   : > { %v759_v57 = vmax.f32 %v727_v50, 0.0  ;;  %v5372_v36 = vpop.f32.mrf.mxu1 }
 0x183   : > { %7082 = vst [vmem:[#allocation37_spill] sm:$0xff] %v5372_v36 }
 0x184   : > { %v5349_v47 = vld [vmem:[#allocation2 + $0x191] sm:$0xff]  ;;  %891 = vst.msk [vmem:[#allocation2 + $0x1a1] sm:$0xff] %vm770_vm0, %v759_v57  ;;  %v5370_v57 = vpack.c.bf16 %v5353_v40, %v5362_v44 }
 0x185   : > { %7080 = vst [vmem:[#allocation35_spill] sm:$0xff] %v5349_v47  ;;  %v5351_v6 = vld [vmem:[#allocation2 + $0x190] sm:$0xff]  ;;  %v992_v49 = vpack.c.bf16 %v5349_v47, %v5326_v45  ;;  %v641_v53 = vpop.f32.mrf.mxu0 }
 0x186   : > { %v5360_v25 = vpack.c.bf16 %v5351_v6, %v5328_v63  ;;  %v692_v50 = vmul.f32 %v4914_v37, %v641_v53  ;;  %v5391_v52 = vld [vmem:[#allocation2 + $0x192] sm:$0xff] }
 0x187   : > { %4115 = vmatmul.msk.bf16.gmra.mxu3 %vm770_vm0, %v992_v49  ;;  %v1078_v49 = vpack.c.bf16 %v5264_v12, %v5236_v21  ;;  %7084 = vst [vmem:[#allocation39_spill] sm:$0xff] %v5391_v52 }
 0x188   : > { %7081 = vst [vmem:[#allocation36_spill] sm:$0xff] %v5360_v25  ;;  %4139 = vmatmul.msk.bf16.gmra.mxu2 %vm770_vm0, %v5360_v25  ;;  %v728_v60 = vadd.f32 %v4923_v38, %v692_v50  ;;  %4132 = vmatmul.msk.bf16.gmra.mxu0 %vm770_vm0, %v5370_v57 }
 0x189   : > { %4177 = vmatmul.msk.bf16.vlgmr.msrb.gmra.mxu1 %vm770_vm0, %v1078_v49 }
 0x18a   : > { %v760_v27 = vmax.f32 %v728_v60, 0.0  ;;  %v5397_v21 = vpop.f32.mrf.mxu1 }
 0x18b   : > { %v5377_v10 = vld [vmem:[#allocation2 + $0x1a1] sm:$0xff]  ;;  %7086 = vst [vmem:[#allocation41_spill] sm:$0xff] %v5397_v21 }
 0x18c   : > { %7083 = vst [vmem:[#allocation38_spill] sm:$0xff] %v5377_v10  ;;  %v5379_v53 = vld [vmem:[#allocation2 + $0x1a0] sm:$0xff] }
 0x18d   : > { %892 = vst.msk [vmem:[#allocation2 + $0x1b1] sm:$0xff] %vm770_vm0, %v760_v27  ;;  %v643_v45 = vpop.f32.mrf.mxu0  ;;  %v5393_v15 = vld [vmem:[#allocation2 + $0x1a2] sm:$0xff] }
 0x18e   : > { %v693_v36 = vmul.f32 %v4914_v37, %v643_v45  ;;  %7085 = vst [vmem:[#allocation40_spill] sm:$0xff] %v5393_v15  ;;  %v5403_v45 = vld [vmem:[#allocation2 + $0xb0] sm:$0xff]  ;;  %v926_v21 = vld [vmem:[#allocation2 + $0x1e0] sm:$0xff] }
 0x190   : > { %v729_v60 = vadd.f32 %v4923_v38, %v693_v36 }
 0x192   : > { %v761_v12 = vmax.f32 %v729_v60, 0.0  ;;  %v938_v60 = vpack.c.bf16 %v5403_v45, %v910_v8  ;;  %v974_v8 = vld [vmem:[#allocation2 + $0x1e1] sm:$0xff] }
 0x194   : > { %v5399_v42 = vld [vmem:[#allocation2 + $0x1b1] sm:$0xff]  ;;  %893 = vst.msk [vmem:[#allocation2 + $0x1c1] sm:$0xff] %vm770_vm0, %v761_v12 }
 0x195   : > { %7087 = vst [vmem:[#allocation42_spill] sm:$0xff] %v5399_v42  ;;  %v5401_v50 = vld [vmem:[#allocation2 + $0x1b0] sm:$0xff]  ;;  %v993_v36 = vpack.c.bf16 %v5399_v42, %v5377_v10  ;;  %v646_v27 = vpop.f32.mrf.mxu0  ;;  %v5419_v42 = vpop.f32.mrf.mxu1  ;;  %v1079_v10 = vpack.c.bf16 %v5315_v4, %v5260_v2 }
 0x196   : > { %v5410_v49 = vpack.c.bf16 %v5401_v50, %v5379_v53  ;;  %v694_v15 = vmul.f32 %v4914_v37, %v646_v27  ;;  %7089 = vst [vmem:[#allocation44_spill] sm:$0xff] %v5419_v42 }
 0x197   : > { %4116 = vmatmul.msk.bf16.gmra.mxu3 %vm770_vm0, %v993_v36 }
 0x198   : > { %7088 = vst [vmem:[#allocation43_spill] sm:$0xff] %v5410_v49  ;;  %4140 = vmatmul.msk.bf16.gmra.mxu2 %vm770_vm0, %v5410_v49  ;;  %v730_v47 = vadd.f32 %v4923_v38, %v694_v15  ;;  %4133 = vmatmul.msk.bf16.gmra.mxu0 %vm770_vm0, %v938_v60  ;;  %v5431_v60 = vld [vmem:[#allocation2 + $0xd0] sm:$0xff] }
 0x199   : > { %4178 = vmatmul.msk.bf16.gmra.mxu1 %vm770_vm0, %v1079_v10  ;;  %v4425_v10 = vld [vmem:[%s6967_s4 + $0x20] sm:$0xff] }
 0x19a   : > { %v762_v12 = vmax.f32 %v730_v47, 0.0  ;;  %1736 = vmatpush.bf16.msrb.mxu3 %v4425_v10 }
 0x19c   : > { %894 = vst.msk [vmem:[#allocation2 + $0x1f1] sm:$0xff] %vm770_vm0, %v762_v12 }
 0x19d   : > { %v648_v27 = vpop.f32.mrf.mxu0  ;;  %v5433_v12 = vpop.f32.mrf.mxu1 }
 0x19e   : > { %v695_v36 = vmul.f32 %v4914_v37, %v648_v27  ;;  %7091 = vst [vmem:[#allocation46_spill] sm:$0xff] %v5433_v12 }
 0x1a0   : > { %v731_v52 = vadd.f32 %v4923_v38, %v695_v36 }
 0x1a2   : > { %v763_v15 = vmax.f32 %v731_v52, 0.0  ;;  %v5441_v52 = vld [vmem:[#allocation2 + $0xc0] sm:$0xff] }
 0x1a3   : > { %v5427_v49 = vld [vmem:[#allocation2 + $0x1f1] sm:$0xff] }
 0x1a4   : > { %7090 = vst [vmem:[#allocation45_spill] sm:$0xff] %v5427_v49  ;;  %v5429_v47 = vld [vmem:[#allocation2 + $0x1f0] sm:$0xff]  ;;  %v994_v2 = vpack.c.bf16 %v5427_v49, %v974_v8 }
 0x1a5   : > { %895 = vst.msk [vmem:[#allocation2 + $0x201] sm:$0xff] %vm770_vm0, %v763_v15  ;;  %v946_v4 = vpack.c.bf16 %v5429_v47, %v926_v21  ;;  %v651_v27 = vpop.f32.mrf.mxu0  ;;  %v5448_v15 = vpack.c.bf16 %v5431_v60, %v5441_v52  ;;  %v5455_v42 = vpop.f32.mrf.mxu1  ;;  %v5467_v33 = vld [vmem:[#allocation2 + $0x1f2] sm:$0xff] }
 0x1a6   : > { %v696_v36 = vmul.f32 %v4914_v37, %v651_v27  ;;  %7092 = vst [vmem:[#allocation47_spill] sm:$0xff] %v5455_v42 }
 0x1a7   : > { %4117 = vmatmul.msk.bf16.gmra.mxu3 %vm770_vm0, %v994_v2  ;;  %v1080_v2 = vpack.c.bf16 %v5362_v44, %v5308_v29  ;;  %7094 = vst [vmem:[#allocation49_spill] sm:$0xff] %v5467_v33  ;;  %v5506_v33 = vld [vmem:[#allocation2 + $0x80] sm:$0xff] }
 0x1a8   : > { %4141 = vmatmul.msk.bf16.gmra.mxu2 %vm770_vm0, %v946_v4  ;;  %v732_v21 = vadd.f32 %v4923_v38, %v696_v36  ;;  %4134 = vmatmul.msk.bf16.gmra.mxu0 %vm770_vm0, %v5448_v15 }
 0x1a9   : > { %4179 = vmatmul.msk.bf16.gmra.mxu1 %vm770_vm0, %v1080_v2 }
 0x1aa   : > { %v764_v8 = vmax.f32 %v732_v21, 0.0 }
 0x1ac   : > { %v5453_v12 = vld [vmem:[#allocation2 + $0x200] sm:$0xff]  ;;  %896 = vst.msk [vmem:[#allocation2 + $0x211] sm:$0xff] %vm770_vm0, %v764_v8 }
 0x1ad   : > { %v653_v4 = vpop.f32.mrf.mxu0  ;;  %v5463_v36 = vld [vmem:[#allocation2 + $0x201] sm:$0xff]  ;;  %v5481_v2 = vpop.f32.mrf.mxu1 }
 0x1ae   : > { %v697_v10 = vmul.f32 %v4914_v37, %v653_v4  ;;  %7093 = vst [vmem:[#allocation48_spill] sm:$0xff] %v5463_v36  ;;  %v5469_v42 = vld [vmem:[#allocation2 + $0x202] sm:$0xff] }
 0x1af   : > { %7095 = vst [vmem:[#allocation50_spill] sm:$0xff] %v5469_v42  ;;  %v5493_v42 = vld [vmem:[#allocation2 + $0xe0] sm:$0xff] }
 0x1b0   : > { %v733_v21 = vadd.f32 %v4923_v38, %v697_v10  ;;  %7098 = vst [vmem:[#allocation53_spill] sm:$0xff] %v5481_v2 }
 0x1b2   : > { %v765_v44 = vmax.f32 %v733_v21, 0.0  ;;  %v4434_v21 = vld [vmem:[%s6967_s4 + $0x68] sm:$0xff] }
 0x1b3   : > { %v5475_v27 = vld [vmem:[#allocation2 + $0x211] sm:$0xff]  ;;  %2459 = vmatpush.bf16.msra.mxu0 %v4434_v21  ;;  %v1081_v21 = vpack.c.bf16 %v5506_v33, %v5353_v40 }
 0x1b4   : > { %7096 = vst [vmem:[#allocation51_spill] sm:$0xff] %v5475_v27  ;;  %v5477_v4 = vld [vmem:[#allocation2 + $0x210] sm:$0xff]  ;;  %v995_v10 = vpack.c.bf16 %v5475_v27, %v5463_v36 }
 0x1b5   : > { %7097 = vst [vmem:[#allocation52_spill] sm:$0xff] %v5477_v4  ;;  %v5488_v8 = vpack.c.bf16 %v5477_v4, %v5453_v12  ;;  %v656_v29 = vpop.f32.mrf.mxu0 }
 0x1b6   : > { %897 = vst.msk [vmem:[#allocation2 + $0x221] sm:$0xff] %vm770_vm0, %v765_v44  ;;  %v698_v49 = vmul.f32 %v4914_v37, %v656_v29  ;;  %v5501_v44 = vpack.c.bf16 %v5479_v26, %v5493_v42  ;;  %v5510_v29 = vpop.f32.mrf.mxu1 }
 0x1b7   : > { %7099 = vst [vmem:[#allocation54_spill] sm:$0xff] %v5488_v8  ;;  %4118 = vmatmul.msk.bf16.gmra.mxu3 %vm770_vm0, %v995_v10  ;;  %v4433_v10 = vld [vmem:[%s6967_s4 + $0x60] sm:$0xff] }
 0x1b8   : > { %4142 = vmatmul.msk.bf16.gmra.mxu2 %vm770_vm0, %v5488_v8  ;;  %v734_v36 = vadd.f32 %v4923_v38, %v698_v49  ;;  %4135 = vmatmul.msk.bf16.gmra.mxu0 %vm770_vm0, %v5501_v44  ;;  %7100 = vst [vmem:[#allocation55_spill] sm:$0xff] %v5510_v29  ;;  %v5525_v29 = vld [vmem:[#allocation2 + $0x212] sm:$0xff] }
 0x1b9   : > { %2460 = vmatpush.bf16.msra.mxu0 %v4433_v10  ;;  %4180 = vmatmul.msk.bf16.gmra.mxu1 %vm770_vm0, %v1081_v21  ;;  %7102 = vst [vmem:[#allocation57_spill] sm:$0xff] %v5525_v29 }
 0x1ba   : > { %v766_v2 = vmax.f32 %v734_v36, 0.0 }
 0x1bc   : > { %898 = vst.msk [vmem:[#allocation2 + $0x231] sm:$0xff] %vm770_vm0, %v766_v2 }
 0x1bd   : > { %v5508_v54 = vld [vmem:[#allocation2 + $0x220] sm:$0xff]  ;;  %v658_v49 = vpop.f32.mrf.mxu0 }
 0x1be   : > { %v699_v25 = vmul.f32 %v4914_v37, %v658_v49  ;;  %v5521_v36 = vld [vmem:[#allocation2 + $0x221] sm:$0xff]  ;;  %v5537_v49 = vpop.f32.mrf.mxu1 }
 0x1bf   : > { %7101 = vst [vmem:[#allocation56_spill] sm:$0xff] %v5521_v36  ;;  %v5527_v23 = vld [vmem:[#allocation2 + $0x222] sm:$0xff] }
 0x1c0   : > { %v735_v2 = vadd.f32 %v4923_v38, %v699_v25  ;;  %7103 = vst [vmem:[#allocation58_spill] sm:$0xff] %v5527_v23 }
 0x1c2   : > { %v767_v8 = vmax.f32 %v735_v2, 0.0 }
 0x1c3   : > { %v5533_v4 = vld [vmem:[#allocation2 + $0x231] sm:$0xff] }
 0x1c4   : > { %v5535_v10 = vld [vmem:[#allocation2 + $0x230] sm:$0xff]  ;;  %899 = vst.msk [vmem:[#allocation2 + $0x241] sm:$0xff] %vm770_vm0, %v767_v8  ;;  %v996_v25 = vpack.c.bf16 %v5533_v4, %v5521_v36 }
 0x1c5   : > { %v5544_v21 = vpack.c.bf16 %v5535_v10, %v5508_v54  ;;  %v661_v2 = vpop.f32.mrf.mxu0 }
 0x1c6   : > { %v700_v40 = vmul.f32 %v4914_v37, %v661_v2  ;;  %v5558_v36 = vpop.f32.mrf.mxu1  ;;  %v1082_v2 = vpack.c.bf16 %v5441_v52, %v5403_v45  ;;  %v4432_v45 = vld [vmem:[%s6967_s4 + $0x58] sm:$0xff] }
 0x1c7   : > { %4119 = vmatmul.msk.bf16.gmra.mxu3 %vm770_vm0, %v996_v25  ;;  %7104 = vst [vmem:[#allocation59_spill] sm:$0xff] %v5558_v36 }
 0x1c8   : > { %4143 = vmatmul.msk.bf16.gmra.mxu2 %vm770_vm0, %v5544_v21  ;;  %v736_v8 = vadd.f32 %v4923_v38, %v700_v40  ;;  %4249 = vmatmul.msk.bf16.vlgmr.msra.gmra.mxu0 %vm770_vm0, %v5268_v14 }
 0x1c9   : > { %4181 = vmatmul.msk.bf16.gmra.mxu1 %vm770_vm0, %v1082_v2  ;;  %2278 = vmatpush.bf16.msra.mxu3 %v4432_v45 }
 0x1ca   : > { %v768_v23 = vmax.f32 %v736_v8, 0.0  ;;  %v5570_v8 = vld [vmem:[#allocation2 + $0x232] sm:$0xff] }
 0x1cb   : > { %v5556_v27 = vld [vmem:[#allocation2 + $0x240] sm:$0xff] }
 0x1cc   : > { %900 = vst.msk [vmem:[#allocation2 + $0x251] sm:$0xff] %vm770_vm0, %v768_v23  ;;  %v5566_v40 = vld [vmem:[#allocation2 + $0x241] sm:$0xff] }
 0x1cd   : > { %v663_v25 = vpop.f32.mrf.mxu0  ;;  %v5572_v36 = vld [vmem:[#allocation2 + $0x242] sm:$0xff] }
 0x1ce   : > { %v701_v7 = vmul.f32 %v4914_v37, %v663_v25  ;;  %7105 = vst [vmem:[#allocation60_spill] sm:$0xff] %v5572_v36  ;;  %v5582_v25 = vpop.f32.mrf.mxu1 }
 0x1d0   : > { %v737_v14 = vadd.f32 %v4923_v38, %v701_v7 }
 0x1d2   : > { %v769_v52 = vmax.f32 %v737_v14, 0.0 }
 0x1d3   : > { %v5578_v29 = vld [vmem:[#allocation2 + $0x251] sm:$0xff] }
 0x1d4   : > { %7106 = vst [vmem:[#allocation61_spill] sm:$0xff] %v5578_v29  ;;  %v5580_v37 = vld [vmem:[#allocation2 + $0x250] sm:$0xff]  ;;  %v997_v38 = vpack.c.bf16 %v5578_v29, %v5566_v40 }
 0x1d5   : > { %901 = vst.msk [vmem:[#allocation2 + $0x261] sm:$0xff] %vm770_vm0, %v769_v52  ;;  %v5589_v2 = vpack.c.bf16 %v5580_v37, %v5556_v27  ;;  %v1083_v52 = vpack.c.bf16 %v5493_v42, %v5431_v60  ;;  %v7109_v42 = vpack.c.bf16 %v5002_v59, %v4960_v51  ;;  %v5628_v59 = vpack.c.bf16 %v5125_v39, %v5012_v61 }
 0x1d6   : > { %v5596_v14 = vpop.f32.mrf.mxu1 }
 0x1d7   : > { %4120 = vmatmul.msk.bf16.gmra.mxu3 %vm770_vm0, %v997_v38  ;;  %7107 = vst [vmem:[#allocation62_spill] sm:$0xff] %v5596_v14  ;;  %v998_v38 = vld [vmem:[#allocation2 + $0x2] sm:$0xff]  ;;  %v5610_v14 = vpop.f32.mrf.mxu0 }
 0x1d8   : > { %4144 = vmatmul.msk.bf16.gmra.mxu2 %vm770_vm0, %v5589_v2  ;;  %4250 = vmatmul.msk.bf16.gmra.mxu0 %vm770_vm0, %v5320_v16  ;;  %v1030_v36 = vpack.c.bf16 %v5018_v62, %v998_v38  ;;  %v4436_v16 = vld [vmem:[%s6967_s4 + $0x78] sm:$0xff] }
 0x1d9   : > { %v1624_v7 = vpop.f32.mrf.mxu2  ;;  %4182 = vmatmul.msk.bf16.gmra.mxu1 %vm770_vm0, %v1083_v52  ;;  %v1084_v52 = vpack.c.bf16 %v5227_v17, %v5479_v26  ;;  %v7110_v17 = vpack.c.bf16 %v5120_v34, %v5028_v0 }
 0x1da   : > { %2640 = vmatpush.bf16.msra.mxu1 %v4436_v16 }
 0x1de   : > { %v5604_v29 = vpop.f32.mrf.mxu1 }
 0x1df   : > { %7108 = vst [vmem:[#allocation63_spill] sm:$0xff] %v5604_v29  ;;  %v5624_v62 = vpop.f32.mrf.mxu0  ;;  %v1198_v29 = vld [vmem:[#allocation2 + $0x90] sm:$0xff] }
 0x1e0   : > { %v1226_v26 = vpack.c.bf16 %v1198_v29, %v5506_v33 }
 0x1e1   : > { %v1626_v23 = vpop.f32.mrf.mxu2 }
 0x1e6   : > { %v1475_v45 = vpop.f32.mrf.mxu1 }
 0x1e7   : > { %4153 = vmatmul.msk.bf16.vlgmr.msrb.gmra.mxu3 %vm770_vm0, %v1030_v36  ;;  %v5621_v38 = vadd.f32 %v1624_v7, %v1475_v45  ;;  %v5642_v45 = vpop.f32.mrf.mxu0 }
 0x1e8   : > { %4201 = vmatmul.msk.bf16.vlgmr.msrb.gmra.mxu2 %vm770_vm0, %v7109_v42  ;;  %4251 = vmatmul.msk.bf16.gmra.mxu0 %vm770_vm0, %v5370_v57 }
 0x1e9   : > { %v1629_v60 = vpop.f32.mrf.mxu2  ;;  %4183 = vmatmul.msk.bf16.gmra.mxu1 %vm770_vm0, %v1084_v52 }
 0x1ee   : > { %v1477_v51 = vpop.f32.mrf.mxu1 }
 0x1ef   : > { %v5630_v16 = vadd.f32 %v1626_v23, %v1477_v51  ;;  %v5644_v23 = vld [vmem:[#allocation2 + $0x120] sm:$0xff] }
 0x1f0   : > { %v1085_v51 = vpack.c.bf16 %v5644_v23, %v5229_v18  ;;  %v7111_v18 = vpack.c.bf16 %v5133_v43, %v5123_v35  ;;  %v7113_v35 = vpack.c.bf16 %v5277_v30, %v5256_v55 }
 0x1f1   : > { %v1631_v36 = vpop.f32.mrf.mxu2 }
 0x1f6   : > { %v1480_v52 = vpop.f32.mrf.mxu1 }
 0x1f7   : > { %4154 = vmatmul.msk.bf16.gmra.mxu3 %vm770_vm0, %v5628_v59  ;;  %v5648_v39 = vadd.f32 %v1629_v60, %v1480_v52 }
 0x1f8   : > { %4202 = vmatmul.msk.bf16.gmra.mxu2 %vm770_vm0, %v7110_v17  ;;  %4252 = vmatmul.msk.bf16.gmra.mxu0 %vm770_vm0, %v1226_v26  ;;  %v5653_v17 = vpop.f32.mrf.mxu0  ;;  %v5657_v26 = vpack.c.bf16 %v5138_v46, %v5129_v41 }
 0x1f9   : > { %4184 = vmatmul.msk.bf16.gmra.mxu1 %vm770_vm0, %v1085_v51 }
 0x1fa   : > { %v1485_v57 = vpop.f32.mrf.mxu3 }
 0x1fb   : > { %v1634_v7 = vpop.f32.mrf.mxu2 }
 0x1fc   : > { %v5640_v42 = vadd.f32 %v1634_v7, %v1485_v57 }
 0x1fe   : > { %v1482_v29 = vpop.f32.mrf.mxu1 }
 0x1ff   : > { %v5659_v57 = vadd.f32 %v1631_v36, %v1482_v29  ;;  %v4438_v36 = vld [vmem:[%s6967_s4 + $0x88] sm:$0xff] }
 0x200   : > { %2821 = vmatpush.bf16.msra.mxu2 %v4438_v36  ;;  %v5684_v29 = vld [vmem:[#allocation2 + $0x81] sm:$0xff] }
 0x201   : > { %v1129_v36 = vpack.c.bf16 %v5684_v29, %v5153_v1 }
 0x202   : > { %v1487_v0 = vpop.f32.mrf.mxu3 }
 0x203   : > { %v1636_v34 = vpop.f32.mrf.mxu2 }
 0x204   : > { %v5651_v33 = vadd.f32 %v1636_v34, %v1487_v0  ;;  %v5676_v0 = vpop.f32.mrf.mxu0  ;;  %v5682_v34 = vld [vmem:[#allocation2 + $0x72] sm:$0xff] }
 0x205   : > { %7114 = vst [vmem:[#allocation65_spill] sm:$0xff] %v5682_v34 }
 0x206   : > { %v5671_v51 = vpop.f32.mrf.mxu1 }
 0x207   : > { %4155 = vmatmul.msk.bf16.gmra.mxu3 %vm770_vm0, %v5657_v26 }
 0x208   : > { %4203 = vmatmul.msk.bf16.gmra.mxu2 %vm770_vm0, %v7111_v18  ;;  %4253 = vmatmul.msk.bf16.gmra.mxu0 %vm770_vm0, %v5448_v15 }
 0x209   : > { %4185 = vmatmul.msk.bf16.gmra.mxu1 %vm770_vm0, %v7113_v35 }
 0x20a   : > { %v1490_v60 = vpop.f32.mrf.mxu3 }
 0x20b   : > { %v1639_v7 = vpop.f32.mrf.mxu2 }
 0x20c   : > { %v5669_v52 = vadd.f32 %v1639_v7, %v1490_v60  ;;  %v5692_v7 = vpack.c.bf16 %v5682_v34, %v5142_v48  ;;  %v5699_v55 = vpop.f32.mrf.mxu0  ;;  %v7117_v34 = vpack.c.bf16 %v5328_v63, %v5299_v20 }
 0x20e   : > { %7112 = vst [vmem:[#allocation64_spill] sm:$0xff] %v5669_v52  ;;  %v5688_v60 = vpop.f32.mrf.mxu1  ;;  %v1006_v52 = vld [vmem:[#allocation2 + $0xa2] sm:$0xff] }
 0x20f   : > { %7116 = vst [vmem:[#allocation67_spill] sm:$0xff] %v5692_v7 }
 0x212   : > { %v1492_v43 = vpop.f32.mrf.mxu3 }
 0x213   : > { %v1641_v15 = vpop.f32.mrf.mxu2 }
 0x214   : > { %v5686_v18 = vadd.f32 %v1641_v15, %v1492_v43 }
 0x216   : > { %7115 = vst [vmem:[#allocation66_spill] sm:$0xff] %v5686_v18  ;;  %v5705_v15 = vpop.f32.mrf.mxu1 }
 0x217   : > { %4156 = vmatmul.msk.bf16.gmra.mxu3 %vm770_vm0, %v5692_v7 }
 0x218   : > { %4204 = vmatmul.msk.bf16.gmra.mxu2 %vm770_vm0, %v1129_v36  ;;  %4254 = vmatmul.msk.bf16.gmra.mxu0 %vm770_vm0, %v5501_v44  ;;  %v5711_v36 = vpop.f32.mrf.mxu0  ;;  %v1034_v44 = vpack.c.bf16 %v5169_v11, %v1006_v52  ;;  %v7121_v52 = vpack.c.bf16 %v5379_v53, %v5351_v6  ;;  %v7124_v6 = vpack.c.bf16 %v5178_v22, %v5182_v24  ;;  %v7145_v11 = vld [vmem:[#allocation30_spill] sm:$0xff] }
 0x219   : > { %4186 = vmatmul.msk.bf16.gmra.mxu1 %vm770_vm0, %v7117_v34 }
 0x21a   : > { %v1495_v30 = vpop.f32.mrf.mxu3 }
 0x21b   : > { %v1644_v35 = vpop.f32.mrf.mxu2 }
 0x21c   : > { %v5703_v43 = vadd.f32 %v1644_v35, %v1495_v30  ;;  %v7119_v30 = vpack.c.bf16 %v5155_v3, %v5160_v5 }
 0x21e   : > { %v5715_v46 = vpop.f32.mrf.mxu1 }
 0x222   : > { %v1497_v1 = vpop.f32.mrf.mxu3 }
 0x223   : > { %v1646_v18 = vpop.f32.mrf.mxu2 }
 0x224   : > { %v5713_v7 = vadd.f32 %v1646_v18, %v1497_v1  ;;  %v5727_v18 = vpop.f32.mrf.mxu0 }
 0x226   : > { %7118 = vst [vmem:[#allocation68_spill] sm:$0xff] %v5713_v7  ;;  %v5729_v35 = vpop.f32.mrf.mxu1 }
 0x227   : > { %4157 = vmatmul.msk.bf16.gmra.mxu3 %vm770_vm0, %v1034_v44  ;;  %v1206_v44 = vld [vmem:[#allocation2 + $0x130] sm:$0xff] }
 0x228   : > { %4205 = vmatmul.msk.bf16.gmra.mxu2 %vm770_vm0, %v7119_v30  ;;  %4255 = vmatmul.msk.bf16.gmra.mxu0 %vm770_vm0, %v5234_v19  ;;  %v5741_v19 = vpack.c.bf16 %v5194_v32, %v5165_v9  ;;  %v1230_v53 = vpack.c.bf16 %v1206_v44, %v5644_v23 }
 0x229   : > { %4187 = vmatmul.msk.bf16.gmra.mxu1 %vm770_vm0, %v7121_v52 }
 0x22a   : > { %v1500_v63 = vpop.f32.mrf.mxu3  ;;  %7123 = vst [vmem:[#allocation71_spill] sm:$0xff] %v5741_v19 }
 0x22b   : > { %v1649_v20 = vpop.f32.mrf.mxu2 }
 0x22c   : > { %v5725_v34 = vadd.f32 %v1649_v20, %v1500_v63  ;;  %v5743_v63 = vpop.f32.mrf.mxu0 }
 0x22e   : > { %7120 = vst [vmem:[#allocation69_spill] sm:$0xff] %v5725_v34  ;;  %v5737_v30 = vpop.f32.mrf.mxu1 }
 0x232   : > { %v1502_v1 = vpop.f32.mrf.mxu3 }
 0x233   : > { %v1651_v3 = vpop.f32.mrf.mxu2 }
 0x234   : > { %v5735_v5 = vadd.f32 %v1651_v3, %v1502_v1  ;;  %v5753_v1 = vld [vmem:[#allocation2 + $0x1c0] sm:$0xff]  ;;  %v5762_v22 = vpop.f32.mrf.mxu0 }
 0x236   : > { %7122 = vst [vmem:[#allocation70_spill] sm:$0xff] %v5735_v5  ;;  %v5757_v32 = vpop.f32.mrf.mxu1  ;;  %v1089_v5 = vpack.c.bf16 %v5753_v1, %v5401_v50  ;;  %v7128_v50 = vpack.c.bf16 %v5206_v56, %v5211_v58  ;;  %v5790_v58 = vld [vmem:[#allocation2 + $0x112] sm:$0xff] }
 0x237   : > { %4158 = vmatmul.msk.bf16.gmra.mxu3 %vm770_vm0, %v5741_v19  ;;  %7131 = vst [vmem:[#allocation76_spill] sm:$0xff] %v5790_v58 }
 0x238   : > { %4206 = vmatmul.msk.bf16.gmra.mxu2 %vm770_vm0, %v7124_v6  ;;  %4256 = vmatmul.msk.bf16.gmra.mxu0 %vm770_vm0, %v1230_v53  ;;  %v5770_v53 = vpack.c.bf16 %v5223_v13, %v5187_v28  ;;  %v7130_v13 = vpack.c.bf16 %v5453_v12, %v5429_v47 }
 0x239   : > { %4188 = vmatmul.msk.bf16.gmra.mxu1 %vm770_vm0, %v1089_v5 }
 0x23a   : > { %v1505_v20 = vpop.f32.mrf.mxu3  ;;  %7127 = vst [vmem:[#allocation74_spill] sm:$0xff] %v5770_v53 }
 0x23b   : > { %v1654_v52 = vpop.f32.mrf.mxu2 }
 0x23c   : > { %v5755_v3 = vadd.f32 %v1654_v52, %v1505_v20  ;;  %v5780_v52 = vpop.f32.mrf.mxu0 }
 0x23e   : > { %7125 = vst [vmem:[#allocation72_spill] sm:$0xff] %v5755_v3  ;;  %v5766_v44 = vpop.f32.mrf.mxu1 }
 0x242   : > { %v1507_v24 = vpop.f32.mrf.mxu3 }
 0x243   : > { %v1656_v6 = vpop.f32.mrf.mxu2 }
 0x244   : > { %v5764_v23 = vadd.f32 %v1656_v6, %v1507_v24  ;;  %v5796_v3 = vpop.f32.mrf.mxu0 }
 0x246   : > { %7126 = vst [vmem:[#allocation73_spill] sm:$0xff] %v5764_v23  ;;  %v5784_v6 = vpop.f32.mrf.mxu1 }
 0x247   : > { %4159 = vmatmul.msk.bf16.gmra.mxu3 %vm770_vm0, %v5770_v53 }
 0x248   : > { %4207 = vmatmul.msk.bf16.gmra.mxu2 %vm770_vm0, %v7128_v50  ;;  %4257 = vmatmul.msk.bf16.gmra.mxu0 %vm770_vm0, %v5306_v31  ;;  %v5792_v50 = vld [vmem:[#allocation2 + $0x121] sm:$0xff] }
 0x249   : > { %4189 = vmatmul.msk.bf16.gmra.mxu1 %vm770_vm0, %v7130_v13  ;;  %v7136_v13 = vld [vmem:[#allocation36_spill] sm:$0xff] }
 0x24a   : > { %v1510_v5 = vpop.f32.mrf.mxu3 }
 0x24b   : > { %v1659_v20 = vpop.f32.mrf.mxu2 }
 0x24c   : > { %v5782_v24 = vadd.f32 %v1659_v20, %v1510_v5  ;;  %v7133_v5 = vld [vmem:[#allocation22_spill] sm:$0xff]  ;;  %v5815_v28 = vpop.f32.mrf.mxu0 }
 0x24d   : > { %v5802_v20 = vpack.c.bf16 %v5790_v58, %v7133_v5  ;;  %v7138_v58 = vld [vmem:[#allocation52_spill] sm:$0xff] }
 0x24e   : > { %7129 = vst [vmem:[#allocation75_spill] sm:$0xff] %v5782_v24  ;;  %v5798_v53 = vpop.f32.mrf.mxu1  ;;  %v7135_v24 = vld [vmem:[#allocation24_spill] sm:$0xff]  ;;  %v7139_v5 = vpack.c.bf16 %v5508_v54, %v7138_v58  ;;  %v4435_v54 = vld [vmem:[%s6967_s4 + $0x70] sm:$0xff] }
 0x24f   : > { %7134 = vst [vmem:[#allocation78_spill] sm:$0xff] %v5802_v20  ;;  %v1133_v47 = vpack.c.bf16 %v5792_v50, %v7135_v24  ;;  %v4431_v24 = vld [vmem:[%s6967_s4 + $0x50] sm:$0xff]  ;;  %2641 = vmatpush.bf16.msra.mxu1 %v4435_v54 }
 0x250   : > { %2279 = vmatpush.bf16.msra.mxu3 %v4431_v24  ;;  %v7142_v58 = vld [vmem:[#allocation25_spill] sm:$0xff] }
 0x252   : > { %v1512_v23 = vpop.f32.mrf.mxu3 }
 0x253   : > { %v1661_v56 = vpop.f32.mrf.mxu2 }
 0x254   : > { %v5794_v31 = vadd.f32 %v1661_v56, %v1512_v23  ;;  %v5839_v24 = vpop.f32.mrf.mxu0 }
 0x256   : > { %7132 = vst [vmem:[#allocation77_spill] sm:$0xff] %v5794_v31  ;;  %v5813_v31 = vpop.f32.mrf.mxu1 }
 0x257   : > { %4160 = vmatmul.msk.bf16.gmra.mxu3 %vm770_vm0, %v5802_v20 }
 0x258   : > { %4208 = vmatmul.msk.bf16.gmra.mxu2 %vm770_vm0, %v1133_v47  ;;  %4258 = vmatmul.msk.bf16.gmra.mxu0 %vm770_vm0, %v7136_v13  ;;  %v1014_v13 = vld [vmem:[#allocation2 + $0x142] sm:$0xff] }
 0x259   : > { %4190 = vmatmul.msk.bf16.gmra.mxu1 %vm770_vm0, %v7139_v5  ;;  %v7143_v5 = vld [vmem:[#allocation26_spill] sm:$0xff] }
 0x25a   : > { %v1515_v12 = vpop.f32.mrf.mxu3  ;;  %v7144_v19 = vpack.c.bf16 %v7142_v58, %v7143_v5 }
 0x25b   : > { %v1664_v23 = vpop.f32.mrf.mxu2 }
 0x25c   : > { %v5811_v56 = vadd.f32 %v1664_v23, %v1515_v12  ;;  %v7141_v23 = vld [vmem:[#allocation28_spill] sm:$0xff]  ;;  %v5854_v5 = vpop.f32.mrf.mxu0 }
 0x25d   : > { %7149 = vst [vmem:[#allocation52_spill] sm:$0xff] %v5854_v5  ;;  %v7161_v5 = vld [vmem:[#allocation39_spill] sm:$0xff] }
 0x25e   : > { %7137 = vst [vmem:[#allocation24_spill] sm:$0xff] %v5811_v56  ;;  %v5826_v12 = vpop.f32.mrf.mxu1  ;;  %v1038_v56 = vpack.c.bf16 %v7141_v23, %v1014_v13 }
 0x262   : > { %v1517_v47 = vpop.f32.mrf.mxu3 }
 0x263   : > { %v1666_v20 = vpop.f32.mrf.mxu2 }
 0x264   : > { %v5824_v34 = vadd.f32 %v1666_v20, %v1517_v47  ;;  %v1590_v20 = vadd.f32 %v5610_v14, %v7145_v11  ;;  %v7146_v47 = vld [vmem:[#allocation43_spill] sm:$0xff]  ;;  %v7148_v11 = vld [vmem:[#allocation32_spill] sm:$0xff] }
 0x265   : > { %v1592_v14 = vadd.f32 %v5624_v62, %v7148_v11  ;;  %v7153_v62 = vld [vmem:[#allocation31_spill] sm:$0xff] }
 0x266   : > { %7140 = vst [vmem:[#allocation36_spill] sm:$0xff] %v5824_v34  ;;  %v5843_v9 = vpop.f32.mrf.mxu1 }
 0x267   : > { %4161 = vmatmul.msk.bf16.gmra.mxu3 %vm770_vm0, %v1038_v56 }
 0x268   : > { %4209 = vmatmul.msk.bf16.gmra.mxu2 %vm770_vm0, %v7144_v19  ;;  %4259 = vmatmul.msk.bf16.gmra.mxu0 %vm770_vm0, %v7146_v47  ;;  %v7147_v19 = vpack.c.bf16 %v5556_v27, %v5535_v10  ;;  %v7154_v10 = vld [vmem:[#allocation29_spill] sm:$0xff] }
 0x26a   : > { %v1738_v13 = vpop.f32.mrf.mxu3  ;;  %4191 = vmatmul.msk.bf16.gmra.mxu1 %vm770_vm0, %v7147_v19  ;;  %v7155_v19 = vpack.c.bf16 %v7153_v62, %v7154_v10 }
 0x26b   : > { %v2100_v23 = vpop.f32.mrf.mxu2  ;;  %v1818_v34 = vadd.f32 %v1738_v13, %v1590_v20  ;;  %v1214_v20 = vld [vmem:[#allocation2 + $0x1d0] sm:$0xff] }
 0x26c   : > { %v1234_v11 = vpack.c.bf16 %v1214_v20, %v5753_v1 }
 0x26d   : > { %v1999_v56 = vadd.f32 %v5671_v51, %v1818_v34  ;;  %v7150_v34 = vld [vmem:[#allocation27_spill] sm:$0xff] }
 0x26e   : > { %v5856_v13 = vpop.f32.mrf.mxu1 }
 0x26f   : > { %v5846_v7 = vadd.f32 %v2100_v23, %v1999_v56  ;;  %v7151_v23 = vld [vmem:[#allocation34_spill] sm:$0xff] }
 0x270   : > { %v5861_v56 = vpack.c.bf16 %v7151_v23, %v7150_v34  ;;  %v5875_v23 = vld [vmem:[#allocation2 + $0x260] sm:$0xff] }
 0x271   : > { %v1093_v10 = vpack.c.bf16 %v5875_v23, %v5580_v37 }
 0x272   : > { %v1740_v54 = vpop.f32.mrf.mxu3 }
 0x273   : > { %v2102_v58 = vpop.f32.mrf.mxu2  ;;  %v1819_v47 = vadd.f32 %v1740_v54, %v1592_v14  ;;  %v7156_v14 = vld [vmem:[#allocation37_spill] sm:$0xff] }
 0x274   : > { %v1595_v54 = vadd.f32 %v5642_v45, %v7156_v14  ;;  %v7159_v45 = vld [vmem:[#allocation41_spill] sm:$0xff] }
 0x275   : > { %v2000_v51 = vadd.f32 %v5688_v60, %v1819_v47  ;;  %v1597_v20 = vadd.f32 %v5653_v17, %v7159_v45  ;;  %v7165_v17 = vld [vmem:[#allocation35_spill] sm:$0xff] }
 0x277   : > { %v5863_v27 = vadd.f32 %v2102_v58, %v2000_v51  ;;  %4162 = vmatmul.msk.bf16.gmra.mxu3 %vm770_vm0, %v5861_v56  ;;  %v5877_v51 = vpop.f32.mrf.mxu0 }
 0x278   : > { %4210 = vmatmul.msk.bf16.gmra.mxu2 %vm770_vm0, %v7155_v19  ;;  %4260 = vmatmul.msk.bf16.gmra.mxu0 %vm770_vm0, %v1234_v11  ;;  %7157 = vst [vmem:[#allocation26_spill] sm:$0xff] %v5877_v51  ;;  %v7160_v51 = vld [vmem:[#allocation33_spill] sm:$0xff] }
 0x279   : > { %7152 = vst [vmem:[#allocation25_spill] sm:$0xff] %v5863_v27  ;;  %v5879_v27 = vpop.f32.mrf.mxu1 }
 0x27a   : > { %v1743_v60 = vpop.f32.mrf.mxu3  ;;  %4192 = vmatmul.msk.bf16.gmra.mxu1 %vm770_vm0, %v1093_v10  ;;  %v7167_v10 = vld [vmem:[#allocation44_spill] sm:$0xff] }
 0x27b   : > { %v2105_v47 = vpop.f32.mrf.mxu2  ;;  %v1820_v58 = vadd.f32 %v1743_v60, %v1595_v54  ;;  %v1600_v45 = vadd.f32 %v5676_v0, %v7167_v10  ;;  %v7170_v0 = vld [vmem:[#allocation46_spill] sm:$0xff] }
 0x27c   : > { %v1602_v10 = vadd.f32 %v5699_v55, %v7170_v0 }
 0x27d   : > { %v2001_v62 = vadd.f32 %v5705_v15, %v1820_v58  ;;  %v5894_v15 = vpack.c.bf16 %v7161_v5, %v7160_v51 }
 0x27f   : > { %v5884_v1 = vadd.f32 %v2105_v47, %v2001_v62  ;;  %v5896_v58 = vpop.f32.mrf.mxu0  ;;  %v7164_v47 = vld [vmem:[#allocation38_spill] sm:$0xff] }
 0x280   : > { %7162 = vst [vmem:[#allocation43_spill] sm:$0xff] %v5896_v58  ;;  %v7166_v62 = vpack.c.bf16 %v7164_v47, %v7165_v17  ;;  %v4437_v47 = vld [vmem:[%s6967_s4 + $0x80] sm:$0xff]  ;;  %v5923_v58 = vld [vmem:[#allocation2 + $0x1b2] sm:$0xff] }
 0x281   : > { %7158 = vst [vmem:[#allocation30_spill] sm:$0xff] %v5884_v1  ;;  %v5889_v54 = vpop.f32.mrf.mxu1  ;;  %2822 = vmatpush.bf16.msra.mxu2 %v4437_v47 }
 0x282   : > { %v1745_v19 = vpop.f32.mrf.mxu3  ;;  %7172 = vst [vmem:[#allocation29_spill] sm:$0xff] %v5923_v58 }
 0x283   : > { %v2107_v11 = vpop.f32.mrf.mxu2  ;;  %v1821_v14 = vadd.f32 %v1745_v19, %v1597_v20 }
 0x285   : > { %v2002_v60 = vadd.f32 %v5715_v46, %v1821_v14  ;;  %v7168_v46 = vld [vmem:[#allocation54_spill] sm:$0xff] }
 0x286   : > { %v1240_v14 = vld [vmem:[#allocation2 + $0x31] sm:$0xff] }
 0x287   : > { %v5898_v37 = vadd.f32 %v2107_v11, %v2002_v60  ;;  %4163 = vmatmul.msk.bf16.gmra.mxu3 %vm770_vm0, %v5894_v15  ;;  %v1239_v60 = vld [vmem:[#allocation2 + $0x21] sm:$0xff] }
 0x288   : > { %4211 = vmatmul.msk.bf16.gmra.mxu2 %vm770_vm0, %v7166_v62  ;;  %4261 = vmatmul.msk.bf16.gmra.mxu0 %vm770_vm0, %v7168_v46  ;;  %v1271_v17 = vpack.c.bf16 %v1240_v14, %v1239_v60  ;;  %v5921_v46 = vpop.f32.mrf.mxu0  ;;  %v7175_v60 = vld [vmem:[#allocation42_spill] sm:$0xff] }
 0x289   : > { %7163 = vst [vmem:[#allocation32_spill] sm:$0xff] %v5898_v37  ;;  %v5910_v11 = vpop.f32.mrf.mxu1 }
 0x28a   : > { %v1748_v20 = vpop.f32.mrf.mxu3  ;;  %4273 = vmatmul.msk.bf16.vlgmr.msra.gmra.mxu1 %vm770_vm0, %v1271_v17  ;;  %7171 = vst [vmem:[#allocation31_spill] sm:$0xff] %v5921_v46  ;;  %v7177_v17 = vld [vmem:[#allocation47_spill] sm:$0xff]  ;;  %v7180_v46 = vld [vmem:[#allocation49_spill] sm:$0xff] }
 0x28b   : > { %v2110_v19 = vpop.f32.mrf.mxu2  ;;  %v1822_v5 = vadd.f32 %v1748_v20, %v1600_v45  ;;  %v1605_v0 = vadd.f32 %v5711_v36, %v7177_v17  ;;  %v7179_v36 = vld [vmem:[#allocation53_spill] sm:$0xff] }
 0x28d   : > { %v2003_v37 = vadd.f32 %v5729_v35, %v1822_v5  ;;  %v5925_v35 = vld [vmem:[#allocation2 + $0x1c1] sm:$0xff] }
 0x28e   : > { %v1137_v55 = vpack.c.bf16 %v5925_v35, %v7175_v60 }
 0x28f   : > { %v5916_v62 = vadd.f32 %v2110_v19, %v2003_v37  ;;  %v7173_v19 = vld [vmem:[#allocation40_spill] sm:$0xff] }
 0x290   : > { %v5932_v14 = vpack.c.bf16 %v5923_v58, %v7173_v19 }
 0x291   : > { %7169 = vst [vmem:[#allocation27_spill] sm:$0xff] %v5916_v62  ;;  %v5927_v1 = vpop.f32.mrf.mxu1 }
 0x292   : > { %v1750_v45 = vpop.f32.mrf.mxu3  ;;  %7174 = vst [vmem:[#allocation37_spill] sm:$0xff] %v5932_v14 }
 0x293   : > { %v2112_v20 = vpop.f32.mrf.mxu2  ;;  %v1823_v5 = vadd.f32 %v1750_v45, %v1602_v10  ;;  %v5945_v45 = vpop.f32.mrf.mxu0 }
 0x294   : > { %7178 = vst [vmem:[#allocation33_spill] sm:$0xff] %v5945_v45 }
 0x295   : > { %v2004_v37 = vadd.f32 %v5737_v30, %v1823_v5  ;;  %v1242_v5 = vld [vmem:[#allocation2 + $0x51] sm:$0xff] }
 0x297   : > { %v5936_v47 = vadd.f32 %v2112_v20, %v2004_v37  ;;  %4164 = vmatmul.msk.bf16.gmra.mxu3 %vm770_vm0, %v5932_v14  ;;  %v1241_v20 = vld [vmem:[#allocation2 + $0x41] sm:$0xff] }
 0x298   : > { %4212 = vmatmul.msk.bf16.gmra.mxu2 %vm770_vm0, %v1137_v55  ;;  %4262 = vmatmul.msk.bf16.gmra.mxu0 %vm770_vm0, %v5544_v21  ;;  %v1607_v55 = vadd.f32 %v5727_v18, %v7179_v36  ;;  %v1022_v14 = vld [vmem:[#allocation2 + $0x1e2] sm:$0xff] }
 0x299   : > { %7176 = vst [vmem:[#allocation41_spill] sm:$0xff] %v5936_v47  ;;  %v5947_v60 = vpop.f32.mrf.mxu1  ;;  %v1272_v47 = vpack.c.bf16 %v1242_v5, %v1241_v20  ;;  %v7184_v18 = vld [vmem:[#allocation55_spill] sm:$0xff] }
 0x29a   : > { %v1753_v30 = vpop.f32.mrf.mxu3  ;;  %v1610_v20 = vadd.f32 %v5743_v63, %v7184_v18  ;;  %v1612_v63 = vadd.f32 %v5762_v22, %v5537_v49 }
 0x29b   : > { %v2115_v10 = vpop.f32.mrf.mxu2  ;;  %v1824_v58 = vadd.f32 %v1753_v30, %v1605_v0  ;;  %4274 = vmatmul.msk.bf16.gmra.mxu1 %vm770_vm0, %v1272_v47  ;;  %v5955_v45 = vpop.f32.mrf.mxu0  ;;  %v7181_v47 = vld [vmem:[#allocation48_spill] sm:$0xff] }
 0x29d   : > { %v2005_v37 = vadd.f32 %v5757_v32, %v1824_v58  ;;  %v1042_v32 = vpack.c.bf16 %v7180_v46, %v1022_v14 }
 0x29f   : > { %v5950_v62 = vadd.f32 %v2115_v10, %v2005_v37  ;;  %v7182_v10 = vld [vmem:[#allocation45_spill] sm:$0xff] }
 0x2a0   : > { %v7183_v5 = vpack.c.bf16 %v7181_v47, %v7182_v10 }
 0x2a1   : > { %v5957_v0 = vpop.f32.mrf.mxu1 }
 0x2a2   : > { %v1755_v21 = vpop.f32.mrf.mxu3 }
 0x2a3   : > { %v2117_v17 = vpop.f32.mrf.mxu2  ;;  %v1825_v19 = vadd.f32 %v1755_v21, %v1607_v55  ;;  %v1243_v55 = vld [vmem:[#allocation2 + $0x61] sm:$0xff] }
 0x2a5   : > { %v2006_v30 = vadd.f32 %v5766_v44, %v1825_v19  ;;  %v1244_v44 = vld [vmem:[#allocation2 + $0x71] sm:$0xff] }
 0x2a7   : > { %v5961_v58 = vadd.f32 %v2117_v17, %v2006_v30  ;;  %4165 = vmatmul.msk.bf16.gmra.mxu3 %vm770_vm0, %v1042_v32  ;;  %v1273_v17 = vpack.c.bf16 %v1244_v44, %v1243_v55  ;;  %v5975_v30 = vpop.f32.mrf.mxu0  ;;  %v7188_v55 = vld [vmem:[#allocation51_spill] sm:$0xff] }
 0x2a8   : > { %4213 = vmatmul.msk.bf16.gmra.mxu2 %vm770_vm0, %v7183_v5  ;;  %4263 = vmatmul.msk.bf16.gmra.mxu0 %vm770_vm0, %v5589_v2  ;;  %v1222_v5 = vld [vmem:[#allocation2 + $0x270] sm:$0xff] }
 0x2a9   : > { %v5972_v14 = vpop.f32.mrf.mxu1  ;;  %v1238_v22 = vpack.c.bf16 %v1222_v5, %v5875_v23 }
 0x2aa   : > { %v1758_v37 = vpop.f32.mrf.mxu3 }
 0x2ab   : > { %v2120_v36 = vpop.f32.mrf.mxu2  ;;  %v1826_v19 = vadd.f32 %v1758_v37, %v1610_v20  ;;  %4275 = vmatmul.msk.bf16.gmra.mxu1 %vm770_vm0, %v1273_v17  ;;  %v7185_v37 = vld [vmem:[#allocation50_spill] sm:$0xff] }
 0x2ad   : > { %v2007_v21 = vadd.f32 %v5784_v6, %v1826_v19  ;;  %v7186_v6 = vld [vmem:[#allocation57_spill] sm:$0xff] }
 0x2ae   : > { %v5987_v44 = vpack.c.bf16 %v7186_v6, %v7185_v37 }
 0x2af   : > { %v5977_v32 = vadd.f32 %v2120_v36, %v2007_v21  ;;  %v7187_v36 = vld [vmem:[#allocation56_spill] sm:$0xff]  ;;  %v7190_v21 = vld [vmem:[#allocation59_spill] sm:$0xff] }
 0x2b0   : > { %v7189_v49 = vpack.c.bf16 %v7187_v36, %v7188_v55  ;;  %v1615_v17 = vadd.f32 %v5780_v52, %v7190_v21  ;;  %v1617_v52 = vadd.f32 %v5796_v3, %v5582_v25  ;;  %v7193_v25 = vld [vmem:[#allocation62_spill] sm:$0xff] }
 0x2b1   : > { %v5982_v18 = vpop.f32.mrf.mxu1  ;;  %v1620_v3 = vadd.f32 %v5815_v28, %v7193_v25  ;;  %v6037_v28 = vld [vmem:[#allocation2 + $0x252] sm:$0xff] }
 0x2b2   : > { %v1760_v2 = vpop.f32.mrf.mxu3  ;;  %7195 = vst [vmem:[#allocation38_spill] sm:$0xff] %v6037_v28 }
 0x2b3   : > { %v2122_v47 = vpop.f32.mrf.mxu2  ;;  %v1827_v10 = vadd.f32 %v1760_v2, %v1612_v63 }
 0x2b5   : > { %v2008_v20 = vadd.f32 %v5798_v53, %v1827_v10  ;;  %v6000_v53 = vpop.f32.mrf.mxu0 }
 0x2b7   : > { %v5989_v19 = vadd.f32 %v2122_v47, %v2008_v20  ;;  %4166 = vmatmul.msk.bf16.gmra.mxu3 %vm770_vm0, %v5987_v44  ;;  %v1246_v47 = vld [vmem:[#allocation2 + $0x91] sm:$0xff] }
 0x2b8   : > { %4214 = vmatmul.msk.bf16.gmra.mxu2 %vm770_vm0, %v7189_v49  ;;  %4264 = vmatmul.msk.bf16.gmra.mxu0 %vm770_vm0, %v1238_v22  ;;  %v1274_v36 = vpack.c.bf16 %v1246_v47, %v5684_v29  ;;  %v7192_v29 = vpack.c.bf16 %v5566_v40, %v5533_v4  ;;  %v7194_v4 = vld [vmem:[#allocation63_spill] sm:$0xff] }
 0x2b9   : > { %v6003_v20 = vpop.f32.mrf.mxu1  ;;  %v1622_v40 = vadd.f32 %v5839_v24, %v7194_v4 }
 0x2ba   : > { %v1763_v63 = vpop.f32.mrf.mxu3 }
 0x2bb   : > { %v2125_v2 = vpop.f32.mrf.mxu2  ;;  %v1828_v10 = vadd.f32 %v1763_v63, %v1615_v17  ;;  %4276 = vmatmul.msk.bf16.gmra.mxu1 %vm770_vm0, %v1274_v36  ;;  %v7191_v17 = vld [vmem:[#allocation58_spill] sm:$0xff]  ;;  %v1247_v36 = vld [vmem:[#allocation2 + $0xc1] sm:$0xff] }
 0x2bc   : > { %v6017_v63 = vpack.c.bf16 %v5570_v8, %v7191_v17 }
 0x2bd   : > { %v2009_v6 = vadd.f32 %v5813_v31, %v1828_v10 }
 0x2bf   : > { %v6007_v55 = vadd.f32 %v2125_v2, %v2009_v6 }
 0x2c1   : > { %v6012_v22 = vpop.f32.mrf.mxu1 }
 0x2c2   : > { %v1765_v23 = vpop.f32.mrf.mxu3 }
 0x2c3   : > { %v2127_v5 = vpop.f32.mrf.mxu2  ;;  %v1829_v49 = vadd.f32 %v1765_v23, %v1617_v52 }
 0x2c5   : > { %v2010_v21 = vadd.f32 %v5826_v12, %v1829_v49  ;;  %v1248_v12 = vld [vmem:[#allocation2 + $0xd1] sm:$0xff] }
 0x2c6   : > { %v1275_v23 = vpack.c.bf16 %v1248_v12, %v1247_v36  ;;  %v7197_v12 = vld [vmem:[#allocation61_spill] sm:$0xff] }
 0x2c7   : > { %v6019_v31 = vadd.f32 %v2127_v5, %v2010_v21  ;;  %4167 = vmatmul.msk.bf16.gmra.mxu3 %vm770_vm0, %v6017_v63 }
 0x2c8   : > { %4215 = vmatmul.msk.bf16.gmra.mxu2 %vm770_vm0, %v7192_v29  ;;  %v6039_v29 = vld [vmem:[#allocation2 + $0x261] sm:$0xff] }
 0x2c9   : > { %v6029_v10 = vpop.f32.mrf.mxu1 }
 0x2ca   : > { %v1768_v6 = vpop.f32.mrf.mxu3 }
 0x2cb   : > { %v2130_v2 = vpop.f32.mrf.mxu2  ;;  %v1830_v47 = vadd.f32 %v1768_v6, %v1620_v3  ;;  %4277 = vmatmul.msk.bf16.gmra.mxu1 %vm770_vm0, %v1275_v23  ;;  %v1250_v23 = vld [vmem:[#allocation2 + $0xf1] sm:$0xff] }
 0x2cd   : > { %v2011_v52 = vadd.f32 %v5843_v9, %v1830_v47  ;;  %v7196_v9 = vld [vmem:[#allocation60_spill] sm:$0xff]  ;;  %v1141_v47 = vpack.c.bf16 %v6039_v29, %v7197_v12 }
 0x2cf   : > { %v6032_v5 = vadd.f32 %v2130_v2, %v2011_v52  ;;  %v6046_v2 = vpack.c.bf16 %v6037_v28, %v7196_v9 }
 0x2d1   : > { %v6041_v3 = vpop.f32.mrf.mxu1 }
 0x2d2   : > { %v1770_v49 = vpop.f32.mrf.mxu3 }
 0x2d3   : > { %v2132_v21 = vpop.f32.mrf.mxu2  ;;  %v1831_v25 = vadd.f32 %v1770_v49, %v1622_v40  ;;  %v1249_v40 = vld [vmem:[#allocation2 + $0xe1] sm:$0xff] }
 0x2d5   : > { %v2012_v6 = vadd.f32 %v5856_v13, %v1831_v25  ;;  %v1276_v25 = vpack.c.bf16 %v1250_v23, %v1249_v40 }
 0x2d7   : > { %v6050_v36 = vadd.f32 %v2132_v21, %v2012_v6  ;;  %4168 = vmatmul.msk.bf16.gmra.mxu3 %vm770_vm0, %v6046_v2  ;;  %v4442_v21 = vld [vmem:[%s6970_s7 + $0x18] sm:$0xff] }
 0x2d8   : > { %4216 = vmatmul.msk.bf16.gmra.mxu2 %vm770_vm0, %v1141_v47  ;;  %3230 = vmatpush.bf16.msrb.mxu3 %v4442_v21 }
 0x2d9   : > { %v6056_v13 = vpop.f32.mrf.mxu1 }
 0x2da   : > { %v1773_v24 = vpop.f32.mrf.mxu3 }
 0x2db   : > { %v2135_v52 = vpop.f32.mrf.mxu2  ;;  %v1832_v4 = vadd.f32 %v1773_v24, %v5621_v38  ;;  %4278 = vmatmul.msk.bf16.gmra.mxu1 %vm770_vm0, %v1276_v25 }
 0x2dd   : > { %v2013_v49 = vadd.f32 %v5879_v27, %v1832_v4  ;;  %v4440_v27 = vld [vmem:[%s6970_s7 + $0x8] sm:$0xff]  ;;  %v7198_v4 = vld [vmem:[#allocation15_spill] sm:$0xff] }
 0x2de   : > { %v7199_v40 = vpack.c.bf16 %v5012_v61, %v7198_v4  ;;  %3334 = vmatpush.bf16.msrb.mxu0 %v4440_v27 }
 0x2df   : > { %v6059_v28 = vadd.f32 %v2135_v52, %v2013_v49  ;;  %v4444_v52 = vld [vmem:[%s6970_s7 + $0x28] sm:$0xff]  ;;  %v1252_v49 = vld [vmem:[#allocation2 + $0x111] sm:$0xff] }
 0x2e0   : > { %3441 = vmatpush.bf16.msrb.mxu1 %v4444_v52 }
 0x2e1   : > { %v6066_v38 = vpop.f32.mrf.mxu1 }
 0x2e2   : > { %v1775_v6 = vpop.f32.mrf.mxu3 }
 0x2e3   : > { %v2137_v12 = vpop.f32.mrf.mxu2  ;;  %v1833_v47 = vadd.f32 %v1775_v6, %v5630_v16  ;;  %v1251_v6 = vld [vmem:[#allocation2 + $0x101] sm:$0xff] }
 0x2e5   : > { %v2014_v24 = vadd.f32 %v5889_v54, %v1833_v47  ;;  %v1277_v47 = vpack.c.bf16 %v1252_v49, %v1251_v6  ;;  %v1254_v49 = vld [vmem:[#allocation2 + $0x131] sm:$0xff] }
 0x2e7   : > { %v6075_v23 = vadd.f32 %v2137_v12, %v2014_v24  ;;  %4225 = vmatmul.msk.bf16.vlgmr.msra.gmra.mxu3 %vm770_vm0, %v7199_v40 }
 0x2e8   : > { %4297 = vmatmul.msk.bf16.vlgmr.msra.gmra.mxu2 %vm770_vm0, %v5628_v59 }
 0x2e9   : > { %v6084_v21 = vpop.f32.mrf.mxu1 }
 0x2ea   : > { %v1778_v16 = vpop.f32.mrf.mxu3 }
 0x2eb   : > { %v2140_v54 = vpop.f32.mrf.mxu2  ;;  %v1834_v25 = vadd.f32 %v1778_v16, %v5648_v39  ;;  %4279 = vmatmul.msk.bf16.gmra.mxu1 %vm770_vm0, %v1277_v47  ;;  %v7202_v39 = vld [vmem:[#allocation16_spill] sm:$0xff] }
 0x2ec   : > { %v7203_v16 = vpack.c.bf16 %v5129_v41, %v7202_v39 }
 0x2ed   : > { %v2015_v12 = vadd.f32 %v5910_v11, %v1834_v25 }
 0x2ef   : > { %v6087_v24 = vadd.f32 %v2140_v54, %v2015_v12 }
 0x2f1   : > { %7200 = vst [vmem:[#allocation35_spill] sm:$0xff] %v6087_v24  ;;  %v6091_v27 = vpop.f32.mrf.mxu1  ;;  %v7243_v24 = vld [vmem:[#allocation76_spill] sm:$0xff] }
 0x2f2   : > { %v1780_v61 = vpop.f32.mrf.mxu3 }
 0x2f3   : > { %v2142_v4 = vpop.f32.mrf.mxu2  ;;  %v1835_v59 = vadd.f32 %v1780_v61, %v5659_v57  ;;  %v6110_v61 = vpop.f32.mrf.mxu0 }
 0x2f5   : > { %v2016_v52 = vadd.f32 %v5927_v1, %v1835_v59  ;;  %v1278_v1 = vpack.c.bf16 %v1254_v49, %v5792_v50  ;;  %v7208_v50 = vld [vmem:[#allocation67_spill] sm:$0xff] }
 0x2f7   : > { %v6094_v40 = vadd.f32 %v2142_v4, %v2016_v52  ;;  %4226 = vmatmul.msk.bf16.gmra.mxu3 %vm770_vm0, %v7203_v16 }
 0x2f8   : > { %4298 = vmatmul.msk.bf16.gmra.mxu2 %vm770_vm0, %v5657_v26 }
 0x2f9   : > { %7201 = vst [vmem:[#allocation44_spill] sm:$0xff] %v6094_v40  ;;  %v6103_v57 = vpop.f32.mrf.mxu1 }
 0x2fa   : > { %v1783_v11 = vpop.f32.mrf.mxu3 }
 0x2fb   : > { %v2145_v54 = vpop.f32.mrf.mxu2  ;;  %v1836_v25 = vadd.f32 %v1783_v11, %v5640_v42  ;;  %4280 = vmatmul.msk.bf16.gmra.mxu1 %vm770_vm0, %v1278_v1  ;;  %v1256_v11 = vld [vmem:[#allocation2 + $0x171] sm:$0xff] }
 0x2fd   : > { %v2017_v6 = vadd.f32 %v5947_v60, %v1836_v25  ;;  %v7206_v60 = vld [vmem:[#allocation17_spill] sm:$0xff] }
 0x2fe   : > { %v7207_v52 = vpack.c.bf16 %v5142_v48, %v7206_v60  ;;  %v7211_v60 = vld [vmem:[#allocation66_spill] sm:$0xff] }
 0x2ff   : > { %v6107_v12 = vadd.f32 %v2145_v54, %v2017_v6  ;;  %v7209_v54 = vld [vmem:[#allocation64_spill] sm:$0xff] }
 0x301   : > { %7204 = vst [vmem:[#allocation54_spill] sm:$0xff] %v6107_v12  ;;  %v6113_v4 = vpop.f32.mrf.mxu1 }
 0x302   : > { %v1785_v41 = vpop.f32.mrf.mxu3 }
 0x303   : > { %v2147_v47 = vpop.f32.mrf.mxu2  ;;  %v1837_v26 = vadd.f32 %v1785_v41, %v5651_v33  ;;  %v6125_v33 = vpop.f32.mrf.mxu0 }
 0x305   : > { %v2018_v42 = vadd.f32 %v5957_v0, %v1837_v26  ;;  %v1255_v0 = vld [vmem:[#allocation2 + $0x161] sm:$0xff] }
 0x306   : > { %v1279_v1 = vpack.c.bf16 %v1256_v11, %v1255_v0  ;;  %v1149_v26 = vld [vmem:[#allocation2 + $0x82] sm:$0xff] }
 0x307   : > { %v6116_v59 = vadd.f32 %v2147_v47, %v2018_v42  ;;  %4227 = vmatmul.msk.bf16.gmra.mxu3 %vm770_vm0, %v7207_v52  ;;  %v1294_v42 = vld [vmem:[#allocation2 + $0x92] sm:$0xff] }
 0x308   : > { %4299 = vmatmul.msk.bf16.gmra.mxu2 %vm770_vm0, %v7208_v50  ;;  %v1322_v12 = vpack.c.bf16 %v1294_v42, %v1149_v26 }
 0x309   : > { %7205 = vst [vmem:[#allocation46_spill] sm:$0xff] %v6116_v59  ;;  %v6127_v25 = vpop.f32.mrf.mxu1 }
 0x30a   : > { %v1788_v39 = vpop.f32.mrf.mxu3 }
 0x30b   : > { %v2150_v16 = vpop.f32.mrf.mxu2  ;;  %v1838_v49 = vadd.f32 %v1788_v39, %v7209_v54  ;;  %4281 = vmatmul.msk.bf16.gmra.mxu1 %vm770_vm0, %v1279_v1  ;;  %v7212_v54 = vld [vmem:[#allocation65_spill] sm:$0xff]  ;;  %v6138_v40 = vpop.f32.mrf.mxu0  ;;  %v1257_v1 = vld [vmem:[#allocation2 + $0x181] sm:$0xff] }
 0x30c   : > { %v1177_v59 = vpack.c.bf16 %v1149_v26, %v7212_v54  ;;  %v7217_v54 = vld [vmem:[#allocation18_spill] sm:$0xff] }
 0x30d   : > { %v2019_v6 = vadd.f32 %v5972_v14, %v1838_v49  ;;  %v1258_v49 = vld [vmem:[#allocation2 + $0x191] sm:$0xff] }
 0x30f   : > { %v6130_v41 = vadd.f32 %v2150_v16, %v2019_v6 }
 0x311   : > { %7210 = vst [vmem:[#allocation42_spill] sm:$0xff] %v6130_v41  ;;  %v6134_v50 = vpop.f32.mrf.mxu1  ;;  %v7242_v41 = vld [vmem:[#allocation77_spill] sm:$0xff] }
 0x312   : > { %v1790_v48 = vpop.f32.mrf.mxu3 }
 0x313   : > { %v2152_v47 = vpop.f32.mrf.mxu2  ;;  %v1839_v52 = vadd.f32 %v1790_v48, %v7211_v60  ;;  %v1280_v48 = vpack.c.bf16 %v1258_v49, %v1257_v1 }
 0x315   : > { %v2020_v39 = vadd.f32 %v5982_v18, %v1839_v52 }
 0x317   : > { %v6140_v14 = vadd.f32 %v2152_v47, %v2020_v39  ;;  %4228 = vmatmul.msk.bf16.gmra.mxu3 %vm770_vm0, %v1177_v59  ;;  %v6151_v47 = vpop.f32.mrf.mxu0 }
 0x318   : > { %4300 = vmatmul.msk.bf16.gmra.mxu2 %vm770_vm0, %v1322_v12  ;;  %v7215_v12 = vld [vmem:[#allocation68_spill] sm:$0xff] }
 0x319   : > { %7213 = vst [vmem:[#allocation47_spill] sm:$0xff] %v6140_v14  ;;  %v6145_v6 = vpop.f32.mrf.mxu1 }
 0x31a   : > { %v1793_v16 = vpop.f32.mrf.mxu3 }
 0x31b   : > { %v2155_v11 = vpop.f32.mrf.mxu2  ;;  %v1840_v0 = vadd.f32 %v1793_v16, %v5703_v43  ;;  %4282 = vmatmul.msk.bf16.gmra.mxu1 %vm770_vm0, %v1280_v48  ;;  %v7218_v16 = vld [vmem:[#allocation19_spill] sm:$0xff]  ;;  %v7221_v48 = vld [vmem:[#allocation69_spill] sm:$0xff] }
 0x31d   : > { %v2021_v18 = vadd.f32 %v6003_v20, %v1840_v0  ;;  %v7219_v20 = vpack.c.bf16 %v7217_v54, %v7218_v16 }
 0x31f   : > { %v6148_v26 = vadd.f32 %v2155_v11, %v2021_v18  ;;  %v7220_v11 = vld [vmem:[#allocation71_spill] sm:$0xff]  ;;  %v6165_v1 = vpop.f32.mrf.mxu0  ;;  %v1260_v18 = vld [vmem:[#allocation2 + $0x1b1] sm:$0xff] }
 0x321   : > { %7214 = vst [vmem:[#allocation53_spill] sm:$0xff] %v6148_v26  ;;  %v6154_v52 = vpop.f32.mrf.mxu1 }
 0x322   : > { %v1795_v59 = vpop.f32.mrf.mxu3 }
 0x323   : > { %v2157_v42 = vpop.f32.mrf.mxu2  ;;  %v1841_v60 = vadd.f32 %v1795_v59, %v7215_v12  ;;  %v1259_v12 = vld [vmem:[#allocation2 + $0x1a1] sm:$0xff] }
 0x325   : > { %v2022_v43 = vadd.f32 %v6012_v22, %v1841_v60 }
 0x327   : > { %v6157_v39 = vadd.f32 %v2157_v42, %v2022_v43  ;;  %4229 = vmatmul.msk.bf16.gmra.mxu3 %vm770_vm0, %v7219_v20  ;;  %v1281_v42 = vpack.c.bf16 %v1260_v18, %v1259_v12  ;;  %v7223_v20 = vld [vmem:[#allocation70_spill] sm:$0xff] }
 0x328   : > { %4301 = vmatmul.msk.bf16.gmra.mxu2 %vm770_vm0, %v7220_v11  ;;  %v7228_v18 = vld [vmem:[#allocation74_spill] sm:$0xff] }
 0x329   : > { %7216 = vst [vmem:[#allocation49_spill] sm:$0xff] %v6157_v39  ;;  %v6169_v60 = vpop.f32.mrf.mxu1  ;;  %v6175_v39 = vpop.f32.mrf.mxu0 }
 0x32a   : > { %v1798_v49 = vpop.f32.mrf.mxu3 }
 0x32b   : > { %v2160_v0 = vpop.f32.mrf.mxu2  ;;  %v1842_v59 = vadd.f32 %v1798_v49, %v7221_v48  ;;  %4283 = vmatmul.msk.bf16.gmra.mxu1 %vm770_vm0, %v1281_v42  ;;  %v7225_v49 = vld [vmem:[#allocation20_spill] sm:$0xff]  ;;  %v7226_v48 = vld [vmem:[#allocation21_spill] sm:$0xff] }
 0x32c   : > { %v7229_v42 = vld [vmem:[#allocation72_spill] sm:$0xff] }
 0x32d   : > { %v2023_v22 = vadd.f32 %v6029_v10, %v1842_v59  ;;  %v7227_v10 = vpack.c.bf16 %v7225_v49, %v7226_v48 }
 0x32f   : > { %v6171_v43 = vadd.f32 %v2160_v0, %v2023_v22  ;;  %v1262_v22 = vld [vmem:[#allocation2 + $0x1d1] sm:$0xff] }
 0x331   : > { %7222 = vst [vmem:[#allocation48_spill] sm:$0xff] %v6171_v43  ;;  %v6186_v0 = vpop.f32.mrf.mxu1 }
 0x332   : > { %v1800_v54 = vpop.f32.mrf.mxu3 }
 0x333   : > { %v2162_v16 = vpop.f32.mrf.mxu2  ;;  %v1843_v11 = vadd.f32 %v1800_v54, %v7223_v20 }
 0x335   : > { %v2024_v26 = vadd.f32 %v6041_v3, %v1843_v11  ;;  %v4439_v3 = vld [vmem:[%s6970_s7] sm:$0xff] }
 0x336   : > { %3335 = vmatpush.bf16.msrb.mxu0 %v4439_v3 }
 0x337   : > { %v6178_v14 = vadd.f32 %v2162_v16, %v2024_v26  ;;  %4230 = vmatmul.msk.bf16.gmra.mxu3 %vm770_vm0, %v7227_v10  ;;  %v1282_v26 = vpack.c.bf16 %v1262_v22, %v5925_v35  ;;  %v6194_v16 = vpop.f32.mrf.mxu0  ;;  %v7043_v10 = vmov 0   ;;  %v7233_v35 = vld [vmem:[#allocation22_spill] sm:$0xff]  ;;  %v7234_v22 = vld [vmem:[#allocation23_spill] sm:$0xff] }
 0x338   : > { %4302 = vmatmul.msk.bf16.gmra.mxu2 %vm770_vm0, %v7228_v18 }
 0x339   : > { %7224 = vst [vmem:[#allocation45_spill] sm:$0xff] %v6178_v14  ;;  %3336 = vmatmul.bf16.vlgmr.msrb.gmra.mxu0 %v7043_v10  ;;  %v6200_v18 = vpop.f32.mrf.mxu1  ;;  %v7238_v14 = vld [vmem:[#allocation75_spill] sm:$0xff] }
 0x33a   : > { %v1803_v59 = vpop.f32.mrf.mxu3 }
 0x33b   : > { %v2165_v12 = vpop.f32.mrf.mxu2  ;;  %v1844_v54 = vadd.f32 %v1803_v59, %v7229_v42  ;;  %4284 = vmatmul.msk.bf16.gmra.mxu1 %vm770_vm0, %v1282_v26 }
 0x33d   : > { %v2025_v20 = vadd.f32 %v6056_v13, %v1844_v54  ;;  %v7231_v13 = vld [vmem:[#allocation73_spill] sm:$0xff] }
 0x33f   : > { %v6196_v11 = vadd.f32 %v2165_v12, %v2025_v20  ;;  %v7235_v12 = vpack.c.bf16 %v7233_v35, %v7234_v22  ;;  %v7236_v20 = vld [vmem:[#allocation78_spill] sm:$0xff]  ;;  %v6212_v3 = vpop.f32.mrf.mxu0  ;;  %v1157_v22 = vld [vmem:[#allocation2 + $0x122] sm:$0xff] }
 0x340   : > { %7237 = vst [vmem:[#allocation56_spill] sm:$0xff] %v6212_v3  ;;  %v1181_v3 = vpack.c.bf16 %v1157_v22, %v7243_v24 }
 0x341   : > { %7230 = vst [vmem:[#allocation55_spill] sm:$0xff] %v6196_v11  ;;  %v1264_v11 = vld [vmem:[#allocation2 + $0x211] sm:$0xff] }
 0x342   : > { %v1805_v49 = vpop.f32.mrf.mxu3 }
 0x343   : > { %v2167_v48 = vpop.f32.mrf.mxu2  ;;  %v1845_v59 = vadd.f32 %v1805_v49, %v7231_v13  ;;  %v6215_v49 = vpop.f32.mrf.mxu1 }
 0x345   : > { %v2026_v42 = vadd.f32 %v6066_v38, %v1845_v59  ;;  %v1263_v38 = vld [vmem:[#allocation2 + $0x201] sm:$0xff] }
 0x346   : > { %v1283_v13 = vpack.c.bf16 %v1264_v11, %v1263_v38 }
 0x347   : > { %v6204_v54 = vadd.f32 %v2167_v48, %v2026_v42  ;;  %4231 = vmatmul.msk.bf16.gmra.mxu3 %vm770_vm0, %v7235_v12  ;;  %v1302_v12 = vld [vmem:[#allocation2 + $0x132] sm:$0xff] }
 0x348   : > { %4303 = vmatmul.msk.bf16.gmra.mxu2 %vm770_vm0, %v7236_v20  ;;  %v7240_v20 = vmov 0  }
 0x349   : > { %7232 = vst [vmem:[#allocation50_spill] sm:$0xff] %v6204_v54  ;;  %3341 = vmatmul.bf16.gmra.mxu0 %v7240_v20  ;;  %v6222_v54 = vpop.f32.mrf.mxu0 }
 0x34a   : > { %v1808_v26 = vpop.f32.mrf.mxu3  ;;  %7241 = vst [vmem:[#allocation59_spill] sm:$0xff] %v6222_v54 }
 0x34b   : > { %v2170_v10 = vpop.f32.mrf.mxu2  ;;  %v1846_v43 = vadd.f32 %v1808_v26, %v7238_v14  ;;  %4285 = vmatmul.msk.bf16.gmra.mxu1 %vm770_vm0, %v1283_v13  ;;  %v7245_v13 = vld [vmem:[#allocation24_spill] sm:$0xff] }
 0x34d   : > { %v2027_v48 = vadd.f32 %v6084_v21, %v1846_v43  ;;  %v1326_v21 = vpack.c.bf16 %v1302_v12, %v1157_v22  ;;  %v6227_v43 = vpop.f32.mrf.mxu1 }
 0x34f   : > { %v6218_v59 = vadd.f32 %v2170_v10, %v2027_v48  ;;  %v1266_v48 = vld [vmem:[#allocation2 + $0x231] sm:$0xff] }
 0x351   : > { %7239 = vst [vmem:[#allocation51_spill] sm:$0xff] %v6218_v59  ;;  %v6234_v54 = vpop.f32.mrf.mxu0 }
 0x352   : > { %v1810_v42 = vpop.f32.mrf.mxu3 }
 0x353   : > { %v2172_v35 = vpop.f32.mrf.mxu2  ;;  %v1847_v14 = vadd.f32 %v1810_v42, %v7242_v41  ;;  %v1265_v41 = vld [vmem:[#allocation2 + $0x221] sm:$0xff] }
 0x354   : > { %v1284_v24 = vpack.c.bf16 %v1266_v48, %v1265_v41 }
 0x355   : > { %v2028_v26 = vadd.f32 %v6091_v27, %v1847_v14  ;;  %v7247_v14 = vld [vmem:[#allocation36_spill] sm:$0xff] }
 0x357   : > { %v6229_v11 = vadd.f32 %v2172_v35, %v2028_v26  ;;  %4232 = vmatmul.msk.bf16.gmra.mxu3 %vm770_vm0, %v1181_v3  ;;  %v4441_v3 = vld [vmem:[%s6970_s7 + $0x10] sm:$0xff]  ;;  %v6243_v35 = vpop.f32.mrf.mxu1 }
 0x358   : > { %4304 = vmatmul.msk.bf16.gmra.mxu2 %vm770_vm0, %v1326_v21  ;;  %3231 = vmatpush.bf16.msrb.mxu3 %v4441_v3  ;;  %v1267_v3 = vld [vmem:[#allocation2 + $0x241] sm:$0xff] }
 0x359   : > { %7244 = vst [vmem:[#allocation58_spill] sm:$0xff] %v6229_v11  ;;  %3346 = vmatmul.bf16.gmra.mxu0 %v7240_v20  ;;  %v6251_v21 = vpop.f32.mrf.mxu0 }
 0x35a   : > { %v1813_v10 = vpop.f32.mrf.mxu3 }
 0x35b   : > { %v2175_v38 = vpop.f32.mrf.mxu2  ;;  %v1848_v59 = vadd.f32 %v1813_v10, %v7245_v13  ;;  %4286 = vmatmul.msk.bf16.gmra.mxu1 %vm770_vm0, %v1284_v24 }
 0x35d   : > { %v2029_v27 = vadd.f32 %v6103_v57, %v1848_v59  ;;  %v4443_v59 = vld [vmem:[%s6970_s7 + $0x20] sm:$0xff] }
 0x35e   : > { %3442 = vmatpush.bf16.msrb.mxu1 %v4443_v59 }
 0x35f   : > { %v6237_v42 = vadd.f32 %v2175_v38, %v2029_v27  ;;  %v7249_v38 = vld [vmem:[#allocation28_spill] sm:$0xff]  ;;  %v1268_v27 = vld [vmem:[#allocation2 + $0x251] sm:$0xff] }
 0x360   : > { %v7250_v48 = vpack.c.bf16 %v7150_v34, %v7249_v38  ;;  %v6269_v34 = vld [vmem:[%s6968_s5] ss:$0 sm:$0xff] }
 0x361   : > { %7246 = vst [vmem:[#allocation62_spill] sm:$0xff] %v6237_v42 }
 0x362   : > { %v1815_v22 = vpop.f32.mrf.mxu3 }
 0x363   : > { %v2177_v12 = vpop.f32.mrf.mxu2  ;;  %v1849_v26 = vadd.f32 %v1815_v22, %v7247_v14  ;;  %v7251_v22 = vld [vmem:[#allocation52_spill] sm:$0xff]  ;;  %v1285_v14 = vpack.c.bf16 %v1268_v27, %v1267_v3 }
 0x365   : > { %v2030_v57 = vadd.f32 %v6113_v4, %v1849_v26  ;;  %v6261_v4 = vpop.f32.mrf.mxu1 }
 0x367   : > { %v6253_v10 = vadd.f32 %v2177_v12, %v2030_v57  ;;  %4233 = vmatmul.msk.bf16.gmra.mxu3 %vm770_vm0, %v7250_v48  ;;  %v7253_v48 = vld [vmem:[#allocation25_spill] sm:$0xff] }
 0x368   : > { %4305 = vmatmul.msk.bf16.gmra.mxu2 %vm770_vm0, %v5861_v56  ;;  %v6272_v56 = vpop.f32.mrf.mxu0 }
 0x369   : > { %7248 = vst [vmem:[#allocation63_spill] sm:$0xff] %v6253_v10  ;;  %3351 = vmatmul.bf16.gmra.mxu0 %v7240_v20  ;;  %v7258_v10 = vld [vmem:[#allocation30_spill] sm:$0xff] }
 0x36a   : > { %v2281_v13 = vpop.f32.mrf.mxu3  ;;  %7252 = vst [vmem:[#allocation60_spill] sm:$0xff] %v6272_v56 }
 0x36b   : > { %v2824_v41 = vpop.f32.mrf.mxu2  ;;  %v2361_v24 = vadd.f32 %v2281_v13, %v5846_v7  ;;  %4287 = vmatmul.msk.bf16.gmra.mxu1 %vm770_vm0, %v1285_v14  ;;  %v7255_v14 = vld [vmem:[#allocation34_spill] sm:$0xff] }
 0x36d   : > { %v2542_v12 = vadd.f32 %v7251_v22, %v2361_v24  ;;  %v6282_v27 = vpop.f32.mrf.mxu1  ;;  %v7254_v24 = vld [vmem:[#allocation26_spill] sm:$0xff] }
 0x36f   : > { %v2723_v26 = vadd.f32 %v6127_v25, %v2542_v12  ;;  %v6279_v25 = vld [vmem:[%s6969_s6] ss:$0 sm:$0xff] }
 0x371   : > { %v2904_v57 = vadd.f32 %v2824_v41, %v2723_v26  ;;  %v4446_v41 = vld [vmem:[%s6973_s10 + $0x8] sm:$0xff]  ;;  %v7256_v26 = vpack.c.bf16 %v7160_v51, %v7255_v14  ;;  %v7259_v51 = vld [vmem:[#allocation43_spill] sm:$0xff] }
 0x372   : > { %v2283_v59 = vpop.f32.mrf.mxu3  ;;  %3714 = vmatpush.bf16.msrb.mxu2 %v4446_v41 }
 0x373   : > { %v2826_v38 = vpop.f32.mrf.mxu2  ;;  %v2940_v7 = vmul.f32 %v6269_v34, %v2904_v57  ;;  %v2362_v13 = vadd.f32 %v2283_v59, %v7253_v48 }
 0x375   : > { %v2543_v3 = vadd.f32 %v7254_v24, %v2362_v13  ;;  %v2976_v22 = vadd.f32 %v6279_v25, %v2940_v7  ;;  %v6296_v13 = vpop.f32.mrf.mxu0  ;;  %v1270_v24 = vld [vmem:[#allocation2 + $0x271] sm:$0xff]  ;;  %v6303_v42 = vpop.f32.mrf.mxu1 }
 0x376   : > { %7257 = vst [vmem:[#allocation61_spill] sm:$0xff] %v6296_v13 }
 0x377   : > { %v2724_v12 = vadd.f32 %v6134_v50, %v2543_v3  ;;  %4234 = vmatmul.msk.bf16.gmra.mxu3 %vm770_vm0, %v7256_v26  ;;  %v3008_v20 = vmax.f32 %v2976_v22, 0.0  ;;  %v1286_v26 = vpack.c.bf16 %v1270_v24, %v6039_v29  ;;  %v7262_v29 = vld [vmem:[#allocation31_spill] sm:$0xff] }
 0x378   : > { %4306 = vmatmul.msk.bf16.gmra.mxu2 %vm770_vm0, %v5894_v15 }
 0x379   : > { %v2905_v57 = vadd.f32 %v2826_v38, %v2724_v12  ;;  %v3040_v15 = vpack.c.bf16 %v3008_v20, %v3008_v20 }
 0x37a   : > { %v2286_v59 = vpop.f32.mrf.mxu3 }
 0x37b   : > { %v2829_v48 = vpop.f32.mrf.mxu2  ;;  %v2941_v7 = vmul.f32 %v6269_v34, %v2905_v57  ;;  %v2363_v50 = vadd.f32 %v2286_v59, %v7258_v10  ;;  %4288 = vmatmul.msk.bf16.gmra.mxu1 %vm770_vm0, %v1286_v26  ;;  %v3096_v13 = vunpack.c.l.b16 %v3040_v15  ;;  %v7266_v15 = vld [vmem:[#allocation37_spill] sm:$0xff] }
 0x37d   : > { %v2977_v3 = vadd.f32 %v6279_v25, %v2941_v7  ;;  %v2544_v14 = vadd.f32 %v7259_v51, %v2363_v50  ;;  %v7260_v7 = vld [vmem:[#allocation32_spill] sm:$0xff]  ;;  %v6309_v51 = vpop.f32.mrf.mxu0 }
 0x37e   : > { %7261 = vst [vmem:[#allocation15_spill] sm:$0xff] %v6309_v51  ;;  %v1165_v51 = vld [vmem:[#allocation2 + $0x1c2] sm:$0xff] }
 0x37f   : > { %v3009_v38 = vmax.f32 %v2977_v3, 0.0  ;;  %v2725_v41 = vadd.f32 %v6145_v6, %v2544_v14  ;;  %v7263_v14 = vld [vmem:[#allocation40_spill] sm:$0xff] }
 0x381   : > { %v3041_v12 = vpack.c.bf16 %v3009_v38, %v3009_v38  ;;  %v2906_v22 = vadd.f32 %v2829_v48, %v2725_v41  ;;  %v7264_v48 = vld [vmem:[#allocation39_spill] sm:$0xff] }
 0x382   : > { %v2288_v11 = vpop.f32.mrf.mxu3  ;;  %v7265_v26 = vpack.c.bf16 %v7263_v14, %v7264_v48 }
 0x383   : > { %v2831_v57 = vpop.f32.mrf.mxu2  ;;  %v3097_v10 = vunpack.c.l.b16 %v3041_v12  ;;  %v2942_v59 = vmul.f32 %v6269_v34, %v2906_v22  ;;  %v2364_v50 = vadd.f32 %v2288_v11, %v7260_v7  ;;  %v6324_v11 = vpop.f32.mrf.mxu1  ;;  %v7268_v7 = vld [vmem:[#allocation33_spill] sm:$0xff] }
 0x385   : > { %v2545_v24 = vadd.f32 %v7262_v29, %v2364_v50  ;;  %v6312_v20 = vpack.c.b16 %v3097_v10, %v3096_v13  ;;  %v2978_v6 = vadd.f32 %v6279_v25, %v2942_v59  ;;  %v6330_v29 = vpop.f32.mrf.mxu0 }
 0x386   : > { %7269 = vst [vmem:[#allocation16_spill] sm:$0xff] %v6330_v29 }
 0x387   : > { %v2726_v3 = vadd.f32 %v6154_v52, %v2545_v24  ;;  %4235 = vmatmul.msk.bf16.gmra.mxu3 %vm770_vm0, %v7265_v26  ;;  %4345 = vmatmul.msk.bf16.gmra.mxu0 %vm770_vm0, %v6312_v20  ;;  %v3010_v12 = vmax.f32 %v2978_v6, 0.0  ;;  %v7267_v52 = vld [vmem:[#allocation27_spill] sm:$0xff]  ;;  %v1310_v6 = vld [vmem:[#allocation2 + $0x1d2] sm:$0xff] }
 0x388   : > { %4307 = vmatmul.msk.bf16.gmra.mxu2 %vm770_vm0, %v7266_v15  ;;  %v1330_v29 = vpack.c.bf16 %v1310_v6, %v1165_v51 }
 0x389   : > { %v2907_v38 = vadd.f32 %v2831_v57, %v2726_v3  ;;  %v3042_v24 = vpack.c.bf16 %v3010_v12, %v3010_v12  ;;  %v7271_v12 = vld [vmem:[#allocation29_spill] sm:$0xff] }
 0x38a   : > { %v2291_v13 = vpop.f32.mrf.mxu3 }
 0x38b   : > { %v2834_v41 = vpop.f32.mrf.mxu2  ;;  %v2943_v22 = vmul.f32 %v6269_v34, %v2907_v38  ;;  %v2365_v10 = vadd.f32 %v2291_v13, %v7267_v52  ;;  %v6333_v56 = vpop.f32.mrf.mxu1  ;;  %v3098_v38 = vunpack.c.l.b16 %v3042_v24  ;;  %v7270_v52 = vld [vmem:[#allocation41_spill] sm:$0xff] }
 0x38d   : > { %v2979_v59 = vadd.f32 %v6279_v25, %v2943_v22  ;;  %v2546_v50 = vadd.f32 %v7268_v7, %v2365_v10  ;;  %v6347_v24 = vpop.f32.mrf.mxu0 }
 0x38f   : > { %v3011_v14 = vmax.f32 %v2979_v59, 0.0  ;;  %v2727_v48 = vadd.f32 %v6169_v60, %v2546_v50  ;;  %v1185_v59 = vpack.c.bf16 %v1165_v51, %v7271_v12 }
 0x391   : > { %v3043_v26 = vpack.c.bf16 %v3011_v14, %v3011_v14  ;;  %v2908_v15 = vadd.f32 %v2834_v41, %v2727_v48 }
 0x392   : > { %v2293_v57 = vpop.f32.mrf.mxu3 }
 0x393   : > { %v2836_v3 = vpop.f32.mrf.mxu2  ;;  %v3099_v13 = vunpack.c.l.b16 %v3043_v26  ;;  %v2944_v22 = vmul.f32 %v6269_v34, %v2908_v15  ;;  %v2366_v10 = vadd.f32 %v2293_v57, %v7270_v52  ;;  %v6351_v57 = vpop.f32.mrf.mxu1 }
 0x395   : > { %v2547_v7 = vadd.f32 %v5955_v45, %v2366_v10  ;;  %v6339_v60 = vpack.c.b16 %v3099_v13, %v3098_v38  ;;  %v2980_v41 = vadd.f32 %v6279_v25, %v2944_v22 }
 0x397   : > { %v2728_v50 = vadd.f32 %v6186_v0, %v2547_v7  ;;  %4236 = vmatmul.msk.bf16.gmra.mxu3 %vm770_vm0, %v1185_v59  ;;  %4346 = vmatmul.msk.bf16.gmra.mxu0 %vm770_vm0, %v6339_v60  ;;  %v3012_v26 = vmax.f32 %v2980_v41, 0.0  ;;  %v6356_v7 = vpop.f32.mrf.mxu0 }
 0x398   : > { %4308 = vmatmul.msk.bf16.gmra.mxu2 %vm770_vm0, %v1330_v29 }
 0x399   : > { %v2909_v14 = vadd.f32 %v2836_v3, %v2728_v50  ;;  %v3044_v29 = vpack.c.bf16 %v3012_v26, %v3012_v26 }
 0x39a   : > { %v2296_v45 = vpop.f32.mrf.mxu3 }
 0x39b   : > { %v2839_v48 = vpop.f32.mrf.mxu2  ;;  %v2945_v51 = vmul.f32 %v6269_v34, %v2909_v14  ;;  %v2367_v15 = vadd.f32 %v2296_v45, %v5950_v62  ;;  %v3100_v12 = vunpack.c.l.b16 %v3044_v29 }
 0x39d   : > { %v2981_v0 = vadd.f32 %v6279_v25, %v2945_v51  ;;  %v2548_v6 = vadd.f32 %v5975_v30, %v2367_v15  ;;  %v6363_v30 = vpop.f32.mrf.mxu1 }
 0x39f   : > { %v3013_v38 = vmax.f32 %v2981_v0, 0.0  ;;  %v2729_v13 = vadd.f32 %v6200_v18, %v2548_v6 }
 0x3a1   : > { %v3045_v22 = vpack.c.bf16 %v3013_v38, %v3013_v38  ;;  %v2910_v52 = vadd.f32 %v2839_v48, %v2729_v13  ;;  %v7272_v48 = vpack.c.bf16 %v7185_v37, %v7180_v46 }
 0x3a2   : > { %v2298_v3 = vpop.f32.mrf.mxu3 }
 0x3a3   : > { %v2841_v10 = vpop.f32.mrf.mxu2  ;;  %v3101_v59 = vunpack.c.l.b16 %v3045_v22  ;;  %v2946_v62 = vmul.f32 %v6269_v34, %v2910_v52  ;;  %v2368_v41 = vadd.f32 %v2298_v3, %v5961_v58 }
 0x3a5   : > { %v2549_v50 = vadd.f32 %v6000_v53, %v2368_v41  ;;  %v6361_v14 = vpack.c.b16 %v3101_v59, %v3100_v12  ;;  %v2982_v18 = vadd.f32 %v6279_v25, %v2946_v62  ;;  %v6382_v38 = vpop.f32.mrf.mxu1 }
 0x3a7   : > { %v2730_v45 = vadd.f32 %v6215_v49, %v2549_v50  ;;  %4237 = vmatmul.msk.bf16.gmra.mxu3 %vm770_vm0, %v7272_v48  ;;  %4347 = vmatmul.msk.bf16.gmra.mxu0 %vm770_vm0, %v6361_v14  ;;  %v3014_v51 = vmax.f32 %v2982_v18, 0.0  ;;  %v6377_v49 = vpop.f32.mrf.mxu0  ;;  %v7273_v18 = vld [vmem:[#allocation57_spill] sm:$0xff] }
 0x3a8   : > { %4309 = vmatmul.msk.bf16.gmra.mxu2 %vm770_vm0, %v5987_v44 }
 0x3a9   : > { %v2911_v58 = vadd.f32 %v2841_v10, %v2730_v45  ;;  %v3046_v6 = vpack.c.bf16 %v3014_v51, %v3014_v51  ;;  %v7274_v45 = vpack.c.bf16 %v7191_v17, %v7273_v18 }
 0x3aa   : > { %v2301_v53 = vpop.f32.mrf.mxu3 }
 0x3ab   : > { %v2844_v26 = vpop.f32.mrf.mxu2  ;;  %v2947_v15 = vmul.f32 %v6269_v34, %v2911_v58  ;;  %v2369_v0 = vadd.f32 %v2301_v53, %v5977_v32  ;;  %v3102_v10 = vunpack.c.l.b16 %v3046_v6 }
 0x3ad   : > { %v2983_v46 = vadd.f32 %v6279_v25, %v2947_v15  ;;  %v2550_v37 = vadd.f32 %v6110_v61, %v2369_v0  ;;  %v6401_v58 = vpop.f32.mrf.mxu1 }
 0x3af   : > { %v3015_v29 = vmax.f32 %v2983_v46, 0.0  ;;  %v2731_v44 = vadd.f32 %v6227_v43, %v2550_v37  ;;  %v6389_v61 = vpop.f32.mrf.mxu0 }
 0x3b1   : > { %v3047_v13 = vpack.c.bf16 %v3015_v29, %v3015_v29  ;;  %v2912_v22 = vadd.f32 %v2844_v26, %v2731_v44 }
 0x3b2   : > { %v2303_v52 = vpop.f32.mrf.mxu3 }
 0x3b3   : > { %v2846_v3 = vpop.f32.mrf.mxu2  ;;  %v3103_v12 = vunpack.c.l.b16 %v3047_v13  ;;  %v2948_v32 = vmul.f32 %v6269_v34, %v2912_v22  ;;  %v2370_v59 = vadd.f32 %v2303_v52, %v5989_v19 }
 0x3b5   : > { %v2551_v62 = vadd.f32 %v6125_v33, %v2370_v59  ;;  %v6387_v41 = vpack.c.b16 %v3103_v12, %v3102_v10  ;;  %v2984_v43 = vadd.f32 %v6279_v25, %v2948_v32  ;;  %v7275_v32 = vpack.c.bf16 %v7196_v9, %v5570_v8 }
 0x3b7   : > { %v2732_v50 = vadd.f32 %v6243_v35, %v2551_v62  ;;  %4238 = vmatmul.msk.bf16.gmra.mxu3 %vm770_vm0, %v7274_v45  ;;  %4348 = vmatmul.msk.bf16.gmra.mxu0 %vm770_vm0, %v6387_v41  ;;  %v3016_v53 = vmax.f32 %v2984_v43, 0.0  ;;  %v6408_v46 = vpop.f32.mrf.mxu0 }
 0x3b8   : > { %4310 = vmatmul.msk.bf16.gmra.mxu2 %vm770_vm0, %v6017_v63 }
 0x3b9   : > { %v2913_v19 = vadd.f32 %v2846_v3, %v2732_v50  ;;  %v3048_v15 = vpack.c.bf16 %v3016_v53, %v3016_v53  ;;  %v6412_v3 = vpop.f32.mrf.mxu1 }
 0x3ba   : > { %v2306_v33 = vpop.f32.mrf.mxu3 }
 0x3bb   : > { %v2849_v48 = vpop.f32.mrf.mxu2  ;;  %v2949_v26 = vmul.f32 %v6269_v34, %v2913_v19  ;;  %v2371_v35 = vadd.f32 %v2306_v33, %v6007_v55  ;;  %v3104_v13 = vunpack.c.l.b16 %v3048_v15 }
 0x3bd   : > { %v2985_v17 = vadd.f32 %v6279_v25, %v2949_v26  ;;  %v2552_v51 = vadd.f32 %v6138_v40, %v2371_v35  ;;  %v1173_v35 = vld [vmem:[#allocation2 + $0x262] sm:$0xff] }
 0x3bf   : > { %v3017_v0 = vmax.f32 %v2985_v17, 0.0  ;;  %v2733_v63 = vadd.f32 %v6261_v4, %v2552_v51  ;;  %v6429_v62 = vpop.f32.mrf.mxu0  ;;  %v1318_v17 = vld [vmem:[#allocation2 + $0x272] sm:$0xff] }
 0x3c1   : > { %v3049_v37 = vpack.c.bf16 %v3017_v0, %v3017_v0  ;;  %v2914_v6 = vadd.f32 %v2849_v48, %v2733_v63  ;;  %v6435_v50 = vpop.f32.mrf.mxu1 }
 0x3c2   : > { %v2308_v29 = vpop.f32.mrf.mxu3 }
 0x3c3   : > { %v2851_v44 = vpop.f32.mrf.mxu2  ;;  %v3105_v22 = vunpack.c.l.b16 %v3049_v37  ;;  %v2950_v52 = vmul.f32 %v6269_v34, %v2914_v6  ;;  %v2372_v55 = vadd.f32 %v2308_v29, %v6019_v31  ;;  %v7276_v37 = vld [vmem:[#allocation38_spill] sm:$0xff]  ;;  %v1334_v29 = vpack.c.bf16 %v1318_v17, %v1173_v35 }
 0x3c4   : > { %v1189_v6 = vpack.c.bf16 %v1173_v35, %v7276_v37  ;;  %v7279_v37 = vld [vmem:[#allocation59_spill] sm:$0xff] }
 0x3c5   : > { %v2553_v40 = vadd.f32 %v6151_v47, %v2372_v55  ;;  %v6415_v10 = vpack.c.b16 %v3105_v22, %v3104_v13  ;;  %v2986_v4 = vadd.f32 %v6279_v25, %v2950_v52 }
 0x3c7   : > { %v2734_v12 = vadd.f32 %v6282_v27, %v2553_v40  ;;  %4239 = vmatmul.msk.bf16.gmra.mxu3 %vm770_vm0, %v7275_v32  ;;  %4349 = vmatmul.msk.bf16.gmra.mxu0 %vm770_vm0, %v6415_v10  ;;  %v3018_v27 = vmax.f32 %v2986_v4, 0.0  ;;  %v6440_v63 = vpop.f32.mrf.mxu0 }
 0x3c8   : > { %4311 = vmatmul.msk.bf16.gmra.mxu2 %vm770_vm0, %v6046_v2  ;;  %4365 = vmatmul.msk.bf16.vlgmr.msrb.gmra.mxu1 %vm770_vm0, %v6415_v10 }
 0x3c9   : > { %v2915_v31 = vadd.f32 %v2851_v44, %v2734_v12  ;;  %v3050_v18 = vpack.c.bf16 %v3018_v27, %v3018_v27 }
 0x3ca   : > { %v2311_v47 = vpop.f32.mrf.mxu3 }
 0x3cb   : > { %v2854_v59 = vpop.f32.mrf.mxu2  ;;  %v2951_v43 = vmul.f32 %v6269_v34, %v2915_v31  ;;  %v2373_v8 = vadd.f32 %v2311_v47, %v6032_v5  ;;  %v3106_v51 = vunpack.c.l.b16 %v3050_v18 }
 0x3cd   : > { %v2987_v9 = vadd.f32 %v6279_v25, %v2951_v43  ;;  %v2554_v2 = vadd.f32 %v6165_v1, %v2373_v8 }
 0x3cf   : > { %v3019_v45 = vmax.f32 %v2987_v9, 0.0  ;;  %v2735_v19 = vadd.f32 %v6303_v42, %v2554_v2  ;;  %v6460_v32 = vpop.f32.mrf.mxu0 }
 0x3d1   : > { %v3051_v33 = vpack.c.bf16 %v3019_v45, %v3019_v45  ;;  %v2916_v48 = vadd.f32 %v2854_v59, %v2735_v19 }
 0x3d2   : > { %v2313_v53 = vpop.f32.mrf.mxu3 }
 0x3d3   : > { %v2856_v26 = vpop.f32.mrf.mxu2  ;;  %v3107_v15 = vunpack.c.l.b16 %v3051_v33  ;;  %v2952_v5 = vmul.f32 %v6269_v34, %v2916_v48  ;;  %v2374_v0 = vadd.f32 %v2313_v53, %v6050_v36  ;;  %v6454_v36 = vpop.f32.mrf.mxu1  ;;  %v7277_v33 = vld [vmem:[#allocation56_spill] sm:$0xff] }
 0x3d5   : > { %v2555_v1 = vadd.f32 %v6175_v39, %v2374_v0  ;;  %v6444_v42 = vpack.c.b16 %v3107_v15, %v3106_v51  ;;  %v2988_v44 = vadd.f32 %v6279_v25, %v2952_v5  ;;  %v7278_v5 = vld [vmem:[#allocation35_spill] sm:$0xff] }
 0x3d7   : > { %v2736_v13 = vadd.f32 %v6324_v11, %v2555_v1  ;;  %4240 = vmatmul.msk.bf16.gmra.mxu3 %vm770_vm0, %v1189_v6  ;;  %4350 = vmatmul.msk.bf16.gmra.mxu0 %vm770_vm0, %v6444_v42  ;;  %v3020_v55 = vmax.f32 %v2988_v44, 0.0 }
 0x3d8   : > { %4312 = vmatmul.msk.bf16.gmra.mxu2 %vm770_vm0, %v1334_v29  ;;  %4366 = vmatmul.msk.bf16.gmra.mxu1 %vm770_vm0, %v6444_v42 }
 0x3d9   : > { %v2917_v39 = vadd.f32 %v2856_v26, %v2736_v13  ;;  %v3052_v31 = vpack.c.bf16 %v3020_v55, %v3020_v55  ;;  %v6478_v26 = vpop.f32.mrf.mxu0 }
 0x3da   : > { %v2316_v22 = vpop.f32.mrf.mxu3 }
 0x3db   : > { %v2859_v52 = vpop.f32.mrf.mxu2  ;;  %v2953_v40 = vmul.f32 %v6269_v34, %v2917_v39  ;;  %v2375_v11 = vadd.f32 %v2316_v22, %v6059_v28  ;;  %v6463_v2 = vpop.f32.mrf.mxu1  ;;  %v3108_v18 = vunpack.c.l.b16 %v3052_v31  ;;  %v7280_v31 = vld [vmem:[#allocation44_spill] sm:$0xff] }
 0x3dd   : > { %v2989_v4 = vadd.f32 %v6279_v25, %v2953_v40  ;;  %v2556_v12 = vadd.f32 %v6194_v16, %v2375_v11 }
 0x3df   : > { %v3021_v47 = vmax.f32 %v2989_v4, 0.0  ;;  %v2737_v59 = vadd.f32 %v6333_v56, %v2556_v12 }
 0x3e1   : > { %v3053_v27 = vpack.c.bf16 %v3021_v47, %v3021_v47  ;;  %v2918_v43 = vadd.f32 %v2859_v52, %v2737_v59  ;;  %v6490_v39 = vpop.f32.mrf.mxu0 }
 0x3e2   : > { %v2318_v8 = vpop.f32.mrf.mxu3 }
 0x3e3   : > { %v2861_v9 = vpop.f32.mrf.mxu2  ;;  %v3109_v45 = vunpack.c.l.b16 %v3053_v27  ;;  %v2954_v28 = vmul.f32 %v6269_v34, %v2918_v43  ;;  %v2376_v19 = vadd.f32 %v2318_v8, %v6075_v23 }
 0x3e5   : > { %v2557_v16 = vadd.f32 %v7277_v33, %v2376_v19  ;;  %v6468_v48 = vpack.c.b16 %v3109_v45, %v3108_v18  ;;  %v2990_v53 = vadd.f32 %v6279_v25, %v2954_v28  ;;  %v7281_v33 = vld [vmem:[#allocation54_spill] sm:$0xff] }
 0x3e7   : > { %v2738_v56 = vadd.f32 %v6351_v57, %v2557_v16  ;;  %4321 = vmatmul.msk.bf16.vlgmr.msrb.gmra.mxu3 %vm770_vm0, %v6312_v20  ;;  %4351 = vmatmul.msk.bf16.gmra.mxu0 %vm770_vm0, %v6468_v48  ;;  %v3022_v51 = vmax.f32 %v2990_v53, 0.0  ;;  %v4445_v20 = vld [vmem:[%s6973_s10] sm:$0xff]  ;;  %v6485_v57 = vpop.f32.mrf.mxu1 }
 0x3e8   : > { %4367 = vmatmul.msk.bf16.gmra.mxu1 %vm770_vm0, %v6468_v48  ;;  %3715 = vmatpush.bf16.msrb.mxu2 %v4445_v20 }
 0x3e9   : > { %v2919_v23 = vadd.f32 %v2861_v9, %v2738_v56  ;;  %v3054_v29 = vpack.c.bf16 %v3022_v51, %v3022_v51  ;;  %v6507_v45 = vpop.f32.mrf.mxu0 }
 0x3ea   : > { %v2321_v35 = vpop.f32.mrf.mxu3 }
 0x3eb   : > { %v2864_v17 = vpop.f32.mrf.mxu2  ;;  %v2955_v15 = vmul.f32 %v6269_v34, %v2919_v23  ;;  %v2377_v0 = vadd.f32 %v2321_v35, %v7278_v5  ;;  %v3110_v11 = vunpack.c.l.b16 %v3054_v29 }
 0x3ed   : > { %v2991_v1 = vadd.f32 %v6279_v25, %v2955_v15  ;;  %v2558_v6 = vadd.f32 %v7279_v37, %v2377_v0  ;;  %v7282_v37 = vld [vmem:[#allocation46_spill] sm:$0xff] }
 0x3ef   : > { %v3023_v44 = vmax.f32 %v2991_v1, 0.0  ;;  %v2739_v13 = vadd.f32 %v6363_v30, %v2558_v6  ;;  %v6497_v43 = vpop.f32.mrf.mxu1 }
 0x3f1   : > { %v3055_v22 = vpack.c.bf16 %v3023_v44, %v3023_v44  ;;  %v2920_v52 = vadd.f32 %v2864_v17, %v2739_v13  ;;  %v6518_v29 = vpop.f32.mrf.mxu0  ;;  %v7283_v44 = vld [vmem:[#allocation60_spill] sm:$0xff] }
 0x3f2   : > { %v2323_v55 = vpop.f32.mrf.mxu3 }
 0x3f3   : > { %v2866_v40 = vpop.f32.mrf.mxu2  ;;  %v3111_v4 = vunpack.c.l.b16 %v3055_v22  ;;  %v2956_v12 = vmul.f32 %v6269_v34, %v2920_v52  ;;  %v2378_v47 = vadd.f32 %v2323_v55, %v7280_v31  ;;  %v7284_v31 = vld [vmem:[#allocation42_spill] sm:$0xff] }
 0x3f5   : > { %v2559_v59 = vadd.f32 %v6234_v54, %v2378_v47  ;;  %v6495_v27 = vpack.c.b16 %v3111_v4, %v3110_v11  ;;  %v2992_v30 = vadd.f32 %v6279_v25, %v2956_v12 }
 0x3f7   : > { %v2740_v8 = vadd.f32 %v6382_v38, %v2559_v59  ;;  %4322 = vmatmul.msk.bf16.gmra.mxu3 %vm770_vm0, %v6339_v60  ;;  %4352 = vmatmul.msk.bf16.gmra.mxu0 %vm770_vm0, %v6495_v27  ;;  %v3024_v28 = vmax.f32 %v2992_v30, 0.0  ;;  %v6514_v35 = vpop.f32.mrf.mxu1  ;;  %v7285_v59 = vld [vmem:[#allocation61_spill] sm:$0xff] }
 0x3f8   : > { %4368 = vmatmul.msk.bf16.gmra.mxu1 %vm770_vm0, %v6495_v27 }
 0x3f9   : > { %v2921_v9 = vadd.f32 %v2866_v40, %v2740_v8  ;;  %v3056_v53 = vpack.c.bf16 %v3024_v28, %v3024_v28  ;;  %v6537_v30 = vpop.f32.mrf.mxu0 }
 0x3fa   : > { %v2326_v18 = vpop.f32.mrf.mxu3 }
 0x3fb   : > { %v2869_v54 = vpop.f32.mrf.mxu2  ;;  %v2957_v19 = vmul.f32 %v6269_v34, %v2921_v9  ;;  %v2379_v16 = vadd.f32 %v2326_v18, %v7281_v33  ;;  %v3112_v0 = vunpack.c.l.b16 %v3056_v53  ;;  %v7286_v53 = vld [vmem:[#allocation47_spill] sm:$0xff] }
 0x3fd   : > { %v2993_v38 = vadd.f32 %v6279_v25, %v2957_v19  ;;  %v2560_v60 = vadd.f32 %v6251_v21, %v2379_v16 }
 0x3ff   : > { %v3025_v56 = vmax.f32 %v2993_v38, 0.0  ;;  %v2741_v23 = vadd.f32 %v6401_v58, %v2560_v60  ;;  %v6531_v11 = vpop.f32.mrf.mxu1 }
 0x401   : > { %v3057_v17 = vpack.c.bf16 %v3025_v56, %v3025_v56  ;;  %v2922_v51 = vadd.f32 %v2869_v54, %v2741_v23 }
 0x402   : > { %v2328_v15 = vpop.f32.mrf.mxu3 }
 0x403   : > { %v2871_v5 = vpop.f32.mrf.mxu2  ;;  %v3113_v20 = vunpack.c.l.b16 %v3057_v17  ;;  %v2958_v1 = vmul.f32 %v6269_v34, %v2922_v51  ;;  %v2380_v6 = vadd.f32 %v2328_v15, %v7282_v37  ;;  %v7287_v17 = vld [vmem:[#allocation15_spill] sm:$0xff] }
 0x405   : > { %v2561_v21 = vadd.f32 %v7283_v44, %v2380_v6  ;;  %v6521_v13 = vpack.c.b16 %v3113_v20, %v3112_v0  ;;  %v2994_v58 = vadd.f32 %v6279_v25, %v2958_v1  ;;  %v6555_v0 = vpop.f32.mrf.mxu0 }
 0x407   : > { %v2742_v22 = vadd.f32 %v6412_v3, %v2561_v21  ;;  %4323 = vmatmul.msk.bf16.gmra.mxu3 %vm770_vm0, %v6361_v14  ;;  %4353 = vmatmul.msk.bf16.gmra.mxu0 %vm770_vm0, %v6521_v13  ;;  %v3026_v4 = vmax.f32 %v2994_v58, 0.0  ;;  %v6542_v23 = vpop.f32.mrf.mxu1  ;;  %v7288_v21 = vld [vmem:[#allocation53_spill] sm:$0xff] }
 0x408   : > { %4369 = vmatmul.msk.bf16.gmra.mxu1 %vm770_vm0, %v6521_v13 }
 0x409   : > { %v2923_v52 = vadd.f32 %v2871_v5, %v2742_v22  ;;  %v3058_v8 = vpack.c.bf16 %v3026_v4, %v3026_v4  ;;  %v7289_v22 = vld [vmem:[#allocation16_spill] sm:$0xff] }
 0x40a   : > { %v2331_v55 = vpop.f32.mrf.mxu3 }
 0x40b   : > { %v2874_v40 = vpop.f32.mrf.mxu2  ;;  %v2959_v12 = vmul.f32 %v6269_v34, %v2923_v52  ;;  %v2381_v47 = vadd.f32 %v2331_v55, %v7284_v31  ;;  %v3114_v16 = vunpack.c.l.b16 %v3058_v8 }
 0x40d   : > { %v2995_v3 = vadd.f32 %v6279_v25, %v2959_v12  ;;  %v2562_v14 = vadd.f32 %v7285_v59, %v2381_v47 }
 0x40f   : > { %v3027_v9 = vmax.f32 %v2995_v3, 0.0  ;;  %v2743_v18 = vadd.f32 %v6435_v50, %v2562_v14  ;;  %v6561_v52 = vpop.f32.mrf.mxu1 }
 0x411   : > { %v3059_v54 = vpack.c.bf16 %v3027_v9, %v3027_v9  ;;  %v2924_v28 = vadd.f32 %v2874_v40, %v2743_v18  ;;  %v7290_v9 = vld [vmem:[#allocation49_spill] sm:$0xff] }
 0x412   : > { %v2333_v19 = vpop.f32.mrf.mxu3 }
 0x413   : > { %v2876_v33 = vpop.f32.mrf.mxu2  ;;  %v3115_v38 = vunpack.c.l.b16 %v3059_v54  ;;  %v2960_v60 = vmul.f32 %v6269_v34, %v2924_v28  ;;  %v2382_v56 = vadd.f32 %v2333_v19, %v7286_v53  ;;  %v6566_v54 = vpop.f32.mrf.mxu0 }
 0x415   : > { %v2563_v51 = vadd.f32 %v7287_v17, %v2382_v56  ;;  %v6545_v15 = vpack.c.b16 %v3115_v38, %v3114_v16  ;;  %v2996_v5 = vadd.f32 %v6279_v25, %v2960_v60  ;;  %v7291_v17 = vld [vmem:[#allocation48_spill] sm:$0xff] }
 0x417   : > { %v2744_v50 = vadd.f32 %v6454_v36, %v2563_v51  ;;  %4324 = vmatmul.msk.bf16.gmra.mxu3 %vm770_vm0, %v6387_v41  ;;  %4354 = vmatmul.msk.bf16.gmra.mxu0 %vm770_vm0, %v6545_v15  ;;  %v3028_v6 = vmax.f32 %v2996_v5, 0.0  ;;  %v6579_v16 = vpop.f32.mrf.mxu1 }
 0x418   : > { %4370 = vmatmul.msk.bf16.gmra.mxu1 %vm770_vm0, %v6545_v15 }
 0x419   : > { %v2925_v20 = vadd.f32 %v2876_v33, %v2744_v50  ;;  %v3060_v55 = vpack.c.bf16 %v3028_v6, %v3028_v6 }
 0x41a   : > { %v2336_v1 = vpop.f32.mrf.mxu3 }
 0x41b   : > { %v2879_v37 = vpop.f32.mrf.mxu2  ;;  %v2961_v44 = vmul.f32 %v6269_v34, %v2925_v20  ;;  %v2383_v58 = vadd.f32 %v2336_v1, %v7288_v21  ;;  %v3116_v59 = vunpack.c.l.b16 %v3060_v55  ;;  %v6585_v5 = vpop.f32.mrf.mxu0  ;;  %v7292_v55 = vld [vmem:[#allocation45_spill] sm:$0xff] }
 0x41d   : > { %v2997_v36 = vadd.f32 %v6279_v25, %v2961_v44  ;;  %v2564_v41 = vadd.f32 %v7289_v22, %v2383_v58 }
 0x41f   : > { %v3029_v40 = vmax.f32 %v2997_v36, 0.0  ;;  %v2745_v4 = vadd.f32 %v6463_v2, %v2564_v41  ;;  %v6588_v58 = vpop.f32.mrf.mxu1 }
 0x421   : > { %v3061_v12 = vpack.c.bf16 %v3029_v40, %v3029_v40  ;;  %v2926_v31 = vadd.f32 %v2879_v37, %v2745_v4 }
 0x422   : > { %v2338_v47 = vpop.f32.mrf.mxu3 }
 0x423   : > { %v2881_v3 = vpop.f32.mrf.mxu2  ;;  %v3117_v14 = vunpack.c.l.b16 %v3061_v12  ;;  %v2962_v8 = vmul.f32 %v6269_v34, %v2926_v31  ;;  %v2384_v18 = vadd.f32 %v2338_v47, %v7290_v9  ;;  %v6599_v31 = vpop.f32.mrf.mxu0 }
 0x425   : > { %v2565_v28 = vadd.f32 %v6347_v24, %v2384_v18  ;;  %v6569_v19 = vpack.c.b16 %v3117_v14, %v3116_v59  ;;  %v2998_v33 = vadd.f32 %v6279_v25, %v2962_v8  ;;  %v7293_v8 = vld [vmem:[#allocation55_spill] sm:$0xff] }
 0x427   : > { %v2746_v2 = vadd.f32 %v6485_v57, %v2565_v28  ;;  %4325 = vmatmul.msk.bf16.gmra.mxu3 %vm770_vm0, %v6415_v10  ;;  %4355 = vmatmul.msk.bf16.gmra.mxu0 %vm770_vm0, %v6569_v19  ;;  %v3030_v53 = vmax.f32 %v2998_v33, 0.0 }
 0x428   : > { %4371 = vmatmul.msk.bf16.gmra.mxu1 %vm770_vm0, %v6569_v19 }
 0x429   : > { %v2927_v38 = vadd.f32 %v2881_v3, %v2746_v2  ;;  %v3062_v50 = vpack.c.bf16 %v3030_v53, %v3030_v53 }
 0x42a   : > { %v2341_v60 = vpop.f32.mrf.mxu3 }
 0x42b   : > { %v2884_v24 = vpop.f32.mrf.mxu2  ;;  %v2963_v56 = vmul.f32 %v6269_v34, %v2927_v38  ;;  %v2385_v51 = vadd.f32 %v2341_v60, %v7291_v17  ;;  %v3118_v36 = vunpack.c.l.b16 %v3062_v50 }
 0x42d   : > { %v2999_v57 = vadd.f32 %v6279_v25, %v2963_v56  ;;  %v2566_v10 = vadd.f32 %v6356_v7, %v2385_v51 }
 0x42f   : > { %v3031_v20 = vmax.f32 %v2999_v57, 0.0  ;;  %v2747_v1 = vadd.f32 %v6497_v43, %v2566_v10  ;;  %v7294_v57 = vld [vmem:[#allocation50_spill] sm:$0xff] }
 0x431   : > { %v3063_v37 = vpack.c.bf16 %v3031_v20, %v3031_v20  ;;  %v2928_v6 = vadd.f32 %v2884_v24, %v2747_v1 }
 0x432   : > { %v2343_v44 = vpop.f32.mrf.mxu3 }
 0x433   : > { %v2886_v21 = vpop.f32.mrf.mxu2  ;;  %v3119_v22 = vunpack.c.l.b16 %v3063_v37  ;;  %v2964_v41 = vmul.f32 %v6269_v34, %v2928_v6  ;;  %v2386_v40 = vadd.f32 %v2343_v44, %v7292_v55 }
 0x435   : > { %v2567_v7 = vadd.f32 %v6377_v49, %v2386_v40  ;;  %v6593_v4 = vpack.c.b16 %v3119_v22, %v3118_v36  ;;  %v3000_v12 = vadd.f32 %v6279_v25, %v2964_v41  ;;  %v7295_v36 = vld [vmem:[#allocation51_spill] sm:$0xff] }
 0x437   : > { %v2748_v43 = vadd.f32 %v6514_v35, %v2567_v7  ;;  %4326 = vmatmul.msk.bf16.gmra.mxu3 %vm770_vm0, %v6444_v42  ;;  %4356 = vmatmul.msk.bf16.gmra.mxu0 %vm770_vm0, %v6593_v4  ;;  %v3032_v59 = vmax.f32 %v3000_v12, 0.0  ;;  %v6607_v35 = vpop.f32.mrf.mxu1 }
 0x438   : > { %4372 = vmatmul.msk.bf16.gmra.mxu1 %vm770_vm0, %v6593_v4 }
 0x439   : > { %v2929_v47 = vadd.f32 %v2886_v21, %v2748_v43  ;;  %v3064_v28 = vpack.c.bf16 %v3032_v59, %v3032_v59 }
 0x43a   : > { %v2346_v3 = vpop.f32.mrf.mxu3 }
 0x43b   : > { %v2889_v49 = vpop.f32.mrf.mxu2  ;;  %v2965_v14 = vmul.f32 %v6269_v34, %v2929_v47  ;;  %v2387_v9 = vadd.f32 %v2346_v3, %v7293_v8  ;;  %v3152_v56 = vunpack.c.l.b16 %v3064_v28 }
 0x43d   : > { %v3001_v42 = vadd.f32 %v6279_v25, %v2965_v14  ;;  %v2568_v18 = vadd.f32 %v6389_v61, %v2387_v9  ;;  %v7296_v14 = vld [vmem:[#allocation58_spill] sm:$0xff] }
 0x43f   : > { %v3033_v33 = vmax.f32 %v3001_v42, 0.0  ;;  %v2749_v2 = vadd.f32 %v6531_v11, %v2568_v18 }
 0x441   : > { %v3065_v38 = vpack.c.bf16 %v3033_v33, %v3033_v33  ;;  %v2930_v60 = vadd.f32 %v2889_v49, %v2749_v2 }
 0x442   : > { %v2348_v24 = vpop.f32.mrf.mxu3 }
 0x443   : > { %v2891_v53 = vpop.f32.mrf.mxu2  ;;  %v3153_v17 = vunpack.c.l.b16 %v3065_v38  ;;  %v2966_v51 = vmul.f32 %v6269_v34, %v2930_v60  ;;  %v2388_v10 = vadd.f32 %v2348_v24, %v7294_v57 }
 0x445   : > { %v2569_v50 = vadd.f32 %v6408_v46, %v2388_v10  ;;  %v6615_v20 = vpop.f32.mrf.mxu1  ;;  %v6617_v1 = vpack.c.b16 %v3153_v17, %v3152_v56  ;;  %v3002_v61 = vadd.f32 %v6279_v25, %v2966_v51 }
 0x447   : > { %v2750_v11 = vadd.f32 %v6542_v23, %v2569_v50  ;;  %4327 = vmatmul.msk.bf16.gmra.mxu3 %vm770_vm0, %v6468_v48  ;;  %v3034_v21 = vmax.f32 %v3002_v61, 0.0 }
 0x448   : > { %4373 = vmatmul.msk.bf16.gmra.mxu1 %vm770_vm0, %v6617_v1 }
 0x449   : > { %v2931_v37 = vadd.f32 %v2891_v53, %v2750_v11  ;;  %v3066_v23 = vpack.c.bf16 %v3034_v21, %v3034_v21 }
 0x44a   : > { %v2351_v6 = vpop.f32.mrf.mxu3 }
 0x44b   : > { %v2894_v44 = vpop.f32.mrf.mxu2  ;;  %v2967_v46 = vmul.f32 %v6269_v34, %v2931_v37  ;;  %v2389_v22 = vadd.f32 %v2351_v6, %v7295_v36  ;;  %v3154_v3 = vunpack.c.l.b16 %v3066_v23 }
 0x44d   : > { %v3003_v41 = vadd.f32 %v6279_v25, %v2967_v46  ;;  %v2570_v55 = vadd.f32 %v6429_v62, %v2389_v22  ;;  %v6629_v40 = vpop.f32.mrf.mxu1 }
 0x44f   : > { %v3035_v7 = vmax.f32 %v3003_v41, 0.0  ;;  %v2751_v48 = vadd.f32 %v6561_v52, %v2570_v55 }
 0x451   : > { %v3067_v12 = vpack.c.bf16 %v3035_v7, %v3035_v7  ;;  %v2932_v43 = vadd.f32 %v2894_v44, %v2751_v48  ;;  %v7298_v44 = vld [vmem:[#allocation63_spill] sm:$0xff] }
 0x452   : > { %v2353_v47 = vpop.f32.mrf.mxu3 }
 0x453   : > { %v3155_v49 = vunpack.c.l.b16 %v3067_v12  ;;  %v2968_v59 = vmul.f32 %v6269_v34, %v2932_v43  ;;  %v2390_v8 = vadd.f32 %v2353_v47, %v7296_v14  ;;  %v2896_v9 = vpop.f32.mrf.mxu2 }
 0x455   : > { %v2571_v42 = vadd.f32 %v6440_v63, %v2390_v8  ;;  %v6635_v18 = vpop.f32.mrf.mxu1  ;;  %v6637_v62 = vpack.c.b16 %v3155_v49, %v3154_v3  ;;  %v3004_v28 = vadd.f32 %v6279_v25, %v2968_v59  ;;  %v7297_v63 = vld [vmem:[#allocation62_spill] sm:$0xff] }
 0x457   : > { %v2752_v52 = vadd.f32 %v6579_v16, %v2571_v42  ;;  %4328 = vmatmul.msk.bf16.gmra.mxu3 %vm770_vm0, %v6495_v27  ;;  %v3036_v38 = vmax.f32 %v3004_v28, 0.0 }
 0x458   : > { %4374 = vmatmul.msk.bf16.gmra.mxu1 %vm770_vm0, %v6637_v62 }
 0x459   : > { %v2933_v33 = vadd.f32 %v2896_v9, %v2752_v52  ;;  %v3068_v16 = vpack.c.bf16 %v3036_v38, %v3036_v38  ;;  %v3357_v38 = vpop.f32.mrf.mxu0 }
 0x45a   : > { %v2356_v2 = vpop.f32.mrf.mxu3 }
 0x45b   : > { %v2969_v60 = vmul.f32 %v6269_v34, %v2933_v33  ;;  %v2391_v24 = vadd.f32 %v2356_v2, %v7297_v63  ;;  %v2899_v51 = vpop.f32.mrf.mxu2  ;;  %v3156_v11 = vunpack.c.l.b16 %v3068_v16 }
 0x45d   : > { %v3005_v53 = vadd.f32 %v6279_v25, %v2969_v60  ;;  %v2572_v56 = vadd.f32 %v6460_v32, %v2391_v24  ;;  %v3451_v17 = vpop.f32.mrf.mxu1 }
 0x45f   : > { %v3037_v57 = vmax.f32 %v3005_v53, 0.0  ;;  %v2753_v27 = vadd.f32 %v6588_v58, %v2572_v56 }
 0x461   : > { %v3069_v10 = vpack.c.bf16 %v3037_v57, %v3037_v57  ;;  %v2934_v50 = vadd.f32 %v2899_v51, %v2753_v27  ;;  %v3359_v16 = vpop.f32.mrf.mxu0 }
 0x462   : > { %v2358_v61 = vpop.f32.mrf.mxu3 }
 0x463   : > { %v3157_v37 = vunpack.c.l.b16 %v3069_v10  ;;  %v2970_v6 = vmul.f32 %v6269_v34, %v2934_v50  ;;  %v2392_v21 = vadd.f32 %v2358_v61, %v7298_v44  ;;  %v2901_v58 = vpop.f32.mrf.mxu2  ;;  %v7299_v10 = vmov 0  }
 0x464   : > { %v3418_v50 = vunpack.c.l.b16 %v7299_v10 }
 0x465   : > { %v2573_v46 = vadd.f32 %v6478_v26, %v2392_v21  ;;  %v3454_v36 = vpop.f32.mrf.mxu1  ;;  %v6653_v22 = vpack.c.b16 %v3157_v37, %v3156_v11  ;;  %v3006_v32 = vadd.f32 %v6279_v25, %v2970_v6 }
 0x466   : > { %v3419_v11 = vpack.c.b16 %v3418_v50, %v3418_v50 }
 0x467   : > { %v2754_v41 = vadd.f32 %v6607_v35, %v2573_v46  ;;  %4329 = vmatmul.msk.bf16.gmra.mxu3 %vm770_vm0, %v6521_v13  ;;  %v3038_v7 = vmax.f32 %v3006_v32, 0.0  ;;  %v6668_v13 = vld [vmem:[%s6971_s8] ss:$0 sm:$0xff] }
 0x468   : > { %4375 = vmatmul.msk.bf16.gmra.mxu1 %vm770_vm0, %v6653_v22 }
 0x469   : > { %v2935_v55 = vadd.f32 %v2901_v58, %v2754_v41  ;;  %v3070_v47 = vpack.c.bf16 %v3038_v7, %v3038_v7 }
 0x46a   : > { %v3233_v23 = vpop.f32.mrf.mxu3 }
 0x46b   : > { %v2971_v48 = vmul.f32 %v6269_v34, %v2935_v55  ;;  %v3338_v12 = vadd.f32 %v6490_v39, %v3233_v23  ;;  %v3158_v14 = vunpack.c.l.b16 %v3070_v47  ;;  %v6675_v39 = vld [vmem:[%s6972_s9] ss:$0 sm:$0xff] }
 0x46d   : > { %v3007_v26 = vadd.f32 %v6279_v25, %v2971_v48  ;;  %v3456_v43 = vpop.f32.mrf.mxu1  ;;  %v3524_v49 = vadd.f32 %v6615_v20, %v3338_v12 }
 0x46f   : > { %v3039_v3 = vmax.f32 %v3007_v26, 0.0  ;;  %v3560_v25 = vmul.f32 %v6668_v13, %v3524_v49 }
 0x471   : > { %v3071_v35 = vpack.c.bf16 %v3039_v3, %v3039_v3 }
 0x472   : > { %v3235_v59 = vpop.f32.mrf.mxu3 }
 0x473   : > { %v3159_v8 = vunpack.c.l.b16 %v3071_v35  ;;  %v3340_v34 = vadd.f32 %v6507_v45, %v3235_v59  ;;  %v3596_v45 = vadd.f32 %v6675_v39, %v3560_v25 }
 0x475   : > { %v3525_v9 = vadd.f32 %v6629_v40, %v3340_v34  ;;  %v3459_v20 = vpop.f32.mrf.mxu1  ;;  %v6678_v42 = vpack.c.b16 %v3159_v8, %v3158_v14 }
 0x477   : > { %v3561_v28 = vmul.f32 %v6668_v13, %v3525_v9  ;;  %4330 = vmatmul.msk.bf16.gmra.mxu3 %vm770_vm0, %v6545_v15 }
 0x478   : > { %4376 = vmatmul.msk.bf16.gmra.mxu1 %vm770_vm0, %v6678_v42 }
 0x479   : > { %v3597_v52 = vadd.f32 %v6675_v39, %v3561_v28 }
 0x47a   : > { %v3238_v33 = vpop.f32.mrf.mxu3 }
 0x47b   : > { %v3628_v2 = vpack.c.bf16 %v3597_v52, %v3596_v45  ;;  %v3343_v40 = vadd.f32 %v6518_v29, %v3238_v33 }
 0x47d   : > { %v3461_v60 = vpop.f32.mrf.mxu1  ;;  %4389 = vmatmul.msk.bf16.vlgmr.msrb.gmra.mxu2 %vm770_vm0, %v3628_v2  ;;  %v3526_v63 = vadd.f32 %v6635_v18, %v3343_v40 }
 0x47f   : > { %v3562_v53 = vmul.f32 %v6668_v13, %v3526_v63 }
 0x481   : > { %v3598_v29 = vadd.f32 %v6675_v39, %v3562_v53 }
 0x482   : > { %v3240_v24 = vpop.f32.mrf.mxu3 }
 0x483   : > { %v3345_v15 = vadd.f32 %v6537_v30, %v3240_v24 }
 0x485   : > { %v3527_v56 = vadd.f32 %v3451_v17, %v3345_v15  ;;  %v3464_v51 = vpop.f32.mrf.mxu1  ;;  %v3362_v17 = vpop.f32.mrf.mxu0 }
 0x487   : > { %v3563_v57 = vmul.f32 %v6668_v13, %v3527_v56  ;;  %4331 = vmatmul.msk.bf16.gmra.mxu3 %vm770_vm0, %v6569_v19 }
 0x488   : > { %4377 = vmatmul.msk.bf16.gmra.mxu1 %vm770_vm0, %v3419_v11 }
 0x489   : > { %v3599_v27 = vadd.f32 %v6675_v39, %v3563_v57 }
 0x48a   : > { %v3243_v18 = vpop.f32.mrf.mxu3 }
 0x48b   : > { %v3629_v61 = vpack.c.bf16 %v3599_v27, %v3598_v29  ;;  %v3348_v30 = vadd.f32 %v6555_v0, %v3243_v18 }
 0x48d   : > { %v3466_v37 = vpop.f32.mrf.mxu1  ;;  %4390 = vmatmul.msk.bf16.gmra.mxu2 %vm770_vm0, %v3629_v61  ;;  %v3528_v6 = vadd.f32 %v3454_v36, %v3348_v30  ;;  %v3364_v55 = vpop.f32.mrf.mxu0 }
 0x48f   : > { %v3564_v21 = vmul.f32 %v6668_v13, %v3528_v6 }
 0x491   : > { %v3600_v0 = vadd.f32 %v6675_v39, %v3564_v21 }
 0x492   : > { %v3245_v44 = vpop.f32.mrf.mxu3 }
 0x493   : > { %v3350_v19 = vadd.f32 %v6566_v54, %v3245_v44 }
 0x495   : > { %v3529_v46 = vadd.f32 %v3456_v43, %v3350_v19  ;;  %v3469_v32 = vpop.f32.mrf.mxu1  ;;  %v3367_v43 = vpop.f32.mrf.mxu0 }
 0x497   : > { %v3565_v41 = vmul.f32 %v6668_v13, %v3529_v46  ;;  %4332 = vmatmul.msk.bf16.gmra.mxu3 %vm770_vm0, %v6593_v4 }
 0x498   : > { %4378 = vmatmul.msk.bf16.gmra.mxu1 %vm770_vm0, %v3419_v11 }
 0x499   : > { %v3601_v58 = vadd.f32 %v6675_v39, %v3565_v41 }
 0x49a   : > { %v3248_v23 = vpop.f32.mrf.mxu3 }
 0x49b   : > { %v3630_v7 = vpack.c.bf16 %v3601_v58, %v3600_v0  ;;  %v3353_v36 = vadd.f32 %v6585_v5, %v3248_v23 }
 0x49d   : > { %4391 = vmatmul.msk.bf16.gmra.mxu2 %vm770_vm0, %v3630_v7  ;;  %v3471_v54 = vpop.f32.mrf.mxu1  ;;  %v3530_v48 = vadd.f32 %v3459_v20, %v3353_v36 }
 0x49f   : > { %v3566_v4 = vmul.f32 %v6668_v13, %v3530_v48 }
 0x4a1   : > { %v3602_v5 = vadd.f32 %v6675_v39, %v3566_v4 }
 0x4a2   : > { %v3250_v26 = vpop.f32.mrf.mxu3 }
 0x4a3   : > { %v3355_v12 = vadd.f32 %v6599_v31, %v3250_v26  ;;  %v3369_v31 = vpop.f32.mrf.mxu0 }
 0x4a5   : > { %v3531_v47 = vadd.f32 %v3461_v60, %v3355_v12  ;;  %v3474_v35 = vpop.f32.mrf.mxu1 }
 0x4a7   : > { %v3567_v3 = vmul.f32 %v6668_v13, %v3531_v47  ;;  %4333 = vmatmul.msk.bf16.gmra.mxu3 %vm770_vm0, %v6617_v1 }
 0x4a8   : > { %4379 = vmatmul.msk.bf16.gmra.mxu1 %vm770_vm0, %v3419_v11 }
 0x4a9   : > { %v3603_v49 = vadd.f32 %v6675_v39, %v3567_v3 }
 0x4aa   : > { %v3253_v59 = vpop.f32.mrf.mxu3 }
 0x4ab   : > { %v3631_v14 = vpack.c.bf16 %v3603_v49, %v3602_v5  ;;  %v3358_v8 = vadd.f32 %v3357_v38, %v3253_v59  ;;  %v3372_v52 = vpop.f32.mrf.mxu0 }
 0x4ad   : > { %4392 = vmatmul.msk.bf16.gmra.mxu2 %vm770_vm0, %v3631_v14  ;;  %v3532_v34 = vadd.f32 %v3464_v51, %v3358_v8  ;;  %v3476_v25 = vpop.f32.mrf.mxu1 }
 0x4af   : > { %v3568_v28 = vmul.f32 %v6668_v13, %v3532_v34 }
 0x4b1   : > { %v3604_v33 = vadd.f32 %v6675_v39, %v3568_v28 }
 0x4b2   : > { %v3255_v9 = vpop.f32.mrf.mxu3 }
 0x4b3   : > { %v3360_v20 = vadd.f32 %v3359_v16, %v3255_v9  ;;  %v3374_v15 = vpop.f32.mrf.mxu0 }
 0x4b5   : > { %v3533_v1 = vadd.f32 %v3466_v37, %v3360_v20  ;;  %v3479_v60 = vpop.f32.mrf.mxu1 }
 0x4b7   : > { %v3569_v45 = vmul.f32 %v6668_v13, %v3533_v1  ;;  %4334 = vmatmul.msk.bf16.gmra.mxu3 %vm770_vm0, %v6637_v62 }
 0x4b8   : > { %4380 = vmatmul.msk.bf16.gmra.mxu1 %vm770_vm0, %v3419_v11 }
 0x4b9   : > { %v3605_v2 = vadd.f32 %v6675_v39, %v3569_v45 }
 0x4ba   : > { %v3258_v38 = vpop.f32.mrf.mxu3 }
 0x4bb   : > { %v3632_v40 = vpack.c.bf16 %v3605_v2, %v3604_v33  ;;  %v3363_v63 = vadd.f32 %v3362_v17, %v3258_v38  ;;  %v3377_v18 = vpop.f32.mrf.mxu0  ;;  %v6755_v33 = vld [vmem:[%s6974_s11] ss:$0 sm:$0xff] }
 0x4bc   : > { %v6760_v38 = vld [vmem:[%s6975_s12] ss:$0 sm:$0xff] }
 0x4bd   : > { %4393 = vmatmul.msk.bf16.gmra.mxu2 %vm770_vm0, %v3632_v40  ;;  %v3534_v24 = vadd.f32 %v3469_v32, %v3363_v63  ;;  %v3481_v16 = vpop.f32.mrf.mxu1 }
 0x4bf   : > { %v3570_v51 = vmul.f32 %v6668_v13, %v3534_v24 }
 0x4c1   : > { %v3606_v29 = vadd.f32 %v6675_v39, %v3570_v51 }
 0x4c2   : > { %v3260_v53 = vpop.f32.mrf.mxu3 }
 0x4c3   : > { %v3365_v56 = vadd.f32 %v3364_v55, %v3260_v53  ;;  %v3379_v19 = vpop.f32.mrf.mxu0 }
 0x4c5   : > { %v3535_v62 = vadd.f32 %v3471_v54, %v3365_v56  ;;  %v3484_v11 = vpop.f32.mrf.mxu1 }
 0x4c7   : > { %v3571_v57 = vmul.f32 %v6668_v13, %v3535_v62  ;;  %4335 = vmatmul.msk.bf16.gmra.mxu3 %vm770_vm0, %v6653_v22  ;;  %v4513_v62 = vld [vmem:[%s4811_s17] sm:$0xff] }
 0x4c9   : > { %v3607_v27 = vadd.f32 %v6675_v39, %v3571_v57 }
 0x4ca   : > { %v3263_v10 = vpop.f32.mrf.mxu3 }
 0x4cb   : > { %v3633_v50 = vpack.c.bf16 %v3607_v27, %v3606_v29  ;;  %v3368_v61 = vadd.f32 %v3367_v43, %v3263_v10  ;;  %v3382_v55 = vpop.f32.mrf.mxu0 }
 0x4cd   : > { %4394 = vmatmul.msk.bf16.gmra.mxu2 %vm770_vm0, %v3633_v50  ;;  %v3536_v30 = vadd.f32 %v3474_v35, %v3368_v61  ;;  %v3486_v32 = vpop.f32.mrf.mxu1 }
 0x4cf   : > { %v3572_v6 = vmul.f32 %v6668_v13, %v3536_v30 }
 0x4d1   : > { %v3608_v21 = vadd.f32 %v6675_v39, %v3572_v6 }
 0x4d2   : > { %v3265_v37 = vpop.f32.mrf.mxu3 }
 0x4d3   : > { %v3370_v17 = vadd.f32 %v3369_v31, %v3265_v37  ;;  %v3384_v4 = vpop.f32.mrf.mxu0 }
 0x4d5   : > { %v3537_v44 = vadd.f32 %v3476_v25, %v3370_v17  ;;  %v3489_v54 = vpop.f32.mrf.mxu1 }
 0x4d7   : > { %v3573_v22 = vmul.f32 %v6668_v13, %v3537_v44  ;;  %4336 = vmatmul.msk.bf16.gmra.mxu3 %vm770_vm0, %v6678_v42  ;;  %v4514_v44 = vld [vmem:[%s4811_s17 + $0x8] sm:$0xff] }
 0x4d9   : > { %v3609_v46 = vadd.f32 %v6675_v39, %v3573_v22 }
 0x4da   : > { %v3268_v41 = vpop.f32.mrf.mxu3 }
 0x4db   : > { %v3634_v0 = vpack.c.bf16 %v3609_v46, %v3608_v21  ;;  %v3373_v58 = vadd.f32 %v3372_v52, %v3268_v41  ;;  %v3387_v8 = vpop.f32.mrf.mxu0 }
 0x4dd   : > { %4395 = vmatmul.msk.bf16.gmra.mxu2 %vm770_vm0, %v3634_v0  ;;  %v3538_v23 = vadd.f32 %v3479_v60, %v3373_v58  ;;  %v3491_v5 = vpop.f32.mrf.mxu1 }
 0x4df   : > { %v3574_v48 = vmul.f32 %v6668_v13, %v3538_v23 }
 0x4e1   : > { %v3610_v12 = vadd.f32 %v6675_v39, %v3574_v48 }
 0x4e2   : > { %v3270_v7 = vpop.f32.mrf.mxu3 }
 0x4e3   : > { %v3375_v36 = vadd.f32 %v3374_v15, %v3270_v7  ;;  %v3389_v2 = vpop.f32.mrf.mxu0 }
 0x4e5   : > { %v3539_v26 = vadd.f32 %v3481_v16, %v3375_v36  ;;  %v3494_v9 = vpop.f32.mrf.mxu1  ;;  %v4515_v36 = vld [vmem:[%s4811_s17 + $0x10] sm:$0xff] }
 0x4e7   : > { %v3575_v42 = vmul.f32 %v6668_v13, %v3539_v26 }
 0x4e9   : > { %v3611_v43 = vadd.f32 %v6675_v39, %v3575_v42 }
 0x4ea   : > { %v3273_v47 = vpop.f32.mrf.mxu3 }
 0x4eb   : > { %v3635_v3 = vpack.c.bf16 %v3611_v43, %v3610_v12  ;;  %v3378_v35 = vadd.f32 %v3377_v18, %v3273_v47  ;;  %v3392_v10 = vpop.f32.mrf.mxu0 }
 0x4ed   : > { %4396 = vmatmul.msk.bf16.gmra.mxu2 %vm770_vm0, %v3635_v3  ;;  %v3540_v49 = vadd.f32 %v3484_v11, %v3378_v35  ;;  %v3496_v24 = vpop.f32.mrf.mxu1 }
 0x4ef   : > { %v3576_v31 = vmul.f32 %v6668_v13, %v3540_v49 }
 0x4f1   : > { %v3612_v20 = vadd.f32 %v6675_v39, %v3576_v31 }
 0x4f2   : > { %v3275_v59 = vpop.f32.mrf.mxu3 }
 0x4f3   : > { %v3380_v14 = vadd.f32 %v3379_v19, %v3275_v59  ;;  %v3394_v0 = vpop.f32.mrf.mxu0 }
 0x4f5   : > { %v3541_v34 = vadd.f32 %v3486_v32, %v3380_v14  ;;  %v3499_v6 = vpop.f32.mrf.mxu1  ;;  %v4516_v14 = vld [vmem:[%s4811_s17 + $0x18] sm:$0xff] }
 0x4f7   : > { %v3577_v25 = vmul.f32 %v6668_v13, %v3541_v34 }
 0x4f9   : > { %v3613_v28 = vadd.f32 %v6675_v39, %v3577_v25 }
 0x4fa   : > { %v3278_v1 = vpop.f32.mrf.mxu3 }
 0x4fb   : > { %v3636_v45 = vpack.c.bf16 %v3613_v28, %v3612_v20  ;;  %v3383_v52 = vadd.f32 %v3382_v55, %v3278_v1  ;;  %v3397_v59 = vpop.f32.mrf.mxu0 }
 0x4fd   : > { %4397 = vmatmul.msk.bf16.gmra.mxu2 %vm770_vm0, %v3636_v45  ;;  %v3542_v60 = vadd.f32 %v3489_v54, %v3383_v52  ;;  %v3501_v26 = vpop.f32.mrf.mxu1 }
 0x4ff   : > { %v3578_v51 = vmul.f32 %v6668_v13, %v3542_v60 }
 0x500   : > { %v3717_v40 = vpop.f32.mrf.mxu2 }
 0x501   : > { %v3801_v63 = vmul.f32 %v6755_v33, %v3717_v40  ;;  %v3614_v18 = vadd.f32 %v6675_v39, %v3578_v51  ;;  %v4517_v40 = vld [vmem:[%s4811_s17 + $0x20] sm:$0xff] }
 0x502   : > { %v3280_v15 = vpop.f32.mrf.mxu3 }
 0x503   : > { %v3837_v53 = vadd.f32 %v6760_v38, %v3801_v63  ;;  %v3385_v56 = vadd.f32 %v3384_v4, %v3280_v15 }
 0x505   : > { %v3869_v16 = vadd.f32 %v4513_v62, %v3837_v53  ;;  %v3543_v57 = vadd.f32 %v3491_v5, %v3385_v56  ;;  %v3504_v34 = vpop.f32.mrf.mxu1 }
 0x507   : > { %v3901_v29 = vmax.f32 %v3869_v16, 0.0  ;;  %v3579_v27 = vmul.f32 %v6668_v13, %v3543_v57 }
 0x508   : > { %v3719_v50 = vpop.f32.mrf.mxu2 }
 0x509   : > { %3933 = vst [vmem:[%s6770_s13] sm:$0xff] %v3901_v29  ;;  %v3615_v61 = vadd.f32 %v6675_v39, %v3579_v27  ;;  %v3802_v11 = vmul.f32 %v6755_v33, %v3719_v50  ;;  %v4518_v50 = vld [vmem:[%s4811_s17 + $0x28] sm:$0xff] }
 0x50a   : > { %v3283_v30 = vpop.f32.mrf.mxu3 }
 0x50b   : > { %v3838_v37 = vadd.f32 %v6760_v38, %v3802_v11  ;;  %v3637_v17 = vpack.c.bf16 %v3615_v61, %v3614_v18  ;;  %v3388_v22 = vadd.f32 %v3387_v8, %v3283_v30 }
 0x50d   : > { %v3870_v19 = vadd.f32 %v4514_v44, %v3838_v37  ;;  %4398 = vmatmul.msk.bf16.gmra.mxu2 %vm770_vm0, %v3637_v17  ;;  %v3544_v32 = vadd.f32 %v3494_v9, %v3388_v22  ;;  %v3506_v51 = vpop.f32.mrf.mxu1 }
 0x50f   : > { %v3902_v21 = vmax.f32 %v3870_v19, 0.0  ;;  %v3580_v7 = vmul.f32 %v6668_v13, %v3544_v32  ;;  %v4519_v32 = vld [vmem:[%s4811_s17 + $0x30] sm:$0xff] }
 0x510   : > { %v3722_v46 = vpop.f32.mrf.mxu2 }
 0x511   : > { %3934 = vst [vmem:[%s6770_s13 + $0x8] sm:$0xff] %v3902_v21  ;;  %v3803_v41 = vmul.f32 %v6755_v33, %v3722_v46  ;;  %v3616_v4 = vadd.f32 %v6675_v39, %v3580_v7 }
 0x512   : > { %v3285_v58 = vpop.f32.mrf.mxu3 }
 0x513   : > { %v3839_v55 = vadd.f32 %v6760_v38, %v3803_v41  ;;  %v3390_v23 = vadd.f32 %v3389_v2, %v3285_v58 }
 0x515   : > { %v3871_v54 = vadd.f32 %v4515_v36, %v3839_v55  ;;  %v3545_v48 = vadd.f32 %v3496_v24, %v3390_v23  ;;  %v3399_v24 = vpop.f32.mrf.mxu0  ;;  %v3509_v19 = vpop.f32.mrf.mxu1 }
 0x517   : > { %v3903_v42 = vmax.f32 %v3871_v54, 0.0  ;;  %v3581_v12 = vmul.f32 %v6668_v13, %v3545_v48 }
 0x518   : > { %v3724_v43 = vpop.f32.mrf.mxu2 }
 0x519   : > { %3935 = vst [vmem:[%s6770_s13 + $0x10] sm:$0xff] %v3903_v42  ;;  %v3617_v47 = vadd.f32 %v6675_v39, %v3581_v12  ;;  %v3804_v3 = vmul.f32 %v6755_v33, %v3724_v43 }
 0x51a   : > { %v3288_v35 = vpop.f32.mrf.mxu3 }
 0x51b   : > { %v3840_v5 = vadd.f32 %v6760_v38, %v3804_v3  ;;  %v3638_v49 = vpack.c.bf16 %v3617_v47, %v3616_v4  ;;  %v3393_v31 = vadd.f32 %v3392_v10, %v3288_v35  ;;  %v4520_v4 = vld [vmem:[%s4811_s17 + $0x38] sm:$0xff] }
 0x51d   : > { %v3872_v8 = vadd.f32 %v4516_v14, %v3840_v5  ;;  %4399 = vmatmul.msk.bf16.gmra.mxu2 %vm770_vm0, %v3638_v49  ;;  %v3546_v20 = vadd.f32 %v3499_v6, %v3393_v31  ;;  %v3402_v30 = vpop.f32.mrf.mxu0  ;;  %v3511_v43 = vpop.f32.mrf.mxu1 }
 0x51f   : > { %v3904_v25 = vmax.f32 %v3872_v8, 0.0  ;;  %v3582_v2 = vmul.f32 %v6668_v13, %v3546_v20 }
 0x520   : > { %v3727_v9 = vpop.f32.mrf.mxu2 }
 0x521   : > { %3936 = vst [vmem:[%s6770_s13 + $0x18] sm:$0xff] %v3904_v25  ;;  %v3805_v28 = vmul.f32 %v6755_v33, %v3727_v9  ;;  %v3618_v62 = vadd.f32 %v6675_v39, %v3582_v2  ;;  %v4521_v9 = vld [vmem:[%s4811_s17 + $0x40] sm:$0xff] }
 0x522   : > { %v3290_v1 = vpop.f32.mrf.mxu3 }
 0x523   : > { %v3841_v45 = vadd.f32 %v6760_v38, %v3805_v28  ;;  %v3395_v52 = vadd.f32 %v3394_v0, %v3290_v1 }
 0x525   : > { %v3873_v60 = vadd.f32 %v4517_v40, %v3841_v45  ;;  %v3547_v63 = vadd.f32 %v3501_v26, %v3395_v52  ;;  %v3404_v48 = vpop.f32.mrf.mxu0  ;;  %v3514_v1 = vpop.f32.mrf.mxu1 }
 0x527   : > { %v3905_v15 = vmax.f32 %v3873_v60, 0.0  ;;  %v3583_v53 = vmul.f32 %v6668_v13, %v3547_v63 }
 0x528   : > { %v3729_v56 = vpop.f32.mrf.mxu2 }
 0x529   : > { %3937 = vst [vmem:[%s6770_s13 + $0x20] sm:$0xff] %v3905_v15  ;;  %v3619_v16 = vadd.f32 %v6675_v39, %v3583_v53  ;;  %v3806_v57 = vmul.f32 %v6755_v33, %v3729_v56  ;;  %v4522_v56 = vld [vmem:[%s4811_s17 + $0x48] sm:$0xff] }
 0x52a   : > { %v3293_v29 = vpop.f32.mrf.mxu3 }
 0x52b   : > { %v3842_v27 = vadd.f32 %v6760_v38, %v3806_v57  ;;  %v3639_v10 = vpack.c.bf16 %v3619_v16, %v3618_v62  ;;  %v3398_v61 = vadd.f32 %v3397_v59, %v3293_v29 }
 0x52d   : > { %v3874_v18 = vadd.f32 %v4518_v50, %v3842_v27  ;;  %4400 = vmatmul.msk.bf16.gmra.mxu2 %vm770_vm0, %v3639_v10  ;;  %v3548_v17 = vadd.f32 %v3504_v34, %v3398_v61  ;;  %v3407_v34 = vpop.f32.mrf.mxu0  ;;  %v3516_v29 = vpop.f32.mrf.mxu1 }
 0x52f   : > { %v3906_v11 = vmax.f32 %v3874_v18, 0.0  ;;  %v3584_v46 = vmul.f32 %v6668_v13, %v3548_v17 }
 0x530   : > { %v3732_v37 = vpop.f32.mrf.mxu2 }
 0x531   : > { %3938 = vst [vmem:[%s6770_s13 + $0x28] sm:$0xff] %v3906_v11  ;;  %v3807_v6 = vmul.f32 %v6755_v33, %v3732_v37  ;;  %v3620_v7 = vadd.f32 %v6675_v39, %v3584_v46  ;;  %v4523_v37 = vld [vmem:[%s4811_s17 + $0x50] sm:$0xff] }
 0x532   : > { %v3295_v44 = vpop.f32.mrf.mxu3 }
 0x533   : > { %v3843_v22 = vadd.f32 %v6760_v38, %v3807_v6  ;;  %v3400_v21 = vadd.f32 %v3399_v24, %v3295_v44 }
 0x535   : > { %v3875_v41 = vadd.f32 %v4519_v32, %v3843_v22  ;;  %v3549_v0 = vadd.f32 %v3506_v51, %v3400_v21  ;;  %v3409_v16 = vpop.f32.mrf.mxu0 }
 0x537   : > { %v3907_v58 = vmax.f32 %v3875_v41, 0.0  ;;  %v3585_v55 = vmul.f32 %v6668_v13, %v3549_v0  ;;  %v3519_v0 = vpop.f32.mrf.mxu1 }
 0x538   : > { %v3734_v23 = vpop.f32.mrf.mxu2 }
 0x539   : > { %3939 = vst [vmem:[%s6770_s13 + $0x30] sm:$0xff] %v3907_v58  ;;  %v3621_v36 = vadd.f32 %v6675_v39, %v3585_v55  ;;  %v3808_v54 = vmul.f32 %v6755_v33, %v3734_v23 }
 0x53a   : > { %v3298_v26 = vpop.f32.mrf.mxu3 }
 0x53b   : > { %v3844_v42 = vadd.f32 %v6760_v38, %v3808_v54  ;;  %v3640_v12 = vpack.c.bf16 %v3621_v36, %v3620_v7  ;;  %v3403_v3 = vadd.f32 %v3402_v30, %v3298_v26  ;;  %v4524_v7 = vld [vmem:[%s4811_s17 + $0x58] sm:$0xff] }
 0x53d   : > { %v3876_v47 = vadd.f32 %v4520_v4, %v3844_v42  ;;  %4401 = vmatmul.msk.bf16.gmra.mxu2 %vm770_vm0, %v3640_v12  ;;  %v3550_v49 = vadd.f32 %v3509_v19, %v3403_v3  ;;  %v3412_v22 = vpop.f32.mrf.mxu0 }
 0x53f   : > { %v3908_v35 = vmax.f32 %v3876_v47, 0.0  ;;  %v3586_v25 = vmul.f32 %v6668_v13, %v3550_v49  ;;  %v4525_v49 = vld [vmem:[%s4811_s17 + $0x60] sm:$0xff] }
 0x540   : > { %v3737_v5 = vpop.f32.mrf.mxu2 }
 0x541   : > { %3940 = vst [vmem:[%s6770_s13 + $0x38] sm:$0xff] %v3908_v35  ;;  %v3809_v59 = vmul.f32 %v6755_v33, %v3737_v5  ;;  %v3622_v40 = vadd.f32 %v6675_v39, %v3586_v25  ;;  %v3521_v35 = vpop.f32.mrf.mxu1 }
 0x542   : > { %v3300_v14 = vpop.f32.mrf.mxu3 }
 0x543   : > { %v3845_v8 = vadd.f32 %v6760_v38, %v3809_v59  ;;  %v3405_v31 = vadd.f32 %v3404_v48, %v3300_v14 }
 0x545   : > { %v3877_v20 = vadd.f32 %v4521_v9, %v3845_v8  ;;  %v3551_v28 = vadd.f32 %v3511_v43, %v3405_v31  ;;  %v3414_v43 = vpop.f32.mrf.mxu0 }
 0x547   : > { %v3909_v45 = vmax.f32 %v3877_v20, 0.0  ;;  %v3587_v52 = vmul.f32 %v6668_v13, %v3551_v28 }
 0x548   : > { %v3739_v2 = vpop.f32.mrf.mxu2 }
 0x549   : > { %3941 = vst [vmem:[%s6770_s13 + $0x40] sm:$0xff] %v3909_v45  ;;  %v3623_v60 = vadd.f32 %v6675_v39, %v3587_v52  ;;  %v3810_v63 = vmul.f32 %v6755_v33, %v3739_v2  ;;  %v4526_v45 = vld [vmem:[%s4811_s17 + $0x68] sm:$0xff] }
 0x54a   : > { %v3303_v24 = vpop.f32.mrf.mxu3 }
 0x54b   : > { %v3846_v15 = vadd.f32 %v6760_v38, %v3810_v63  ;;  %v3641_v53 = vpack.c.bf16 %v3623_v60, %v3622_v40  ;;  %v3408_v62 = vadd.f32 %v3407_v34, %v3303_v24  ;;  %v4527_v60 = vld [vmem:[%s4811_s17 + $0x70] sm:$0xff] }
 0x54d   : > { %v3878_v51 = vadd.f32 %v4522_v56, %v3846_v15  ;;  %4402 = vmatmul.msk.bf16.gmra.mxu2 %vm770_vm0, %v3641_v53  ;;  %v3552_v10 = vadd.f32 %v3514_v1, %v3408_v62 }
 0x54f   : > { %v3910_v57 = vmax.f32 %v3878_v51, 0.0  ;;  %v3588_v30 = vmul.f32 %v6668_v13, %v3552_v10  ;;  %v4528_v51 = vld [vmem:[%s4811_s17 + $0x78] sm:$0xff]  ;;  %v4529_v10 = vld [vmem:[%s4811_s17 + $0x80] sm:$0xff] }
 0x550   : > { %v3742_v27 = vpop.f32.mrf.mxu2 }
 0x551   : > { %3942 = vst [vmem:[%s6770_s13 + $0x48] sm:$0xff] %v3910_v57  ;;  %v3811_v50 = vmul.f32 %v6755_v33, %v3742_v27  ;;  %v3624_v46 = vadd.f32 %v6675_v39, %v3588_v30 }
 0x552   : > { %v3305_v18 = vpop.f32.mrf.mxu3 }
 0x553   : > { %v3847_v61 = vadd.f32 %v6760_v38, %v3811_v50  ;;  %v3410_v11 = vadd.f32 %v3409_v16, %v3305_v18 }
 0x555   : > { %v3879_v17 = vadd.f32 %v4523_v37, %v3847_v61  ;;  %v3553_v6 = vadd.f32 %v3516_v29, %v3410_v11  ;;  %v4530_v37 = vld [vmem:[%s4811_s17 + $0x88] sm:$0xff] }
 0x557   : > { %v3911_v44 = vmax.f32 %v3879_v17, 0.0  ;;  %v3589_v19 = vmul.f32 %v6668_v13, %v3553_v6 }
 0x558   : > { %v3744_v21 = vpop.f32.mrf.mxu2 }
 0x559   : > { %3943 = vst [vmem:[%s6770_s13 + $0x50] sm:$0xff] %v3911_v44  ;;  %v3625_v32 = vadd.f32 %v6675_v39, %v3589_v19  ;;  %v3812_v41 = vmul.f32 %v6755_v33, %v3744_v21  ;;  %v4531_v21 = vld [vmem:[%s4811_s17 + $0x90] sm:$0xff] }
 0x55a   : > { %v3308_v58 = vpop.f32.mrf.mxu3 }
 0x55b   : > { %v3848_v55 = vadd.f32 %v6760_v38, %v3812_v41  ;;  %v3642_v23 = vpack.c.bf16 %v3625_v32, %v3624_v46  ;;  %v3413_v54 = vadd.f32 %v3412_v22, %v3308_v58 }
 0x55d   : > { %v3880_v36 = vadd.f32 %v4524_v7, %v3848_v55  ;;  %4403 = vmatmul.msk.bf16.gmra.mxu2 %vm770_vm0, %v3642_v23  ;;  %v3554_v42 = vadd.f32 %v3519_v0, %v3413_v54  ;;  %v4532_v55 = vld [vmem:[%s4811_s17 + $0x98] sm:$0xff] }
 0x55f   : > { %v3912_v48 = vmax.f32 %v3880_v36, 0.0  ;;  %v3590_v5 = vmul.f32 %v6668_v13, %v3554_v42 }
 0x560   : > { %v3747_v26 = vpop.f32.mrf.mxu2 }
 0x561   : > { %3944 = vst [vmem:[%s6770_s13 + $0x58] sm:$0xff] %v3912_v48  ;;  %v3813_v12 = vmul.f32 %v6755_v33, %v3747_v26  ;;  %v3626_v25 = vadd.f32 %v6675_v39, %v3590_v5  ;;  %v4533_v26 = vld [vmem:[%s4811_s17 + $0xa0] sm:$0xff] }
 0x562   : > { %v3310_v4 = vpop.f32.mrf.mxu3 }
 0x563   : > { %v3849_v47 = vadd.f32 %v6760_v38, %v3813_v12  ;;  %v3415_v3 = vadd.f32 %v3414_v43, %v3310_v4 }
 0x565   : > { %v3881_v59 = vadd.f32 %v4525_v49, %v3849_v47  ;;  %v3555_v14 = vadd.f32 %v3521_v35, %v3415_v3  ;;  %v4534_v3 = vld [vmem:[%s4811_s17 + $0xa8] sm:$0xff] }
 0x567   : > { %v3913_v8 = vmax.f32 %v3881_v59, 0.0  ;;  %v3591_v31 = vmul.f32 %v6668_v13, %v3555_v14 }
 0x568   : > { %v3749_v34 = vpop.f32.mrf.mxu2 }
 0x569   : > { %3945 = vst [vmem:[%s6770_s13 + $0x60] sm:$0xff] %v3913_v8  ;;  %v3627_v9 = vadd.f32 %v6675_v39, %v3591_v31  ;;  %v3814_v20 = vmul.f32 %v6755_v33, %v3749_v34  ;;  %v4535_v8 = vld [vmem:[%s4811_s17 + $0xb0] sm:$0xff] }
 0x56b   : > { %v3850_v28 = vadd.f32 %v6760_v38, %v3814_v20  ;;  %v3643_v1 = vpack.c.bf16 %v3627_v9, %v3626_v25 }
 0x56d   : > { %v3882_v52 = vadd.f32 %v4526_v45, %v3850_v28  ;;  %4404 = vmatmul.msk.bf16.gmra.mxu2 %vm770_vm0, %v3643_v1  ;;  %v4536_v28 = vld [vmem:[%s4811_s17 + $0xb8] sm:$0xff] }
 0x56f   : > { %v3914_v2 = vmax.f32 %v3882_v52, 0.0 }
 0x570   : > { %v3752_v13 = vpop.f32.mrf.mxu2 }
 0x571   : > { %3946 = vst [vmem:[%s6770_s13 + $0x68] sm:$0xff] %v3914_v2  ;;  %v3815_v40 = vmul.f32 %v6755_v33, %v3752_v13 }
 0x573   : > { %v3851_v39 = vadd.f32 %v6760_v38, %v3815_v40  ;;  %v4537_v40 = vld [vmem:[%s4811_s17 + $0xc0] sm:$0xff] }
 0x575   : > { %v3883_v63 = vadd.f32 %v4527_v60, %v3851_v39 }
 0x577   : > { %v3915_v24 = vmax.f32 %v3883_v63, 0.0 }
 0x578   : > { %v3754_v15 = vpop.f32.mrf.mxu2 }
 0x579   : > { %3947 = vst [vmem:[%s6770_s13 + $0x70] sm:$0xff] %v3915_v24  ;;  %v3816_v53 = vmul.f32 %v6755_v33, %v3754_v15 }
 0x57b   : > { %v3852_v56 = vadd.f32 %v6760_v38, %v3816_v53  ;;  %v4538_v53 = vld [vmem:[%s4811_s17 + $0xc8] sm:$0xff] }
 0x57d   : > { %v3884_v62 = vadd.f32 %v4528_v51, %v3852_v56 }
 0x57f   : > { %v3916_v16 = vmax.f32 %v3884_v62, 0.0 }
 0x580   : > { %v3757_v57 = vpop.f32.mrf.mxu2 }
 0x581   : > { %3948 = vst [vmem:[%s6770_s13 + $0x78] sm:$0xff] %v3916_v16  ;;  %v3817_v29 = vmul.f32 %v6755_v33, %v3757_v57 }
 0x583   : > { %v3853_v27 = vadd.f32 %v6760_v38, %v3817_v29  ;;  %v4539_v29 = vld [vmem:[%s4811_s17 + $0xd0] sm:$0xff] }
 0x585   : > { %v3885_v50 = vadd.f32 %v4529_v10, %v3853_v27 }
 0x587   : > { %v3917_v18 = vmax.f32 %v3885_v50, 0.0 }
 0x588   : > { %v3759_v61 = vpop.f32.mrf.mxu2 }
 0x589   : > { %3949 = vst [vmem:[%s6770_s13 + $0x80] sm:$0xff] %v3917_v18  ;;  %v3818_v11 = vmul.f32 %v6755_v33, %v3759_v61 }
 0x58b   : > { %v3854_v30 = vadd.f32 %v6760_v38, %v3818_v11  ;;  %v4540_v11 = vld [vmem:[%s4811_s17 + $0xd8] sm:$0xff] }
 0x58d   : > { %v3886_v17 = vadd.f32 %v4530_v37, %v3854_v30 }
 0x58f   : > { %v3918_v6 = vmax.f32 %v3886_v17, 0.0 }
 0x590   : > { %v3762_v44 = vpop.f32.mrf.mxu2 }
 0x591   : > { %3950 = vst [vmem:[%s6770_s13 + $0x88] sm:$0xff] %v3918_v6  ;;  %v3819_v19 = vmul.f32 %v6755_v33, %v3762_v44 }
 0x593   : > { %v3855_v22 = vadd.f32 %v6760_v38, %v3819_v19  ;;  %v4541_v19 = vld [vmem:[%s4811_s17 + $0xe0] sm:$0xff] }
 0x595   : > { %v3887_v46 = vadd.f32 %v4531_v21, %v3855_v22 }
 0x597   : > { %v3919_v32 = vmax.f32 %v3887_v46, 0.0 }
 0x598   : > { %v3764_v41 = vpop.f32.mrf.mxu2 }
 0x599   : > { %3951 = vst [vmem:[%s6770_s13 + $0x90] sm:$0xff] %v3919_v32  ;;  %v3820_v0 = vmul.f32 %v6755_v33, %v3764_v41 }
 0x59b   : > { %v3856_v58 = vadd.f32 %v6760_v38, %v3820_v0  ;;  %v4542_v0 = vld [vmem:[%s4811_s17 + $0xe8] sm:$0xff] }
 0x59d   : > { %v3888_v23 = vadd.f32 %v4532_v55, %v3856_v58 }
 0x59f   : > { %v3920_v7 = vmax.f32 %v3888_v23, 0.0 }
 0x5a0   : > { %v3767_v36 = vpop.f32.mrf.mxu2 }
 0x5a1   : > { %3952 = vst [vmem:[%s6770_s13 + $0x98] sm:$0xff] %v3920_v7  ;;  %v3821_v54 = vmul.f32 %v6755_v33, %v3767_v36 }
 0x5a3   : > { %v3857_v48 = vadd.f32 %v6760_v38, %v3821_v54  ;;  %v4543_v54 = vld [vmem:[%s4811_s17 + $0xf0] sm:$0xff] }
 0x5a5   : > { %v3889_v42 = vadd.f32 %v4533_v26, %v3857_v48 }
 0x5a7   : > { %v3921_v12 = vmax.f32 %v3889_v42, 0.0 }
 0x5a8   : > { %v3769_v43 = vpop.f32.mrf.mxu2 }
 0x5a9   : > { %3953 = vst [vmem:[%s6770_s13 + $0xa0] sm:$0xff] %v3921_v12  ;;  %v3822_v4 = vmul.f32 %v6755_v33, %v3769_v43 }
 0x5ab   : > { %v3858_v47 = vadd.f32 %v6760_v38, %v3822_v4  ;;  %v4544_v4 = vld [vmem:[%s4811_s17 + $0xf8] sm:$0xff] }
 0x5ad   : > { %v3890_v35 = vadd.f32 %v4534_v3, %v3858_v47 }
 0x5af   : > { %v3922_v5 = vmax.f32 %v3890_v35, 0.0 }
 0x5b0   : > { %v3772_v49 = vpop.f32.mrf.mxu2 }
 0x5b1   : > { %3954 = vst [vmem:[%s6770_s13 + $0xa8] sm:$0xff] %v3922_v5  ;;  %v3823_v59 = vmul.f32 %v6755_v33, %v3772_v49 }
 0x5b3   : > { %v3859_v14 = vadd.f32 %v6760_v38, %v3823_v59 }
 0x5b5   : > { %v3891_v31 = vadd.f32 %v4535_v8, %v3859_v14 }
 0x5b7   : > { %v3923_v34 = vmax.f32 %v3891_v31, 0.0 }
 0x5b8   : > { %v3774_v25 = vpop.f32.mrf.mxu2 }
 0x5b9   : > { %3955 = vst [vmem:[%s6770_s13 + $0xb0] sm:$0xff] %v3923_v34  ;;  %v3824_v9 = vmul.f32 %v6755_v33, %v3774_v25 }
 0x5bb   : > { %v3860_v20 = vadd.f32 %v6760_v38, %v3824_v9 }
 0x5bd   : > { %v3892_v1 = vadd.f32 %v4536_v28, %v3860_v20 }
 0x5bf   : > { %v3924_v45 = vmax.f32 %v3892_v1, 0.0 }
 0x5c0   : > { %v3777_v52 = vpop.f32.mrf.mxu2 }
 0x5c1   : > { %3956 = vst [vmem:[%s6770_s13 + $0xb8] sm:$0xff] %v3924_v45  ;;  %v3825_v2 = vmul.f32 %v6755_v33, %v3777_v52 }
 0x5c3   : > { %v3861_v13 = vadd.f32 %v6760_v38, %v3825_v2 }
 0x5c5   : > { %v3893_v39 = vadd.f32 %v4537_v40, %v3861_v13 }
 0x5c7   : > { %v3925_v60 = vmax.f32 %v3893_v39, 0.0 }
 0x5c8   : > { %v3779_v63 = vpop.f32.mrf.mxu2 }
 0x5c9   : > { %3957 = vst [vmem:[%s6770_s13 + $0xc0] sm:$0xff] %v3925_v60  ;;  %v3826_v24 = vmul.f32 %v6755_v33, %v3779_v63 }
 0x5cb   : > { %v3862_v15 = vadd.f32 %v6760_v38, %v3826_v24 }
 0x5cd   : > { %v3894_v56 = vadd.f32 %v4538_v53, %v3862_v15 }
 0x5cf   : > { %v3926_v51 = vmax.f32 %v3894_v56, 0.0 }
 0x5d0   : > { %v3782_v62 = vpop.f32.mrf.mxu2 }
 0x5d1   : > { %3958 = vst [vmem:[%s6770_s13 + $0xc8] sm:$0xff] %v3926_v51  ;;  %v3827_v16 = vmul.f32 %v6755_v33, %v3782_v62 }
 0x5d3   : > { %v3863_v57 = vadd.f32 %v6760_v38, %v3827_v16 }
 0x5d5   : > { %v3895_v27 = vadd.f32 %v4539_v29, %v3863_v57 }
 0x5d7   : > { %v3927_v10 = vmax.f32 %v3895_v27, 0.0 }
 0x5d8   : > { %v3784_v50 = vpop.f32.mrf.mxu2 }
 0x5d9   : > { %3959 = vst [vmem:[%s6770_s13 + $0xd0] sm:$0xff] %v3927_v10  ;;  %v3828_v18 = vmul.f32 %v6755_v33, %v3784_v50 }
 0x5db   : > { %v3864_v61 = vadd.f32 %v6760_v38, %v3828_v18 }
 0x5dd   : > { %v3896_v30 = vadd.f32 %v4540_v11, %v3864_v61 }
 0x5df   : > { %v3928_v37 = vmax.f32 %v3896_v30, 0.0 }
 0x5e0   : > { %v3787_v17 = vpop.f32.mrf.mxu2 }
 0x5e1   : > { %3960 = vst [vmem:[%s6770_s13 + $0xd8] sm:$0xff] %v3928_v37  ;;  %v3829_v6 = vmul.f32 %v6755_v33, %v3787_v17 }
 0x5e3   : > { %v3865_v44 = vadd.f32 %v6760_v38, %v3829_v6 }
 0x5e5   : > { %v3897_v22 = vadd.f32 %v4541_v19, %v3865_v44 }
 0x5e7   : > { %v3929_v21 = vmax.f32 %v3897_v22, 0.0 }
 0x5e8   : > { %v3789_v46 = vpop.f32.mrf.mxu2 }
 0x5e9   : > { %3961 = vst [vmem:[%s6770_s13 + $0xe0] sm:$0xff] %v3929_v21  ;;  %v3830_v32 = vmul.f32 %v6755_v33, %v3789_v46 }
 0x5eb   : > { %v3866_v41 = vadd.f32 %v6760_v38, %v3830_v32 }
 0x5ed   : > { %v3898_v58 = vadd.f32 %v4542_v0, %v3866_v41 }
 0x5ef   : > { %v3930_v55 = vmax.f32 %v3898_v58, 0.0 }
 0x5f0   : > { %v3792_v23 = vpop.f32.mrf.mxu2 }
 0x5f1   : > { %3962 = vst [vmem:[%s6770_s13 + $0xe8] sm:$0xff] %v3930_v55  ;;  %v3831_v7 = vmul.f32 %v6755_v33, %v3792_v23 }
 0x5f3   : > { %v3867_v36 = vadd.f32 %v6760_v38, %v3831_v7 }
 0x5f5   : > { %v3899_v48 = vadd.f32 %v4543_v54, %v3867_v36 }
 0x5f7   : > { %v3931_v26 = vmax.f32 %v3899_v48, 0.0 }
 0x5f8   : > { %v3794_v42 = vpop.f32.mrf.mxu2 }
 0x5f9   : > { %3963 = vst [vmem:[%s6770_s13 + $0xf0] sm:$0xff] %v3931_v26  ;;  %v3832_v12 = vmul.f32 %v6755_v33, %v3794_v42 }
 0x5fb   : > { %v3868_v43 = vadd.f32 %v6760_v38, %v3832_v12 }
 0x5fd   : > { %v3900_v47 = vadd.f32 %v4544_v4, %v3868_v43 }
 0x5ff   : > { %v3932_v3 = vmax.f32 %v3900_v47, 0.0 }
 0x601   : > { %3964 = vst [vmem:[%s6770_s13 + $0xf8] sm:$0xff] %v3932_v3 }
 0x602   : > { %4602 = shalt.err (!%p4599_p4)
}
 0x603   : > { %s4647_s30 = smov 128   ;;  %s4648_s17 = smov 8  }
 0x604   : > { %4455 = dma.vmem_to_hbm [thread:$0]  (%p4769_p11), %s3980_s19, 4096, %s3982_s24, %s3966_s29, %s4647_s30, %s4647_s30, %s4648_s17  }
 0x605 PF: > { %s7302_s13 = sld [smem:[#allocation9_spill]]  ;;  %p7304_p7 = scmp.ge.s32.totalorder %s4641_s28, 2 }
 0x607   : > { %p4462_p5 = pnand %p7304_p7, %p4773_p12 }
 0x609   : > { %p4463_p8 = pneg %p4462_p5 }
 0x60b   : > { %s3996_s0 = sand.u32 1, %s7302_s13  }
 0x60c   : > { %s3997_s16 = scalar_lea.sflag [#allocation5], %s3996_s0 }
 0x60d   : > { %4624 = dma.done.wait (%p4463_p8), %s3997_s16, 4096  }
 0x60e   : > { %4626 = vsyncadd (%p4463_p8), %s3997_s16, 4294963200  ;;  %s7305_s28 = sld [smem:[#allocation11_spill]]  ;;  %s7308_s25 = smov %s4633_s26 }
 0x60f   : > { %s7306_s15 = sld [smem:[#allocation10_spill]] }
 0x610   : > { %s7307_s27 = sld [smem:[#allocation12_spill]] }
 0x614   : > { %p26_p10 = scmp.ge.s32.totalorder %s7305_s28, 4  }
 0x615   : > { %s7309_s26 = smov %s7306_s15 }
 0x616   :  { %28 = sbr.rel (!%p26_p10) target bundleno = 8 (0x8), region = 120 }
 0x61b   :  { %4003 = vsyncpa [#allocation4], 1 }
 0x61c   :  { %4005 = vsyncpa [#allocation4 + $0x1], 1 }
 0x61d   :  { %4006 = vsyncpa [#allocation5], 1 }
 0x61e   :  { %4008 = vsyncpa [#allocation5 + $0x1], 1 }

</bundles_post_ra>
